<compile_context>
chip_gen: v6e
topology: v6e:2x2x1
jax: 0.10.0
libtpu: 0.0.40
codegen_flags: <defaults>
</compile_context>

<pallas_src>
import jax
import jax.numpy as jnp
import numpy as np
from jax.experimental import pallas as pl
from jax.experimental.pallas import tpu as pltpu


# Tap order: center tap FIRST so the residual (= x at the output position)
# lives in the first Cin lanes of the conv1 im2col patches.
TAPS = ((1, 1), (0, 0), (0, 1), (0, 2), (1, 0), (1, 2), (2, 0), (2, 1), (2, 2))


def _round_up(v, m):
    return (v + m - 1) // m * m


def basic_block_pallas(x_nhwc, w1_oihw, w2_oihw,
                       gamma1, beta1, mean1, var1,
                       gamma2, beta2, mean2, var2, eps=1e-5):
    """x_nhwc: (N, H, W, Cin) float32. Returns (N, H, W, Cout) float32."""
    N, H, W, Cin = x_nhwc.shape
    Cout = w1_oihw.shape[0]
    assert Cin == Cout, "downsample=None requires inplanes == planes"
    assert 9 * Cin <= 128 and Cout <= 128  # single-dot conv2 path (see TODO)

    f32, bf16 = jnp.float32, jnp.bfloat16

    H2, W2 = H + 2, W + 2            # 1-padded output grid (pad = 1)
    RV = H2 * W2                     # valid flattened rows
    CHK = 128                        # conv2/epilogue row-chunk (multiple of 8)
    R = _round_up(RV, CHK)           # padded row count per image
    Cp = 128                         # lane width (== conv1 K dim, per asserts)
    PAD_TOP = _round_up(W2 + 1, 8)   # aligned top margin of the conv2 slab
    ROWS = _round_up(PAD_TOP + R + W2 + 1, 8)
    d_taps = tuple((kh - 1) * W2 + (kw - 1) for kh, kw in TAPS)

    # ---- fold BatchNorm (eval mode) into per-channel scale/bias ----
    s1 = (gamma1 / jnp.sqrt(var1 + eps)).astype(f32)
    b1 = (beta1 - mean1 * s1).astype(f32)
    s2 = (gamma2 / jnp.sqrt(var2 + eps)).astype(f32)
    b2 = (beta2 - mean2 * s2).astype(f32)
    # s1/b1 are tiled across the 9 replicated conv1 output groups (see weights
    # below); s2/b2 stay single-group.  All four live in one (4, Cp) f32 input.
    sb = jnp.zeros((4, Cp), f32)
    sb = sb.at[0, :9 * Cout].set(jnp.tile(s1, 9))
    sb = sb.at[1, :9 * Cout].set(jnp.tile(b1, 9))
    sb = sb.at[2, :Cout].set(s2)
    sb = sb.at[3, :Cout].set(b2)

    # ---- weights ----
    # conv1: tap-major rows; its Cout output columns are replicated into the 9
    # lane groups so out1 arrives "pre-packed" for conv2's im2col.
    # conv2: tap-packed rows (row t*Cin + c  <->  lane t*Cin + c of the packed
    # conv2 LHS), plain Cout output columns.
    w1_hwio = jnp.transpose(w1_oihw, (2, 3, 1, 0)).astype(f32)   # (3,3,Cin,Cout)
    w2_hwio = jnp.transpose(w2_oihw, (2, 3, 1, 0)).astype(f32)
    w1_rows = jnp.concatenate([w1_hwio[kh, kw] for kh, kw in TAPS], axis=0)
    w2_rows = jnp.concatenate([w2_hwio[kh, kw] for kh, kw in TAPS], axis=0)
    w1m = jnp.zeros((Cp, Cp), f32).at[:9 * Cin, :9 * Cout].set(
        jnp.tile(w1_rows, (1, 9)))
    w2m = jnp.zeros((Cp, Cp), f32).at[:9 * Cin, :Cout].set(w2_rows)
    w_all = jnp.stack([w1m, w2m], axis=0).astype(bf16)           # (2, Cp, Cp)

    # ---- conv1 im2col patches (layout plumbing, emitted directly in bf16) ----
    # Row r = h'*W2 + w' of the 1-padded grid; lane t*Cin + c holds the
    # tap-(kh,kw) input value.  Lanes 0..Cin-1 (center tap) == residual x.
    xpad2 = jnp.pad(x_nhwc, ((0, 0), (2, 2), (2, 2), (0, 0)))
    cols = [xpad2[:, kh:kh + H2, kw:kw + W2, :] for kh, kw in TAPS]
    patches = jnp.concatenate(cols, axis=-1).reshape(N, RV, 9 * Cin)
    patches = jnp.pad(patches,
                      ((0, 0), (0, R - RV), (0, Cp - 9 * Cin))).astype(bf16)

    def kernel(p_ref, w_ref, sb_ref, out_ref, scr):
        # ---- conv1 + bn1 + relu: one (R,128)x(128,128) bf16 MXU dot ----
        acc1 = jnp.dot(p_ref[...], w_ref[0],
                       preferred_element_type=jnp.float32)        # (R, Cp) f32
        out1 = jnp.maximum(acc1 * sb_ref[0:1, :] + sb_ref[1:2, :], 0.0)
        # Interior-row mask, generated in-kernel (no (R,1) mask input): rows on
        # the padding ring (and the R-RV tail) become exact zeros so the
        # row-shifted conv2 reads see proper spatial zero padding.
        row = jax.lax.broadcasted_iota(jnp.int32, (R, 1), 0).astype(jnp.float32)
        hh = jnp.floor((row + 0.5) / W2)            # exact for these row values
        ww = row - hh * W2
        interior = ((hh >= 1.0) & (hh <= float(H)) &
                    (ww >= 1.0) & (ww <= float(W)))
        out1 = jnp.where(interior, out1, 0.0)

        # Zero the never-written halo margins (no uninitialized reads), then
        # store out1 once into the flat slab (aligned, full-lane, unmasked).
        scr[0:PAD_TOP, :] = jnp.zeros((PAD_TOP, Cp), jnp.float32)
        scr[PAD_TOP + R:ROWS, :] = jnp.zeros((ROWS - PAD_TOP - R, Cp),
                                             jnp.float32)
        scr[PAD_TOP:PAD_TOP + R, :] = out1

        # ---- conv2 + bn2 + residual + relu, row-chunked ----
        # out1 carries its Cout channels replicated at lanes [t*Cin,(t+1)*Cin);
        # selecting group t from the tap-t row-shifted slab and summing builds
        # the conv2 im2col LHS with VPU selects only, so conv2 is a single
        # (CHK,128)x(128,128) bf16 dot per chunk.
        for c0 in range(0, R, CHK):
            lane = jax.lax.broadcasted_iota(jnp.int32, (CHK, Cp), 1)
            packed = jnp.zeros((CHK, Cp), jnp.float32)
            for t in range(9):
                base = PAD_TOP + d_taps[t] + c0
                slab = scr[base:base + CHK, :]
                sel = (lane >= t * Cin) & (lane < (t + 1) * Cin)
                packed = packed + jnp.where(sel, slab, 0.0)
            acc2 = jnp.dot(packed.astype(jnp.bfloat16), w_ref[1],
                           preferred_element_type=jnp.float32)
            # Residual = center-tap lanes of the patches, lane-masked so output
            # lanes >= Cout stay exactly zero.
            resid = jnp.where(lane < Cin,
                              p_ref[c0:c0 + CHK, :].astype(jnp.float32), 0.0)
            out2 = acc2 * sb_ref[2:3, :] + sb_ref[3:4, :] + resid
            out_ref[c0:c0 + CHK, :] = jnp.maximum(out2, 0.0)

    out_full = pl.pallas_call(
        kernel,
        out_shape=jax.ShapeDtypeStruct((N, R, Cp), f32),
        grid_spec=pltpu.PrefetchScalarGridSpec(
            num_scalar_prefetch=0,
            grid=(N,),
            in_specs=[
                pl.BlockSpec((None, R, Cp), lambda n: (n, 0, 0)),   # patches
                pl.BlockSpec((2, Cp, Cp), lambda n: (0, 0, 0)),     # w1 | w2
                pl.BlockSpec((4, Cp), lambda n: (0, 0)),            # s1,b1,s2,b2
            ],
            out_specs=pl.BlockSpec((None, R, Cp), lambda n: (n, 0, 0)),
            scratch_shapes=[pltpu.VMEM((ROWS, Cp), f32)],
        ),
        compiler_params=pltpu.CompilerParams(
            dimension_semantics=("parallel",)),
    )(patches, w_all, sb)

    # Strip lane/row padding and the spatial halo (layout plumbing only).
    out = out_full[:, :RV, :Cout].reshape(N, H2, W2, Cout)[:, 1:H + 1, 1:W + 1, :]
    return out


def basic_block_reference(x_nhwc, w1_oihw, w2_oihw,
                          gamma1, beta1, mean1, var1,
                          gamma2, beta2, mean2, var2, eps=1e-5):
    """Pure-JAX f32 reference (same math as the PyTorch module in eval mode)."""
    s1 = gamma1 / jnp.sqrt(var1 + eps)
    b1 = beta1 - mean1 * s1
    s2 = gamma2 / jnp.sqrt(var2 + eps)
    b2 = beta2 - mean2 * s2
    w1_hwio = jnp.transpose(w1_oihw, (2, 3, 1, 0))
    w2_hwio = jnp.transpose(w2_oihw, (2, 3, 1, 0))
    dn = ('NHWC', 'HWIO', 'NHWC')
    out = jax.lax.conv_general_dilated(x_nhwc, w1_hwio, (1, 1),
                                       ((1, 1), (1, 1)), dimension_numbers=dn)
    out = jnp.maximum(out * s1 + b1, 0.0)
    out = jax.lax.conv_general_dilated(out, w2_hwio, (1, 1),
                                       ((1, 1), (1, 1)), dimension_numbers=dn)
    out = out * s2 + b2 + x_nhwc
    return jnp.maximum(out, 0.0)


if __name__ == "__main__":
    N, C, Hs, Ws = 2, 4, 16, 16          # inplanes = planes = 4, stride = 1
    key = jax.random.PRNGKey(0)
    keys = jax.random.split(key, 11)

    # PyTorch-style NCHW input, transposed to NHWC for the kernel.
    x_nchw = jax.random.normal(keys[0], (N, C, Hs, Ws), jnp.float32)
    x = jnp.transpose(x_nchw, (0, 2, 3, 1))

    # Deterministic synthetic parameters (shapes from BasicBlock.__init__).
    w1 = 0.1 * jax.random.normal(keys[1], (C, C, 3, 3), jnp.float32)   # conv1
    w2 = 0.1 * jax.random.normal(keys[2], (C, C, 3, 3), jnp.float32)   # conv2
    gamma1 = jax.random.uniform(keys[3], (C,), jnp.float32, 0.5, 1.5)
    beta1 = 0.1 * jax.random.normal(keys[4], (C,), jnp.float32)
    mean1 = 0.1 * jax.random.normal(keys[5], (C,), jnp.float32)
    var1 = jax.random.uniform(keys[6], (C,), jnp.float32, 0.5, 1.5)
    gamma2 = jax.random.uniform(keys[7], (C,), jnp.float32, 0.5, 1.5)
    beta2 = 0.1 * jax.random.normal(keys[8], (C,), jnp.float32)
    mean2 = 0.1 * jax.random.normal(keys[9], (C,), jnp.float32)
    var2 = jax.random.uniform(keys[10], (C,), jnp.float32, 0.5, 1.5)

    out = basic_block_pallas(x, w1, w2, gamma1, beta1, mean1, var1,
                             gamma2, beta2, mean2, var2)
    out = jax.block_until_ready(out)

    ref = basic_block_reference(x, w1, w2, gamma1, beta1, mean1, var1,
                                gamma2, beta2, mean2, var2)
    ref = jax.block_until_ready(ref)

    # bf16 MXU inputs (per the perf review) relax the old f32 bit-parity
    # target; 2e-2 is the standard bf16-vs-f32 comparison tolerance.
    np.testing.assert_allclose(np.asarray(out), np.asarray(ref),
                               rtol=2e-2, atol=2e-2)
    print("KERNEL_OK")
</pallas_src>

<mosaic_0001>
module attributes {stable_mosaic.version = 11 : i64} {
  func.func @kernel(%arg0: i32, %arg1: memref<1x384x128xbf16, #tpu.memory_space<vmem>>, %arg2: memref<2x128x128xbf16, #tpu.memory_space<vmem>>, %arg3: memref<4x128xf32, #tpu.memory_space<vmem>>, %arg4: memref<1x384x128xf32, #tpu.memory_space<vmem>>, %arg5: memref<432x128xf32, #tpu.memory_space<vmem>>) attributes {dimension_semantics = [#tpu.dimension_semantics<parallel>], iteration_bounds = array<i64: 2>, scalar_prefetch = 0 : i64, scratch_operands = 1 : i64, tpu.core_type = #tpu.core_type<tc>, window_params = [{transform_indices = @transform_0, window_bounds = array<i64: 1, 384, 128>}, {pipeline_mode = #tpu.pipeline_mode<synchronous>, transform_indices = @transform_1, window_bounds = array<i64: 2, 128, 128>}, {pipeline_mode = #tpu.pipeline_mode<synchronous>, transform_indices = @transform_2, window_bounds = array<i64: 4, 128>}, {transform_indices = @transform_3, window_bounds = array<i64: 1, 384, 128>}]} {
    %c0 = arith.constant 0 : index
    %c0_0 = arith.constant 0 : index
    %c0_1 = arith.constant 0 : index
    %0 = vector.load %arg1[%c0, %c0_0, %c0_1] : memref<1x384x128xbf16, #tpu.memory_space<vmem>>, vector<1x384x128xbf16>
    %1 = vector.shape_cast %0 : vector<1x384x128xbf16> to vector<384x128xbf16>
    %c0_2 = arith.constant 0 : index
    %c0_3 = arith.constant 0 : index
    %c0_4 = arith.constant 0 : index
    %2 = vector.load %arg2[%c0_2, %c0_3, %c0_4] : memref<2x128x128xbf16, #tpu.memory_space<vmem>>, vector<1x128x128xbf16>
    %3 = vector.shape_cast %2 : vector<1x128x128xbf16> to vector<128x128xbf16>
    %cst = arith.constant dense<0.000000e+00> : vector<384x128xf32>
    %4 = tpu.matmul %1, %3, %cst {dimension_numbers = #tpu.dot_dimension_numbers<[1], [0], [0], [1], [0, 0, 1, 1], [], []>} : vector<384x128xbf16>, vector<128x128xbf16>, vector<384x128xf32> -> vector<384x128xf32>
    %c0_5 = arith.constant 0 : index
    %c0_6 = arith.constant 0 : index
    %5 = vector.load %arg3[%c0_5, %c0_6] : memref<4x128xf32, #tpu.memory_space<vmem>>, vector<1x128xf32>
    %6 = vector.broadcast %5 : vector<1x128xf32> to vector<384x128xf32>
    %7 = arith.mulf %4, %6 : vector<384x128xf32>
    %c1 = arith.constant 1 : index
    %c0_7 = arith.constant 0 : index
    %8 = vector.load %arg3[%c1, %c0_7] : memref<4x128xf32, #tpu.memory_space<vmem>>, vector<1x128xf32>
    %9 = vector.broadcast %8 : vector<1x128xf32> to vector<384x128xf32>
    %10 = arith.addf %7, %9 : vector<384x128xf32>
    %cst_8 = arith.constant 0.000000e+00 : f32
    %11 = vector.broadcast %cst_8 : f32 to vector<384x128xf32>
    %12 = arith.maximumf %10, %11 : vector<384x128xf32>
    %13 = tpu.iota {dimensions = array<i32: 0>} : vector<384x1xi32>
    %14 = arith.sitofp %13 : vector<384x1xi32> to vector<384x1xf32>
    %cst_9 = arith.constant 5.000000e-01 : f32
    %15 = vector.broadcast %cst_9 : f32 to vector<384x1xf32>
    %16 = arith.addf %14, %15 : vector<384x1xf32>
    %cst_10 = arith.constant 1.800000e+01 : f32
    %17 = vector.broadcast %cst_10 : f32 to vector<384x1xf32>
    %18 = arith.divf %16, %17 : vector<384x1xf32>
    %19 = math.floor %18 : vector<384x1xf32>
    %cst_11 = arith.constant 1.800000e+01 : f32
    %20 = vector.broadcast %cst_11 : f32 to vector<384x1xf32>
    %21 = arith.mulf %19, %20 : vector<384x1xf32>
    %22 = arith.subf %14, %21 : vector<384x1xf32>
    %cst_12 = arith.constant 1.000000e+00 : f32
    %23 = vector.broadcast %cst_12 : f32 to vector<384x1xf32>
    %24 = arith.cmpf oge, %19, %23 : vector<384x1xf32>
    %cst_13 = arith.constant 1.600000e+01 : f32
    %25 = vector.broadcast %cst_13 : f32 to vector<384x1xf32>
    %26 = arith.cmpf ole, %19, %25 : vector<384x1xf32>
    %27 = arith.andi %24, %26 : vector<384x1xi1>
    %cst_14 = arith.constant 1.000000e+00 : f32
    %28 = vector.broadcast %cst_14 : f32 to vector<384x1xf32>
    %29 = arith.cmpf oge, %22, %28 : vector<384x1xf32>
    %30 = arith.andi %27, %29 : vector<384x1xi1>
    %cst_15 = arith.constant 1.600000e+01 : f32
    %31 = vector.broadcast %cst_15 : f32 to vector<384x1xf32>
    %32 = arith.cmpf ole, %22, %31 : vector<384x1xf32>
    %33 = arith.andi %30, %32 : vector<384x1xi1>
    %cst_16 = arith.constant 0.000000e+00 : f32
    %34 = vector.shape_cast %33 : vector<384x1xi1> to vector<384x1xi1>
    %35 = vector.broadcast %34 : vector<384x1xi1> to vector<384x128xi1>
    %36 = vector.broadcast %cst_16 : f32 to vector<384x128xf32>
    %37 = arith.select %35, %12, %36 : vector<384x128xi1>, vector<384x128xf32>
    %cst_17 = arith.constant 0.000000e+00 : f32
    %38 = vector.broadcast %cst_17 : f32 to vector<24x128xf32>
    %c0_18 = arith.constant 0 : index
    %c0_19 = arith.constant 0 : index
    %39 = vector.load %arg5[%c0_18, %c0_19] : memref<432x128xf32, #tpu.memory_space<vmem>>, vector<24x128xf32>
    tpu.vector_store %arg5[%c0_18, %c0_19], %38 {strides = array<i32>} : memref<432x128xf32, #tpu.memory_space<vmem>>, vector<24x128xf32>,
    %cst_20 = arith.constant 0.000000e+00 : f32
    %40 = vector.broadcast %cst_20 : f32 to vector<24x128xf32>
    %c408 = arith.constant 408 : index
    %c0_21 = arith.constant 0 : index
    %41 = vector.load %arg5[%c408, %c0_21] : memref<432x128xf32, #tpu.memory_space<vmem>>, vector<24x128xf32>
    tpu.vector_store %arg5[%c408, %c0_21], %40 {strides = array<i32>} : memref<432x128xf32, #tpu.memory_space<vmem>>, vector<24x128xf32>,
    %c24 = arith.constant 24 : index
    %c0_22 = arith.constant 0 : index
    %42 = vector.load %arg5[%c24, %c0_22] : memref<432x128xf32, #tpu.memory_space<vmem>>, vector<384x128xf32>
    tpu.vector_store %arg5[%c24, %c0_22], %37 {strides = array<i32>} : memref<432x128xf32, #tpu.memory_space<vmem>>, vector<384x128xf32>,
    %43 = tpu.iota {dimensions = array<i32: 1>} : vector<128x128xi32>
    %cst_23 = arith.constant 0.000000e+00 : f32
    %44 = vector.broadcast %cst_23 : f32 to vector<128x128xf32>
    %c24_24 = arith.constant 24 : index
    %c0_25 = arith.constant 0 : index
    %45 = vector.load %arg5[%c24_24, %c0_25] : memref<432x128xf32, #tpu.memory_space<vmem>>, vector<128x128xf32>
    %c0_i32 = arith.constant 0 : i32
    %46 = vector.broadcast %c0_i32 : i32 to vector<128x128xi32>
    %47 = arith.cmpi sge, %43, %46 : vector<128x128xi32>
    %c4_i32 = arith.constant 4 : i32
    %48 = vector.broadcast %c4_i32 : i32 to vector<128x128xi32>
    %49 = arith.cmpi slt, %43, %48 : vector<128x128xi32>
    %50 = arith.andi %47, %49 : vector<128x128xi1>
    %cst_26 = arith.constant 0.000000e+00 : f32
    %51 = vector.broadcast %cst_26 : f32 to vector<128x128xf32>
    %52 = arith.select %50, %45, %51 : vector<128x128xi1>, vector<128x128xf32>
    %53 = arith.addf %44, %52 : vector<128x128xf32>
    %c5 = arith.constant 5 : index
    %c0_27 = arith.constant 0 : index
    %54 = vector.load %arg5[%c5, %c0_27] : memref<432x128xf32, #tpu.memory_space<vmem>>, vector<128x128xf32>
    %c4_i32_28 = arith.constant 4 : i32
    %55 = vector.broadcast %c4_i32_28 : i32 to vector<128x128xi32>
    %56 = arith.cmpi sge, %43, %55 : vector<128x128xi32>
    %c8_i32 = arith.constant 8 : i32
    %57 = vector.broadcast %c8_i32 : i32 to vector<128x128xi32>
    %58 = arith.cmpi slt, %43, %57 : vector<128x128xi32>
    %59 = arith.andi %56, %58 : vector<128x128xi1>
    %cst_29 = arith.constant 0.000000e+00 : f32
    %60 = vector.broadcast %cst_29 : f32 to vector<128x128xf32>
    %61 = arith.select %59, %54, %60 : vector<128x128xi1>, vector<128x128xf32>
    %62 = arith.addf %53, %61 : vector<128x128xf32>
    %c6 = arith.constant 6 : index
    %c0_30 = arith.constant 0 : index
    %63 = vector.load %arg5[%c6, %c0_30] : memref<432x128xf32, #tpu.memory_space<vmem>>, vector<128x128xf32>
    %c8_i32_31 = arith.constant 8 : i32
    %64 = vector.broadcast %c8_i32_31 : i32 to vector<128x128xi32>
    %65 = arith.cmpi sge, %43, %64 : vector<128x128xi32>
    %c12_i32 = arith.constant 12 : i32
    %66 = vector.broadcast %c12_i32 : i32 to vector<128x128xi32>
    %67 = arith.cmpi slt, %43, %66 : vector<128x128xi32>
    %68 = arith.andi %65, %67 : vector<128x128xi1>
    %cst_32 = arith.constant 0.000000e+00 : f32
    %69 = vector.broadcast %cst_32 : f32 to vector<128x128xf32>
    %70 = arith.select %68, %63, %69 : vector<128x128xi1>, vector<128x128xf32>
    %71 = arith.addf %62, %70 : vector<128x128xf32>
    %c7 = arith.constant 7 : index
    %c0_33 = arith.constant 0 : index
    %72 = vector.load %arg5[%c7, %c0_33] : memref<432x128xf32, #tpu.memory_space<vmem>>, vector<128x128xf32>
    %c12_i32_34 = arith.constant 12 : i32
    %73 = vector.broadcast %c12_i32_34 : i32 to vector<128x128xi32>
    %74 = arith.cmpi sge, %43, %73 : vector<128x128xi32>
    %c16_i32 = arith.constant 16 : i32
    %75 = vector.broadcast %c16_i32 : i32 to vector<128x128xi32>
    %76 = arith.cmpi slt, %43, %75 : vector<128x128xi32>
    %77 = arith.andi %74, %76 : vector<128x128xi1>
    %cst_35 = arith.constant 0.000000e+00 : f32
    %78 = vector.broadcast %cst_35 : f32 to vector<128x128xf32>
    %79 = arith.select %77, %72, %78 : vector<128x128xi1>, vector<128x128xf32>
    %80 = arith.addf %71, %79 : vector<128x128xf32>
    %c23 = arith.constant 23 : index
    %c0_36 = arith.constant 0 : index
    %81 = vector.load %arg5[%c23, %c0_36] : memref<432x128xf32, #tpu.memory_space<vmem>>, vector<128x128xf32>
    %c16_i32_37 = arith.constant 16 : i32
    %82 = vector.broadcast %c16_i32_37 : i32 to vector<128x128xi32>
    %83 = arith.cmpi sge, %43, %82 : vector<128x128xi32>
    %c20_i32 = arith.constant 20 : i32
    %84 = vector.broadcast %c20_i32 : i32 to vector<128x128xi32>
    %85 = arith.cmpi slt, %43, %84 : vector<128x128xi32>
    %86 = arith.andi %83, %85 : vector<128x128xi1>
    %cst_38 = arith.constant 0.000000e+00 : f32
    %87 = vector.broadcast %cst_38 : f32 to vector<128x128xf32>
    %88 = arith.select %86, %81, %87 : vector<128x128xi1>, vector<128x128xf32>
    %89 = arith.addf %80, %88 : vector<128x128xf32>
    %c25 = arith.constant 25 : index
    %c0_39 = arith.constant 0 : index
    %90 = vector.load %arg5[%c25, %c0_39] : memref<432x128xf32, #tpu.memory_space<vmem>>, vector<128x128xf32>
    %c20_i32_40 = arith.constant 20 : i32
    %91 = vector.broadcast %c20_i32_40 : i32 to vector<128x128xi32>
    %92 = arith.cmpi sge, %43, %91 : vector<128x128xi32>
    %c24_i32 = arith.constant 24 : i32
    %93 = vector.broadcast %c24_i32 : i32 to vector<128x128xi32>
    %94 = arith.cmpi slt, %43, %93 : vector<128x128xi32>
    %95 = arith.andi %92, %94 : vector<128x128xi1>
    %cst_41 = arith.constant 0.000000e+00 : f32
    %96 = vector.broadcast %cst_41 : f32 to vector<128x128xf32>
    %97 = arith.select %95, %90, %96 : vector<128x128xi1>, vector<128x128xf32>
    %98 = arith.addf %89, %97 : vector<128x128xf32>
    %c41 = arith.constant 41 : index
    %c0_42 = arith.constant 0 : index
    %99 = vector.load %arg5[%c41, %c0_42] : memref<432x128xf32, #tpu.memory_space<vmem>>, vector<128x128xf32>
    %c24_i32_43 = arith.constant 24 : i32
    %100 = vector.broadcast %c24_i32_43 : i32 to vector<128x128xi32>
    %101 = arith.cmpi sge, %43, %100 : vector<128x128xi32>
    %c28_i32 = arith.constant 28 : i32
    %102 = vector.broadcast %c28_i32 : i32 to vector<128x128xi32>
    %103 = arith.cmpi slt, %43, %102 : vector<128x128xi32>
    %104 = arith.andi %101, %103 : vector<128x128xi1>
    %cst_44 = arith.constant 0.000000e+00 : f32
    %105 = vector.broadcast %cst_44 : f32 to vector<128x128xf32>
    %106 = arith.select %104, %99, %105 : vector<128x128xi1>, vector<128x128xf32>
    %107 = arith.addf %98, %106 : vector<128x128xf32>
    %c42 = arith.constant 42 : index
    %c0_45 = arith.constant 0 : index
    %108 = vector.load %arg5[%c42, %c0_45] : memref<432x128xf32, #tpu.memory_space<vmem>>, vector<128x128xf32>
    %c28_i32_46 = arith.constant 28 : i32
    %109 = vector.broadcast %c28_i32_46 : i32 to vector<128x128xi32>
    %110 = arith.cmpi sge, %43, %109 : vector<128x128xi32>
    %c32_i32 = arith.constant 32 : i32
    %111 = vector.broadcast %c32_i32 : i32 to vector<128x128xi32>
    %112 = arith.cmpi slt, %43, %111 : vector<128x128xi32>
    %113 = arith.andi %110, %112 : vector<128x128xi1>
    %cst_47 = arith.constant 0.000000e+00 : f32
    %114 = vector.broadcast %cst_47 : f32 to vector<128x128xf32>
    %115 = arith.select %113, %108, %114 : vector<128x128xi1>, vector<128x128xf32>
    %116 = arith.addf %107, %115 : vector<128x128xf32>
    %c43 = arith.constant 43 : index
    %c0_48 = arith.constant 0 : index
    %117 = vector.load %arg5[%c43, %c0_48] : memref<432x128xf32, #tpu.memory_space<vmem>>, vector<128x128xf32>
    %c32_i32_49 = arith.constant 32 : i32
    %118 = vector.broadcast %c32_i32_49 : i32 to vector<128x128xi32>
    %119 = arith.cmpi sge, %43, %118 : vector<128x128xi32>
    %c36_i32 = arith.constant 36 : i32
    %120 = vector.broadcast %c36_i32 : i32 to vector<128x128xi32>
    %121 = arith.cmpi slt, %43, %120 : vector<128x128xi32>
    %122 = arith.andi %119, %121 : vector<128x128xi1>
    %cst_50 = arith.constant 0.000000e+00 : f32
    %123 = vector.broadcast %cst_50 : f32 to vector<128x128xf32>
    %124 = arith.select %122, %117, %123 : vector<128x128xi1>, vector<128x128xf32>
    %125 = arith.addf %116, %124 : vector<128x128xf32>
    %126 = arith.truncf %125 : vector<128x128xf32> to vector<128x128xbf16>
    %c1_51 = arith.constant 1 : index
    %c0_52 = arith.constant 0 : index
    %c0_53 = arith.constant 0 : index
    %127 = vector.load %arg2[%c1_51, %c0_52, %c0_53] : memref<2x128x128xbf16, #tpu.memory_space<vmem>>, vector<1x128x128xbf16>
    %128 = vector.shape_cast %127 : vector<1x128x128xbf16> to vector<128x128xbf16>
    %cst_54 = arith.constant dense<0.000000e+00> : vector<128x128xf32>
    %129 = tpu.matmul %126, %128, %cst_54 {dimension_numbers = #tpu.dot_dimension_numbers<[1], [0], [0], [1], [0, 0, 1, 1], [], []>} : vector<128x128xbf16>, vector<128x128xbf16>, vector<128x128xf32> -> vector<128x128xf32>
    %c4_i32_55 = arith.constant 4 : i32
    %130 = vector.broadcast %c4_i32_55 : i32 to vector<128x128xi32>
    %131 = arith.cmpi slt, %43, %130 : vector<128x128xi32>
    %c0_56 = arith.constant 0 : index
    %c0_57 = arith.constant 0 : index
    %c0_58 = arith.constant 0 : index
    %132 = vector.load %arg1[%c0_56, %c0_57, %c0_58] : memref<1x384x128xbf16, #tpu.memory_space<vmem>>, vector<1x128x128xbf16>
    %133 = vector.shape_cast %132 : vector<1x128x128xbf16> to vector<128x128xbf16>
    %134 = arith.extf %133 : vector<128x128xbf16> to vector<128x128xf32>
    %cst_59 = arith.constant 0.000000e+00 : f32
    %135 = vector.broadcast %cst_59 : f32 to vector<128x128xf32>
    %136 = arith.select %131, %134, %135 : vector<128x128xi1>, vector<128x128xf32>
    %c2 = arith.constant 2 : index
    %c0_60 = arith.constant 0 : index
    %137 = vector.load %arg3[%c2, %c0_60] : memref<4x128xf32, #tpu.memory_space<vmem>>, vector<1x128xf32>
    %138 = vector.broadcast %137 : vector<1x128xf32> to vector<128x128xf32>
    %139 = arith.mulf %129, %138 : vector<128x128xf32>
    %c3 = arith.constant 3 : index
    %c0_61 = arith.constant 0 : index
    %140 = vector.load %arg3[%c3, %c0_61] : memref<4x128xf32, #tpu.memory_space<vmem>>, vector<1x128xf32>
    %141 = vector.broadcast %140 : vector<1x128xf32> to vector<128x128xf32>
    %142 = arith.addf %139, %141 : vector<128x128xf32>
    %143 = arith.addf %142, %136 : vector<128x128xf32>
    %cst_62 = arith.constant 0.000000e+00 : f32
    %144 = vector.broadcast %cst_62 : f32 to vector<128x128xf32>
    %145 = arith.maximumf %143, %144 : vector<128x128xf32>
    %c0_63 = arith.constant 0 : index
    %c0_64 = arith.constant 0 : index
    %c0_65 = arith.constant 0 : index
    %146 = vector.load %arg4[%c0_63, %c0_64, %c0_65] : memref<1x384x128xf32, #tpu.memory_space<vmem>>, vector<1x128x128xf32>
    %147 = vector.shape_cast %146 : vector<1x128x128xf32> to vector<128x128xf32>
    %148 = vector.shape_cast %145 : vector<128x128xf32> to vector<1x128x128xf32>
    tpu.vector_store %arg4[%c0_63, %c0_64, %c0_65], %148 {strides = array<i32>} : memref<1x384x128xf32, #tpu.memory_space<vmem>>, vector<1x128x128xf32>,
    %149 = tpu.iota {dimensions = array<i32: 1>} : vector<128x128xi32>
    %cst_66 = arith.constant 0.000000e+00 : f32
    %150 = vector.broadcast %cst_66 : f32 to vector<128x128xf32>
    %c152 = arith.constant 152 : index
    %c0_67 = arith.constant 0 : index
    %151 = vector.load %arg5[%c152, %c0_67] : memref<432x128xf32, #tpu.memory_space<vmem>>, vector<128x128xf32>
    %c0_i32_68 = arith.constant 0 : i32
    %152 = vector.broadcast %c0_i32_68 : i32 to vector<128x128xi32>
    %153 = arith.cmpi sge, %149, %152 : vector<128x128xi32>
    %c4_i32_69 = arith.constant 4 : i32
    %154 = vector.broadcast %c4_i32_69 : i32 to vector<128x128xi32>
    %155 = arith.cmpi slt, %149, %154 : vector<128x128xi32>
    %156 = arith.andi %153, %155 : vector<128x128xi1>
    %cst_70 = arith.constant 0.000000e+00 : f32
    %157 = vector.broadcast %cst_70 : f32 to vector<128x128xf32>
    %158 = arith.select %156, %151, %157 : vector<128x128xi1>, vector<128x128xf32>
    %159 = arith.addf %150, %158 : vector<128x128xf32>
    %c133 = arith.constant 133 : index
    %c0_71 = arith.constant 0 : index
    %160 = vector.load %arg5[%c133, %c0_71] : memref<432x128xf32, #tpu.memory_space<vmem>>, vector<128x128xf32>
    %c4_i32_72 = arith.constant 4 : i32
    %161 = vector.broadcast %c4_i32_72 : i32 to vector<128x128xi32>
    %162 = arith.cmpi sge, %149, %161 : vector<128x128xi32>
    %c8_i32_73 = arith.constant 8 : i32
    %163 = vector.broadcast %c8_i32_73 : i32 to vector<128x128xi32>
    %164 = arith.cmpi slt, %149, %163 : vector<128x128xi32>
    %165 = arith.andi %162, %164 : vector<128x128xi1>
    %cst_74 = arith.constant 0.000000e+00 : f32
    %166 = vector.broadcast %cst_74 : f32 to vector<128x128xf32>
    %167 = arith.select %165, %160, %166 : vector<128x128xi1>, vector<128x128xf32>
    %168 = arith.addf %159, %167 : vector<128x128xf32>
    %c134 = arith.constant 134 : index
    %c0_75 = arith.constant 0 : index
    %169 = vector.load %arg5[%c134, %c0_75] : memref<432x128xf32, #tpu.memory_space<vmem>>, vector<128x128xf32>
    %c8_i32_76 = arith.constant 8 : i32
    %170 = vector.broadcast %c8_i32_76 : i32 to vector<128x128xi32>
    %171 = arith.cmpi sge, %149, %170 : vector<128x128xi32>
    %c12_i32_77 = arith.constant 12 : i32
    %172 = vector.broadcast %c12_i32_77 : i32 to vector<128x128xi32>
    %173 = arith.cmpi slt, %149, %172 : vector<128x128xi32>
    %174 = arith.andi %171, %173 : vector<128x128xi1>
    %cst_78 = arith.constant 0.000000e+00 : f32
    %175 = vector.broadcast %cst_78 : f32 to vector<128x128xf32>
    %176 = arith.select %174, %169, %175 : vector<128x128xi1>, vector<128x128xf32>
    %177 = arith.addf %168, %176 : vector<128x128xf32>
    %c135 = arith.constant 135 : index
    %c0_79 = arith.constant 0 : index
    %178 = vector.load %arg5[%c135, %c0_79] : memref<432x128xf32, #tpu.memory_space<vmem>>, vector<128x128xf32>
    %c12_i32_80 = arith.constant 12 : i32
    %179 = vector.broadcast %c12_i32_80 : i32 to vector<128x128xi32>
    %180 = arith.cmpi sge, %149, %179 : vector<128x128xi32>
    %c16_i32_81 = arith.constant 16 : i32
    %181 = vector.broadcast %c16_i32_81 : i32 to vector<128x128xi32>
    %182 = arith.cmpi slt, %149, %181 : vector<128x128xi32>
    %183 = arith.andi %180, %182 : vector<128x128xi1>
    %cst_82 = arith.constant 0.000000e+00 : f32
    %184 = vector.broadcast %cst_82 : f32 to vector<128x128xf32>
    %185 = arith.select %183, %178, %184 : vector<128x128xi1>, vector<128x128xf32>
    %186 = arith.addf %177, %185 : vector<128x128xf32>
    %c151 = arith.constant 151 : index
    %c0_83 = arith.constant 0 : index
    %187 = vector.load %arg5[%c151, %c0_83] : memref<432x128xf32, #tpu.memory_space<vmem>>, vector<128x128xf32>
    %c16_i32_84 = arith.constant 16 : i32
    %188 = vector.broadcast %c16_i32_84 : i32 to vector<128x128xi32>
    %189 = arith.cmpi sge, %149, %188 : vector<128x128xi32>
    %c20_i32_85 = arith.constant 20 : i32
    %190 = vector.broadcast %c20_i32_85 : i32 to vector<128x128xi32>
    %191 = arith.cmpi slt, %149, %190 : vector<128x128xi32>
    %192 = arith.andi %189, %191 : vector<128x128xi1>
    %cst_86 = arith.constant 0.000000e+00 : f32
    %193 = vector.broadcast %cst_86 : f32 to vector<128x128xf32>
    %194 = arith.select %192, %187, %193 : vector<128x128xi1>, vector<128x128xf32>
    %195 = arith.addf %186, %194 : vector<128x128xf32>
    %c153 = arith.constant 153 : index
    %c0_87 = arith.constant 0 : index
    %196 = vector.load %arg5[%c153, %c0_87] : memref<432x128xf32, #tpu.memory_space<vmem>>, vector<128x128xf32>
    %c20_i32_88 = arith.constant 20 : i32
    %197 = vector.broadcast %c20_i32_88 : i32 to vector<128x128xi32>
    %198 = arith.cmpi sge, %149, %197 : vector<128x128xi32>
    %c24_i32_89 = arith.constant 24 : i32
    %199 = vector.broadcast %c24_i32_89 : i32 to vector<128x128xi32>
    %200 = arith.cmpi slt, %149, %199 : vector<128x128xi32>
    %201 = arith.andi %198, %200 : vector<128x128xi1>
    %cst_90 = arith.constant 0.000000e+00 : f32
    %202 = vector.broadcast %cst_90 : f32 to vector<128x128xf32>
    %203 = arith.select %201, %196, %202 : vector<128x128xi1>, vector<128x128xf32>
    %204 = arith.addf %195, %203 : vector<128x128xf32>
    %c169 = arith.constant 169 : index
    %c0_91 = arith.constant 0 : index
    %205 = vector.load %arg5[%c169, %c0_91] : memref<432x128xf32, #tpu.memory_space<vmem>>, vector<128x128xf32>
    %c24_i32_92 = arith.constant 24 : i32
    %206 = vector.broadcast %c24_i32_92 : i32 to vector<128x128xi32>
    %207 = arith.cmpi sge, %149, %206 : vector<128x128xi32>
    %c28_i32_93 = arith.constant 28 : i32
    %208 = vector.broadcast %c28_i32_93 : i32 to vector<128x128xi32>
    %209 = arith.cmpi slt, %149, %208 : vector<128x128xi32>
    %210 = arith.andi %207, %209 : vector<128x128xi1>
    %cst_94 = arith.constant 0.000000e+00 : f32
    %211 = vector.broadcast %cst_94 : f32 to vector<128x128xf32>
    %212 = arith.select %210, %205, %211 : vector<128x128xi1>, vector<128x128xf32>
    %213 = arith.addf %204, %212 : vector<128x128xf32>
    %c170 = arith.constant 170 : index
    %c0_95 = arith.constant 0 : index
    %214 = vector.load %arg5[%c170, %c0_95] : memref<432x128xf32, #tpu.memory_space<vmem>>, vector<128x128xf32>
    %c28_i32_96 = arith.constant 28 : i32
    %215 = vector.broadcast %c28_i32_96 : i32 to vector<128x128xi32>
    %216 = arith.cmpi sge, %149, %215 : vector<128x128xi32>
    %c32_i32_97 = arith.constant 32 : i32
    %217 = vector.broadcast %c32_i32_97 : i32 to vector<128x128xi32>
    %218 = arith.cmpi slt, %149, %217 : vector<128x128xi32>
    %219 = arith.andi %216, %218 : vector<128x128xi1>
    %cst_98 = arith.constant 0.000000e+00 : f32
    %220 = vector.broadcast %cst_98 : f32 to vector<128x128xf32>
    %221 = arith.select %219, %214, %220 : vector<128x128xi1>, vector<128x128xf32>
    %222 = arith.addf %213, %221 : vector<128x128xf32>
    %c171 = arith.constant 171 : index
    %c0_99 = arith.constant 0 : index
    %223 = vector.load %arg5[%c171, %c0_99] : memref<432x128xf32, #tpu.memory_space<vmem>>, vector<128x128xf32>
    %c32_i32_100 = arith.constant 32 : i32
    %224 = vector.broadcast %c32_i32_100 : i32 to vector<128x128xi32>
    %225 = arith.cmpi sge, %149, %224 : vector<128x128xi32>
    %c36_i32_101 = arith.constant 36 : i32
    %226 = vector.broadcast %c36_i32_101 : i32 to vector<128x128xi32>
    %227 = arith.cmpi slt, %149, %226 : vector<128x128xi32>
    %228 = arith.andi %225, %227 : vector<128x128xi1>
    %cst_102 = arith.constant 0.000000e+00 : f32
    %229 = vector.broadcast %cst_102 : f32 to vector<128x128xf32>
    %230 = arith.select %228, %223, %229 : vector<128x128xi1>, vector<128x128xf32>
    %231 = arith.addf %222, %230 : vector<128x128xf32>
    %232 = arith.truncf %231 : vector<128x128xf32> to vector<128x128xbf16>
    %c1_103 = arith.constant 1 : index
    %c0_104 = arith.constant 0 : index
    %c0_105 = arith.constant 0 : index
    %233 = vector.load %arg2[%c1_103, %c0_104, %c0_105] : memref<2x128x128xbf16, #tpu.memory_space<vmem>>, vector<1x128x128xbf16>
    %234 = vector.shape_cast %233 : vector<1x128x128xbf16> to vector<128x128xbf16>
    %cst_106 = arith.constant dense<0.000000e+00> : vector<128x128xf32>
    %235 = tpu.matmul %232, %234, %cst_106 {dimension_numbers = #tpu.dot_dimension_numbers<[1], [0], [0], [1], [0, 0, 1, 1], [], []>} : vector<128x128xbf16>, vector<128x128xbf16>, vector<128x128xf32> -> vector<128x128xf32>
    %c4_i32_107 = arith.constant 4 : i32
    %236 = vector.broadcast %c4_i32_107 : i32 to vector<128x128xi32>
    %237 = arith.cmpi slt, %149, %236 : vector<128x128xi32>
    %c0_108 = arith.constant 0 : index
    %c128 = arith.constant 128 : index
    %c0_109 = arith.constant 0 : index
    %238 = vector.load %arg1[%c0_108, %c128, %c0_109] : memref<1x384x128xbf16, #tpu.memory_space<vmem>>, vector<1x128x128xbf16>
    %239 = vector.shape_cast %238 : vector<1x128x128xbf16> to vector<128x128xbf16>
    %240 = arith.extf %239 : vector<128x128xbf16> to vector<128x128xf32>
    %cst_110 = arith.constant 0.000000e+00 : f32
    %241 = vector.broadcast %cst_110 : f32 to vector<128x128xf32>
    %242 = arith.select %237, %240, %241 : vector<128x128xi1>, vector<128x128xf32>
    %c2_111 = arith.constant 2 : index
    %c0_112 = arith.constant 0 : index
    %243 = vector.load %arg3[%c2_111, %c0_112] : memref<4x128xf32, #tpu.memory_space<vmem>>, vector<1x128xf32>
    %244 = vector.broadcast %243 : vector<1x128xf32> to vector<128x128xf32>
    %245 = arith.mulf %235, %244 : vector<128x128xf32>
    %c3_113 = arith.constant 3 : index
    %c0_114 = arith.constant 0 : index
    %246 = vector.load %arg3[%c3_113, %c0_114] : memref<4x128xf32, #tpu.memory_space<vmem>>, vector<1x128xf32>
    %247 = vector.broadcast %246 : vector<1x128xf32> to vector<128x128xf32>
    %248 = arith.addf %245, %247 : vector<128x128xf32>
    %249 = arith.addf %248, %242 : vector<128x128xf32>
    %cst_115 = arith.constant 0.000000e+00 : f32
    %250 = vector.broadcast %cst_115 : f32 to vector<128x128xf32>
    %251 = arith.maximumf %249, %250 : vector<128x128xf32>
    %c0_116 = arith.constant 0 : index
    %c128_117 = arith.constant 128 : index
    %c0_118 = arith.constant 0 : index
    %252 = vector.load %arg4[%c0_116, %c128_117, %c0_118] : memref<1x384x128xf32, #tpu.memory_space<vmem>>, vector<1x128x128xf32>
    %253 = vector.shape_cast %252 : vector<1x128x128xf32> to vector<128x128xf32>
    %254 = vector.shape_cast %251 : vector<128x128xf32> to vector<1x128x128xf32>
    tpu.vector_store %arg4[%c0_116, %c128_117, %c0_118], %254 {strides = array<i32>} : memref<1x384x128xf32, #tpu.memory_space<vmem>>, vector<1x128x128xf32>,
    %255 = tpu.iota {dimensions = array<i32: 1>} : vector<128x128xi32>
    %cst_119 = arith.constant 0.000000e+00 : f32
    %256 = vector.broadcast %cst_119 : f32 to vector<128x128xf32>
    %c280 = arith.constant 280 : index
    %c0_120 = arith.constant 0 : index
    %257 = vector.load %arg5[%c280, %c0_120] : memref<432x128xf32, #tpu.memory_space<vmem>>, vector<128x128xf32>
    %c0_i32_121 = arith.constant 0 : i32
    %258 = vector.broadcast %c0_i32_121 : i32 to vector<128x128xi32>
    %259 = arith.cmpi sge, %255, %258 : vector<128x128xi32>
    %c4_i32_122 = arith.constant 4 : i32
    %260 = vector.broadcast %c4_i32_122 : i32 to vector<128x128xi32>
    %261 = arith.cmpi slt, %255, %260 : vector<128x128xi32>
    %262 = arith.andi %259, %261 : vector<128x128xi1>
    %cst_123 = arith.constant 0.000000e+00 : f32
    %263 = vector.broadcast %cst_123 : f32 to vector<128x128xf32>
    %264 = arith.select %262, %257, %263 : vector<128x128xi1>, vector<128x128xf32>
    %265 = arith.addf %256, %264 : vector<128x128xf32>
    %c261 = arith.constant 261 : index
    %c0_124 = arith.constant 0 : index
    %266 = vector.load %arg5[%c261, %c0_124] : memref<432x128xf32, #tpu.memory_space<vmem>>, vector<128x128xf32>
    %c4_i32_125 = arith.constant 4 : i32
    %267 = vector.broadcast %c4_i32_125 : i32 to vector<128x128xi32>
    %268 = arith.cmpi sge, %255, %267 : vector<128x128xi32>
    %c8_i32_126 = arith.constant 8 : i32
    %269 = vector.broadcast %c8_i32_126 : i32 to vector<128x128xi32>
    %270 = arith.cmpi slt, %255, %269 : vector<128x128xi32>
    %271 = arith.andi %268, %270 : vector<128x128xi1>
    %cst_127 = arith.constant 0.000000e+00 : f32
    %272 = vector.broadcast %cst_127 : f32 to vector<128x128xf32>
    %273 = arith.select %271, %266, %272 : vector<128x128xi1>, vector<128x128xf32>
    %274 = arith.addf %265, %273 : vector<128x128xf32>
    %c262 = arith.constant 262 : index
    %c0_128 = arith.constant 0 : index
    %275 = vector.load %arg5[%c262, %c0_128] : memref<432x128xf32, #tpu.memory_space<vmem>>, vector<128x128xf32>
    %c8_i32_129 = arith.constant 8 : i32
    %276 = vector.broadcast %c8_i32_129 : i32 to vector<128x128xi32>
    %277 = arith.cmpi sge, %255, %276 : vector<128x128xi32>
    %c12_i32_130 = arith.constant 12 : i32
    %278 = vector.broadcast %c12_i32_130 : i32 to vector<128x128xi32>
    %279 = arith.cmpi slt, %255, %278 : vector<128x128xi32>
    %280 = arith.andi %277, %279 : vector<128x128xi1>
    %cst_131 = arith.constant 0.000000e+00 : f32
    %281 = vector.broadcast %cst_131 : f32 to vector<128x128xf32>
    %282 = arith.select %280, %275, %281 : vector<128x128xi1>, vector<128x128xf32>
    %283 = arith.addf %274, %282 : vector<128x128xf32>
    %c263 = arith.constant 263 : index
    %c0_132 = arith.constant 0 : index
    %284 = vector.load %arg5[%c263, %c0_132] : memref<432x128xf32, #tpu.memory_space<vmem>>, vector<128x128xf32>
    %c12_i32_133 = arith.constant 12 : i32
    %285 = vector.broadcast %c12_i32_133 : i32 to vector<128x128xi32>
    %286 = arith.cmpi sge, %255, %285 : vector<128x128xi32>
    %c16_i32_134 = arith.constant 16 : i32
    %287 = vector.broadcast %c16_i32_134 : i32 to vector<128x128xi32>
    %288 = arith.cmpi slt, %255, %287 : vector<128x128xi32>
    %289 = arith.andi %286, %288 : vector<128x128xi1>
    %cst_135 = arith.constant 0.000000e+00 : f32
    %290 = vector.broadcast %cst_135 : f32 to vector<128x128xf32>
    %291 = arith.select %289, %284, %290 : vector<128x128xi1>, vector<128x128xf32>
    %292 = arith.addf %283, %291 : vector<128x128xf32>
    %c279 = arith.constant 279 : index
    %c0_136 = arith.constant 0 : index
    %293 = vector.load %arg5[%c279, %c0_136] : memref<432x128xf32, #tpu.memory_space<vmem>>, vector<128x128xf32>
    %c16_i32_137 = arith.constant 16 : i32
    %294 = vector.broadcast %c16_i32_137 : i32 to vector<128x128xi32>
    %295 = arith.cmpi sge, %255, %294 : vector<128x128xi32>
    %c20_i32_138 = arith.constant 20 : i32
    %296 = vector.broadcast %c20_i32_138 : i32 to vector<128x128xi32>
    %297 = arith.cmpi slt, %255, %296 : vector<128x128xi32>
    %298 = arith.andi %295, %297 : vector<128x128xi1>
    %cst_139 = arith.constant 0.000000e+00 : f32
    %299 = vector.broadcast %cst_139 : f32 to vector<128x128xf32>
    %300 = arith.select %298, %293, %299 : vector<128x128xi1>, vector<128x128xf32>
    %301 = arith.addf %292, %300 : vector<128x128xf32>
    %c281 = arith.constant 281 : index
    %c0_140 = arith.constant 0 : index
    %302 = vector.load %arg5[%c281, %c0_140] : memref<432x128xf32, #tpu.memory_space<vmem>>, vector<128x128xf32>
    %c20_i32_141 = arith.constant 20 : i32
    %303 = vector.broadcast %c20_i32_141 : i32 to vector<128x128xi32>
    %304 = arith.cmpi sge, %255, %303 : vector<128x128xi32>
    %c24_i32_142 = arith.constant 24 : i32
    %305 = vector.broadcast %c24_i32_142 : i32 to vector<128x128xi32>
    %306 = arith.cmpi slt, %255, %305 : vector<128x128xi32>
    %307 = arith.andi %304, %306 : vector<128x128xi1>
    %cst_143 = arith.constant 0.000000e+00 : f32
    %308 = vector.broadcast %cst_143 : f32 to vector<128x128xf32>
    %309 = arith.select %307, %302, %308 : vector<128x128xi1>, vector<128x128xf32>
    %310 = arith.addf %301, %309 : vector<128x128xf32>
    %c297 = arith.constant 297 : index
    %c0_144 = arith.constant 0 : index
    %311 = vector.load %arg5[%c297, %c0_144] : memref<432x128xf32, #tpu.memory_space<vmem>>, vector<128x128xf32>
    %c24_i32_145 = arith.constant 24 : i32
    %312 = vector.broadcast %c24_i32_145 : i32 to vector<128x128xi32>
    %313 = arith.cmpi sge, %255, %312 : vector<128x128xi32>
    %c28_i32_146 = arith.constant 28 : i32
    %314 = vector.broadcast %c28_i32_146 : i32 to vector<128x128xi32>
    %315 = arith.cmpi slt, %255, %314 : vector<128x128xi32>
    %316 = arith.andi %313, %315 : vector<128x128xi1>
    %cst_147 = arith.constant 0.000000e+00 : f32
    %317 = vector.broadcast %cst_147 : f32 to vector<128x128xf32>
    %318 = arith.select %316, %311, %317 : vector<128x128xi1>, vector<128x128xf32>
    %319 = arith.addf %310, %318 : vector<128x128xf32>
    %c298 = arith.constant 298 : index
    %c0_148 = arith.constant 0 : index
    %320 = vector.load %arg5[%c298, %c0_148] : memref<432x128xf32, #tpu.memory_space<vmem>>, vector<128x128xf32>
    %c28_i32_149 = arith.constant 28 : i32
    %321 = vector.broadcast %c28_i32_149 : i32 to vector<128x128xi32>
    %322 = arith.cmpi sge, %255, %321 : vector<128x128xi32>
    %c32_i32_150 = arith.constant 32 : i32
    %323 = vector.broadcast %c32_i32_150 : i32 to vector<128x128xi32>
    %324 = arith.cmpi slt, %255, %323 : vector<128x128xi32>
    %325 = arith.andi %322, %324 : vector<128x128xi1>
    %cst_151 = arith.constant 0.000000e+00 : f32
    %326 = vector.broadcast %cst_151 : f32 to vector<128x128xf32>
    %327 = arith.select %325, %320, %326 : vector<128x128xi1>, vector<128x128xf32>
    %328 = arith.addf %319, %327 : vector<128x128xf32>
    %c299 = arith.constant 299 : index
    %c0_152 = arith.constant 0 : index
    %329 = vector.load %arg5[%c299, %c0_152] : memref<432x128xf32, #tpu.memory_space<vmem>>, vector<128x128xf32>
    %c32_i32_153 = arith.constant 32 : i32
    %330 = vector.broadcast %c32_i32_153 : i32 to vector<128x128xi32>
    %331 = arith.cmpi sge, %255, %330 : vector<128x128xi32>
    %c36_i32_154 = arith.constant 36 : i32
    %332 = vector.broadcast %c36_i32_154 : i32 to vector<128x128xi32>
    %333 = arith.cmpi slt, %255, %332 : vector<128x128xi32>
    %334 = arith.andi %331, %333 : vector<128x128xi1>
    %cst_155 = arith.constant 0.000000e+00 : f32
    %335 = vector.broadcast %cst_155 : f32 to vector<128x128xf32>
    %336 = arith.select %334, %329, %335 : vector<128x128xi1>, vector<128x128xf32>
    %337 = arith.addf %328, %336 : vector<128x128xf32>
    %338 = arith.truncf %337 : vector<128x128xf32> to vector<128x128xbf16>
    %c1_156 = arith.constant 1 : index
    %c0_157 = arith.constant 0 : index
    %c0_158 = arith.constant 0 : index
    %339 = vector.load %arg2[%c1_156, %c0_157, %c0_158] : memref<2x128x128xbf16, #tpu.memory_space<vmem>>, vector<1x128x128xbf16>
    %340 = vector.shape_cast %339 : vector<1x128x128xbf16> to vector<128x128xbf16>
    %cst_159 = arith.constant dense<0.000000e+00> : vector<128x128xf32>
    %341 = tpu.matmul %338, %340, %cst_159 {dimension_numbers = #tpu.dot_dimension_numbers<[1], [0], [0], [1], [0, 0, 1, 1], [], []>} : vector<128x128xbf16>, vector<128x128xbf16>, vector<128x128xf32> -> vector<128x128xf32>
    %c4_i32_160 = arith.constant 4 : i32
    %342 = vector.broadcast %c4_i32_160 : i32 to vector<128x128xi32>
    %343 = arith.cmpi slt, %255, %342 : vector<128x128xi32>
    %c0_161 = arith.constant 0 : index
    %c256 = arith.constant 256 : index
    %c0_162 = arith.constant 0 : index
    %344 = vector.load %arg1[%c0_161, %c256, %c0_162] : memref<1x384x128xbf16, #tpu.memory_space<vmem>>, vector<1x128x128xbf16>
    %345 = vector.shape_cast %344 : vector<1x128x128xbf16> to vector<128x128xbf16>
    %346 = arith.extf %345 : vector<128x128xbf16> to vector<128x128xf32>
    %cst_163 = arith.constant 0.000000e+00 : f32
    %347 = vector.broadcast %cst_163 : f32 to vector<128x128xf32>
    %348 = arith.select %343, %346, %347 : vector<128x128xi1>, vector<128x128xf32>
    %c2_164 = arith.constant 2 : index
    %c0_165 = arith.constant 0 : index
    %349 = vector.load %arg3[%c2_164, %c0_165] : memref<4x128xf32, #tpu.memory_space<vmem>>, vector<1x128xf32>
    %350 = vector.broadcast %349 : vector<1x128xf32> to vector<128x128xf32>
    %351 = arith.mulf %341, %350 : vector<128x128xf32>
    %c3_166 = arith.constant 3 : index
    %c0_167 = arith.constant 0 : index
    %352 = vector.load %arg3[%c3_166, %c0_167] : memref<4x128xf32, #tpu.memory_space<vmem>>, vector<1x128xf32>
    %353 = vector.broadcast %352 : vector<1x128xf32> to vector<128x128xf32>
    %354 = arith.addf %351, %353 : vector<128x128xf32>
    %355 = arith.addf %354, %348 : vector<128x128xf32>
    %cst_168 = arith.constant 0.000000e+00 : f32
    %356 = vector.broadcast %cst_168 : f32 to vector<128x128xf32>
    %357 = arith.maximumf %355, %356 : vector<128x128xf32>
    %c0_169 = arith.constant 0 : index
    %c256_170 = arith.constant 256 : index
    %c0_171 = arith.constant 0 : index
    %358 = vector.load %arg4[%c0_169, %c256_170, %c0_171] : memref<1x384x128xf32, #tpu.memory_space<vmem>>, vector<1x128x128xf32>
    %359 = vector.shape_cast %358 : vector<1x128x128xf32> to vector<128x128xf32>
    %360 = vector.shape_cast %357 : vector<128x128xf32> to vector<1x128x128xf32>
    tpu.vector_store %arg4[%c0_169, %c256_170, %c0_171], %360 {strides = array<i32>} : memref<1x384x128xf32, #tpu.memory_space<vmem>>, vector<1x128x128xf32>,
    return
  }
  func.func @transform_0(%arg0: i32) -> (i32, i32, i32) {
    %c0_i32 = arith.constant 0 : i32
    %c0_i32_0 = arith.constant 0 : i32
    %c0_i32_1 = arith.constant 0 : i32
    return %arg0, %c0_i32, %c0_i32_0 : i32, i32, i32
  }
  func.func @transform_1(%arg0: i32) -> (i32, i32, i32) {
    %c0_i32 = arith.constant 0 : i32
    %c0_i32_0 = arith.constant 0 : i32
    %c0_i32_1 = arith.constant 0 : i32
    %c0_i32_2 = arith.constant 0 : i32
    return %c0_i32, %c0_i32_0, %c0_i32_1 : i32, i32, i32
  }
  func.func @transform_2(%arg0: i32) -> (i32, i32) {
    %c0_i32 = arith.constant 0 : i32
    %c0_i32_0 = arith.constant 0 : i32
    %c0_i32_1 = arith.constant 0 : i32
    return %c0_i32, %c0_i32_0 : i32, i32
  }
  func.func @transform_3(%arg0: i32) -> (i32, i32, i32) {
    %c0_i32 = arith.constant 0 : i32
    %c0_i32_0 = arith.constant 0 : i32
    %c0_i32_1 = arith.constant 0 : i32
    return %arg0, %c0_i32, %c0_i32_0 : i32, i32, i32
  }
}

</mosaic_0001>

<bundles_post_ra>
// kernel: tpu_custom_call.1
= control target key start
LH: loop header
LB: loop body
LE: loop exit
PB: predicated region body
PF: predicated region fallthrough
CT: control target
= control target key end

     0   :  { %8 = vsyncpa [#allocation4], 0  ;;  %s8524_s0 = inlined_call_operand.hbm [shape: bf16[2,384,128], index: 0, kind: input, shape index: {}]   ;;  %s8525_s1 = inlined_call_operand.hbm [shape: bf16[2,128,128], index: 1, kind: input, shape index: {}]   ;;  %s8526_s2 = inlined_call_operand.hbm [shape: f32[4,128], index: 2, kind: input, shape index: {}]   ;;  %s8527_s3 = inlined_call_operand.hbm [shape: f32[2,384,128], index: 3, kind: output, shape index: {}]  }
   0x1   :  { %10 = vsyncpa [#allocation4 + $0x1], 0 }
   0x2   :  { %11 = vsyncpa [#allocation7], 0 }
   0x3   :  { %12 = vsyncpa [#allocation5], 0 }
   0x4   :  { %14 = vsyncpa [#allocation5 + $0x1], 0  ;;  %s4745_s12 = smov 0   ;;  %s4747_s13 = smov 0  }
   0x5   :  { %s4749_s14 = smov 0   ;;  %s4751_s15 = smov 0  }
   0x6 LB: > { %s4766_s16 = sadd.s32 4294967295, %s4714_s15   ;;  %s3993_s17 = sadd.s32 4294967294, %s4714_s15   ;;  %s4714_s15 = sphi %s4751_s15, %s9303_s15   ;;  %s4710_s14 = sphi %s4749_s14, %s9302_s14   ;;  %s4706_s13 = sphi %s4747_s13, %s9301_s13   ;;  %s4702_s12 = sphi %s4745_s12, %s9300_s12  }
   0x7   : > { %p40_p0 = scmp.ne.s32.totalorder %s4706_s13, %s4702_s12  ;;  %p8528_p1 = scmp.eq.s32.totalorder %s4766_s16, 0 }
   0x8   : > { %p106_p2 = scmp.eq.s32.totalorder %s4766_s16, 1  ;;  %p112_p3 = scmp.eq.s32.totalorder %s3993_s17, 1 }
   0x9   : > { %p4775_p4 = por %p8528_p1, %p40_p0  ;;  %p3994_p5 = scmp.ge.s32.totalorder %s4714_s15, 1 }
   0xa   : > { %p4780_p6 = por %p112_p3, %p40_p0  ;;  %p119_p7 = scmp.lt.s32.totalorder %s4714_s15, 3 }
   0xb   : > { %s8639_s18 = scalar_select %p4775_p4, 1, 0 }
   0xc   : > { %s8640_s19 = scalar_select %p4780_p6, 1, 0 }
   0xd   : > { %p4785_p8 = pnand %p3994_p5, %p119_p7  ;;  %s4716_s21 = smov [#allocation6]  }
   0xe   : > { %s131_s22 = sshll.u32 %s4716_s21, 4  ;;  %s4717_s24 = smov [#allocation8]   ;;  %s132_s22 = int_to_ptr.vmem [resolvable:$true] %s131_s22 }
   0xf   : > { %s8641_s20 = scalar_select %p4785_p8, 1, 0 }
  0x10   : > { %p4445_p9 = pneg %p4785_p8  ;;  %s145_s25 = sshll.u32 %s4717_s24, 4  ;;  %s146_s25 = int_to_ptr.vmem [resolvable:$true] %s145_s25 }
  0x11   : > { %s4577_s26 = scalar_lea.vmem %s132_s22, 2048  ;;  %p4585_p5 = scmp.lt.s32.totalorder %s132_s22, %s132_s22 }
  0x12   : > { %p4794_p11 = pnand %p4445_p9, %p8528_p1  ;;  %p4578_p13 = scmp.ne.s32.totalorder %s132_s22, %s4577_s26 }
  0x13   : > { %p4586_p7 = scmp.lt.s32.totalorder %s4577_s26, %s4577_s26 }
  0x14   : > { %p4568_p12 = pneg %p4794_p11 }
  0x15   : > { %p4587_p10 = por %p4586_p7, %p4585_p5 }
  0x16   : > { %p4580_p0 = pnand %p4578_p13, %p4568_p12 }
  0x18   : > { %p4581_p3 = pneg %p4580_p0 }
  0x1a   : > { %p4588_p9 = pnand %p4587_p10, %p4581_p3 }
  0x1c   : > { %4591 = shalt.err (!%p4588_p9)
}
  0x1d   : > { %s4718_s27 = smov 64   ;;  %s4719_s28 = smov 4  }
  0x1e   : > { %4448 = dma.hbm_to_vmem [thread:$0]  (!%p4794_p11), %s8525_s1, 2048, %s132_s22, [#allocation7], %s4718_s27, %s4718_s27, %s4719_s28  }
  0x1f   : > { %s4603_s4 = scalar_lea.vmem %s146_s25, 64  ;;  %p4611_p10 = scmp.lt.s32.totalorder %s146_s25, %s146_s25 }
  0x20   : > { %p4604_p13 = scmp.ne.s32.totalorder %s146_s25, %s4603_s4  ;;  %p4612_p3 = scmp.lt.s32.totalorder %s4603_s4, %s4603_s4 }
  0x22   : > { %p4606_p0 = pnand %p4604_p13, %p4568_p12  ;;  %p4613_p7 = por %p4612_p3, %p4611_p10 }
  0x24   : > { %p4607_p5 = pneg %p4606_p0 }
  0x26   : > { %p4614_p9 = pnand %p4613_p7, %p4607_p5 }
  0x28   : > { %4617 = shalt.err (!%p4614_p9)
}
  0x29   : > { %4451 = dma.hbm_to_vmem [thread:$0]  (!%p4794_p11), %s8526_s2, 64, %s146_s25, [#allocation7]  }
  0x2a   : > { %s4820_s7 = sadd.s32 1, %s4714_s15   ;;  %s27_s8 = sadd.s32 1, %s4710_s14 }
  0x2b   : > { %s24_s9 = ssub.s32 %s4714_s15, %s4820_s7  ;;  %p34_p12 = scmp.ne.s32.totalorder %s4710_s14, %s4706_s13 }
  0x2c   : > { %p25_p13 = scmp.eq.s32.totalorder %s24_s9, 0  ;;  %p35_p0 = scmp.eq.s32.totalorder %s4714_s15, 0 }
  0x2d   : > { %p4830_p5 = por %p106_p2, %p34_p12  ;;  %p4462_p10 = scmp.lt.s32.totalorder %s4714_s15, 2 }
  0x2e   : > { %s4836_s11 = scalar_select %p25_p13, %s4710_s14, %s27_s8  }
  0x2f   : > { %s8643_s10 = scalar_select %p4830_p5, 1, 0 }
  0x30   : > { %p36_p3 = por %p35_p0, %p34_p12  ;;  %s156_s17 = sand.u32 1, %s4710_s14  }
  0x31   : > { %s4428_s21 = smul.u32 192, %s156_s17  ;;  %s4851_s4 = scalar_lea.sflag [#allocation4], %s156_s17 }
  0x32   : > { %s4429_s22 = smul.u32 3072, %s4714_s15  ;;  %p4840_p11 = pnand %p4462_p10, %p36_p3 }
  0x33   : > { %s160_s29 = scalar_lea.vmem [#allocation3], %s4428_s21  ;;  %s4623_s9 = scalar_lea.hbm %s8524_s0, 6144 }
  0x34   : > { %s4847_s26 = scalar_lea.hbm %s8524_s0, %s4429_s22  ;;  %s167_s30 = sshll.u32 %s160_s29, 4  ;;  %s4849_s30 = int_to_ptr.vmem [resolvable:$true] %s167_s30 }
  0x35   : > { %s4618_s5 = scalar_lea.hbm %s4847_s26, 3072  ;;  %p4620_p7 = pneg %p4840_p11 }
  0x36   : > { %p4619_p2 = scmp.ne.s32.totalorder %s4847_s26, %s4618_s5  ;;  %p4624_p13 = scmp.lt.s32.totalorder %s4847_s26, %s8524_s0 }
  0x37   : > { %p4625_p0 = scmp.lt.s32.totalorder %s4623_s9, %s4618_s5 }
  0x38   : > { %p4621_p9 = pnand %p4620_p7, %p4619_p2 }
  0x39   : > { %p4626_p10 = por %p4625_p0, %p4624_p13 }
  0x3a   : > { %p4622_p12 = pneg %p4621_p9 }
  0x3c   : > { %p4627_p3 = pnand %p4626_p10, %p4622_p12 }
  0x3e   : > { %4630 = shalt.err (!%p4627_p3)
}
  0x3f   : > { %s4631_s17 = scalar_lea.vmem %s4849_s30, 3072  ;;  %s4720_s21 = smov [#allocation3]  }
  0x40   : > { %p4632_p1 = scmp.ne.s32.totalorder %s4849_s30, %s4631_s17  ;;  %s4636_s25 = sshll.u32 %s4720_s21, 4  ;;  %s4637_s25 = int_to_ptr.vmem [resolvable:$false] %s4636_s25 }
  0x41   : > { %s4638_s29 = scalar_lea.vmem %s4637_s25, 6144  ;;  %p4639_p9 = scmp.lt.s32.totalorder %s4849_s30, %s4637_s25 }
  0x42   : > { %p4634_p6 = pnand %p4632_p1, %p4620_p7  ;;  %p4640_p5 = scmp.lt.s32.totalorder %s4638_s29, %s4631_s17 }
  0x44   : > { %p4635_p2 = pneg %p4634_p6  ;;  %p4641_p4 = por %p4640_p5, %p4639_p9 }
  0x46   : > { %p4642_p8 = pnand %p4641_p4, %p4635_p2 }
  0x48   : > { %4645 = shalt.err (!%p4642_p8)
}
  0x49   : > { %4455 = dma.hbm_to_vmem [thread:$0]  (!%p4840_p11), %s4847_s26, 3072, %s4849_s30, %s4851_s4, %s4718_s27, %s4718_s27, %s4719_s28  }
  0x4a   : > { %p8645_p1 = scmp.ne.s32.totalorder %s8641_s20, 0 }
  0x4c   : > { %179 = sbr.rel (%p8645_p1) target bundleno = 883 (0x373), region = 32 }
  0x51   : > { %s4878_s5 = sand.u32 1, %s4706_s13   ;;  %p8646_p4 = scmp.ne.s32.totalorder %s8639_s18, 0 }
  0x52   : > { %s4430_s6 = smul.u32 192, %s4878_s5  ;;  %s182_s8 = scalar_lea.sflag [#allocation4], %s4878_s5 }
  0x54   : > { %s4882_s9 = scalar_lea.vmem [#allocation3], %s4430_s6 }
  0x55   : > { %4689 = dma.done.wait (%p8646_p4), %s182_s8, 3072  }
  0x56   : > { %4691 = vsyncadd (%p8646_p4), %s182_s8, 4294964224  ;;  %p8647_p6 = scmp.eq.s32.totalorder %s4766_s16, 0 }
  0x58   : > { %4693 = dma.done.wait (%p8647_p6), [#allocation7], 2112   ;;  %p8648_p8 = pmov %p8647_p6 }
  0x59   : > { %v4505_v0 = vld [vmem:[#allocation6 + $0x38] sm:$0xff]   ;;  %v4506_v1 = vld [vmem:[#allocation6 + $0x30] sm:$0xff]   ;;  %v4507_v2 = vld [vmem:[#allocation6 + $0x28] sm:$0xff]   ;;  %v4721_v27 = vmov 0.0   ;;  %v8540_v41 = vlaneseq  ;;  %s4431_s18 = smul.u32 384, %s4878_s5  ;;  %p9297_p11 = scmp.ne.s32.totalorder %s8643_s10, 0 }
  0x5a   : > { %4695 = vsyncadd (%p8648_p8), [#allocation7], 4294965184  ;;  %4268 = vmatprep.subr.bf16.mxu0 %v4505_v0  ;;  %v4508_v3 = vld [vmem:[#allocation6 + $0x20] sm:$0xff]   ;;  %v4509_v5 = vld [vmem:[#allocation6 + $0x18] sm:$0xff]   ;;  %1670 = vst [vmem:[#allocation2] sm:$0xff] %v4721_v27  ;;  %s4432_s27 = smul.u32 6144, %s4766_s16 }
  0x5b   : > { %4269 = vmatpush3.bf16.msra.mxu0 %v4505_v0  ;;  %v4513_v4 = vld [vmem:[%s4882_s9] sm:$0xff]   ;;  %v4510_v6 = vld [vmem:[#allocation6 + $0x10] sm:$0xff]   ;;  %v4511_v7 = vld [vmem:[#allocation6 + $0x8] sm:$0xff]   ;;  %1671 = vst [vmem:[#allocation2 + $0x8] sm:$0xff] %v4721_v27  ;;  %v4917_v42 = vshrl.u32 %v8540_v41, 7  ;;  %s8226_s20 = scalar_lea.vmem [#allocation9], %s4431_s18 }
  0x5c   : > { %4270 = vmatprep.subr.bf16.mxu0 %v4506_v1  ;;  %4284 = vmatprep.mubr.bf16.mxu0 %v4513_v4  ;;  %v4512_v8 = vld [vmem:[#allocation6] sm:$0xff]   ;;  %v4514_v9 = vld [vmem:[%s4882_s9 + $0x8] sm:$0xff]   ;;  %v4515_v10 = vld [vmem:[%s4882_s9 + $0x10] sm:$0xff]   ;;  %1672 = vst [vmem:[#allocation2 + $0x10] sm:$0xff] %v4721_v27  ;;  %s3901_s28 = sshll.u32 %s8226_s20, 4  ;;  %s8477_s30 = scalar_lea.hbm %s8527_s3, %s4432_s27  ;;  %s8480_s28 = int_to_ptr.vmem [resolvable:$true] %s3901_s28 }
  0x5d   : > { %v4516_v11 = vld [vmem:[%s4882_s9 + $0x18] sm:$0xff]   ;;  %v4517_v12 = vld [vmem:[%s4882_s9 + $0x20] sm:$0xff]   ;;  %v4518_v13 = vld [vmem:[%s4882_s9 + $0x28] sm:$0xff]   ;;  %1673 = vst [vmem:[#allocation2 + $0x198] sm:$0xff] %v4721_v27  ;;  %v855_v44 = vadd.s32 16, %v4917_v42  ;;  %v856_v45 = vadd.s32 24, %v4917_v42  ;;  %v901_v48 = vcvt.s32.f32 %v4917_v42 }
  0x5e   : > { %v4519_v14 = vld [vmem:[%s4882_s9 + $0x30] sm:$0xff]   ;;  %v4520_v15 = vld [vmem:[%s4882_s9 + $0x38] sm:$0xff]   ;;  %v4521_v16 = vld [vmem:[%s4882_s9 + $0x40] sm:$0xff]   ;;  %1674 = vst [vmem:[#allocation2 + $0x1a0] sm:$0xff] %v4721_v27  ;;  %v854_v46 = vadd.s32 8, %v4917_v42  ;;  %v859_v51 = vadd.s32 48, %v4917_v42 }
  0x5f   : > { %4271 = vmatpush3.bf16.msra.mxu0 %v4506_v1  ;;  %v4522_v17 = vld [vmem:[%s4882_s9 + $0x48] sm:$0xff]   ;;  %v4523_v18 = vld [vmem:[%s4882_s9 + $0x50] sm:$0xff]   ;;  %v4524_v19 = vld [vmem:[%s4882_s9 + $0x58] sm:$0xff]   ;;  %1675 = vst [vmem:[#allocation2 + $0x1a8] sm:$0xff] %v4721_v27  ;;  %v903_v47 = vcvt.s32.f32 %v855_v44  ;;  %v904_v49 = vcvt.s32.f32 %v856_v45  ;;  %v949_v53 = vadd.f32 0.5, %v901_v48  ;;  %v4925_v59 = vadd.s32 32, %v4917_v42 }
  0x60   : > { %4272 = vmatprep.subr.bf16.mxu0 %v4507_v2  ;;  %v4525_v20 = vld [vmem:[%s4882_s9 + $0x60] sm:$0xff]   ;;  %v4526_v21 = vld [vmem:[%s4882_s9 + $0x68] sm:$0xff]   ;;  %v4527_v22 = vld [vmem:[%s4882_s9 + $0x70] sm:$0xff]   ;;  %8649 = vst [vmem:[#allocation13_spill] sm:$0xff] %v4917_v42  ;;  %v902_v50 = vcvt.s32.f32 %v854_v46  ;;  %v907_v56 = vcvt.s32.f32 %v859_v51  ;;  %v4928_v61 = vadd.s32 56, %v4917_v42  ;;  %s3888_s16 = scalar_lea.sflag [#allocation5], %s4878_s5 }
  0x61   : > { %v4528_v23 = vld [vmem:[%s4882_s9 + $0x78] sm:$0xff]   ;;  %v4529_v24 = vld [vmem:[%s4882_s9 + $0x80] sm:$0xff]   ;;  %v4530_v25 = vld [vmem:[%s4882_s9 + $0x88] sm:$0xff]   ;;  %v951_v52 = vadd.f32 0.5, %v903_v47  ;;  %v952_v54 = vadd.f32 0.5, %v904_v49  ;;  %s4646_s4 = scalar_lea.vmem %s8480_s28, 6144 }
  0x62   : > { %v4531_v26 = vld [vmem:[%s4882_s9 + $0x90] sm:$0xff]   ;;  %v4532_v28 = vld [vmem:[%s4882_s9 + $0x98] sm:$0xff]   ;;  %v4533_v29 = vld [vmem:[%s4882_s9 + $0xa0] sm:$0xff]   ;;  %v950_v55 = vadd.f32 0.5, %v902_v50  ;;  %v998_v58 = vmul.f32 0.055555556, %v949_v53  ;;  %p4647_p5 = scmp.ne.s32.totalorder %s8480_s28, %s4646_s4 }
  0x63   : > { %4273 = vmatpush3.bf16.msra.mxu0 %v4507_v2  ;;  %v4537_v30 = vld [vmem:[#allocation6 + $0x78] sm:$0xff]   ;;  %v4538_v31 = vld [vmem:[#allocation6 + $0x70] sm:$0xff]   ;;  %v4534_v32 = vld [vmem:[%s4882_s9 + $0xa8] sm:$0xff]   ;;  %v1000_v57 = vmul.f32 0.055555556, %v951_v52  ;;  %v955_v63 = vadd.f32 0.5, %v907_v56  ;;  %v905_v2 = vcvt.s32.f32 %v4925_v59 }
  0x64   : > { %4274 = vmatprep.subr.bf16.mxu0 %v4508_v3  ;;  %4332 = vmatprep.subr.bf16.mxu1 %v4537_v30  ;;  %v4535_v33 = vld [vmem:[%s4882_s9 + $0xb0] sm:$0xff]   ;;  %v4539_v34 = vld [vmem:[#allocation6 + $0x68] sm:$0xff]   ;;  %v4540_v35 = vld [vmem:[#allocation6 + $0x60] sm:$0xff]   ;;  %v1001_v60 = vmul.f32 0.055555556, %v952_v54  ;;  %v4932_v1 = vfloor.f32 %v998_v58  ;;  %p4648_p7 = pnand %p4647_p5, %p9297_p11  ;;  %s4722_s22 = smov [#allocation9]  }
  0x65   : > { %4333 = vmatpush3.bf16.msra.mxu1 %v4537_v30  ;;  %v4536_v36 = vld [vmem:[%s4882_s9 + $0xb8] sm:$0xff]   ;;  %v4542_v38 = vld [vmem:[#allocation6 + $0x50] sm:$0xff]   ;;  %v4543_v39 = vld [vmem:[#allocation6 + $0x48] sm:$0xff]   ;;  %v999_v62 = vmul.f32 0.055555556, %v950_v55  ;;  %v4930_v0 = vfloor.f32 %v1000_v57  ;;  %s4650_s24 = sshll.u32 %s4722_s22, 4  ;;  %s4651_s24 = int_to_ptr.vmem [resolvable:$false] %s4650_s24 }
  0x66   : > { %4334 = vmatprep.subr.bf16.mxu1 %v4538_v31  ;;  %v4541_v37 = vld [vmem:[#allocation6 + $0x58] sm:$0xff]   ;;  %v4544_v40 = vld [vmem:[#allocation6 + $0x40] sm:$0xff]   ;;  %v4938_v4 = vfloor.f32 %v1001_v60  ;;  %vm1190_vm2 = vcmp.ge.f32.partialorder %v4932_v1, 1.0  ;;  %vm1238_vm3 = vcmp.le.f32.partialorder %v4932_v1, 16.0  ;;  %p4649_p12 = pneg %p4648_p7  ;;  %s4652_s17 = scalar_lea.vmem %s4651_s24, 12288 }
  0x67   : > { %4275 = vmatpush3.bf16.msra.mxu0 %v4508_v3  ;;  %v4545_v43 = vld [vmem:[#allocation6 + $0x78] sm:$0xff]   ;;  %v4936_v3 = vadd.s32 40, %v4917_v42  ;;  %vm1192_vm0 = vcmp.ge.f32.partialorder %v4930_v0, 1.0  ;;  %vm1240_vm1 = vcmp.le.f32.partialorder %v4930_v0, 16.0  ;;  %p4653_p13 = scmp.lt.s32.totalorder %s8480_s28, %s4651_s24  ;;  %p4654_p0 = scmp.lt.s32.totalorder %s4652_s17, %s4646_s4 }
  0x68   : > { %4276 = vmatprep.subr.bf16.mxu0 %v4509_v5  ;;  %vm1193_vm4 = vcmp.ge.f32.partialorder %v4938_v4, 1.0  ;;  %vm1241_vm5 = vcmp.le.f32.partialorder %v4938_v4, 16.0  ;;  %vm5223_vm12 = vmand %vm1192_vm0, %vm1240_vm1 }
  0x69   : > { %4335 = vmatpush3.bf16.msra.mxu1 %v4538_v31  ;;  %v4983_v31 = vadd.s32 96, %v4917_v42  ;;  %vm5281_vm0 = vmand %vm1190_vm2, %vm1238_vm3  ;;  %p4655_p10 = por %p4654_p0, %p4653_p13 }
  0x6a   : > { %4336 = vmatprep.subr.bf16.mxu1 %v4539_v34  ;;  %vm5298_vm2 = vmand %vm1193_vm4, %vm1241_vm5 }
  0x6b   : > { %4277 = vmatpush3.bf16.msra.mxu0 %v4509_v5  ;;  %v908_v5 = vcvt.s32.f32 %v4928_v61  ;;  %p4656_p3 = pnand %p4655_p10, %p4649_p12 }
  0x6c   : > { %4278 = vmatprep.subr.bf16.mxu0 %v4510_v6 }
  0x6d   : > { %4337 = vmatpush3.bf16.msra.mxu1 %v4539_v34 }
  0x6e   : > { %4338 = vmatprep.subr.bf16.mxu1 %v4540_v35 }
  0x6f   : > { %4279 = vmatpush3.bf16.msra.mxu0 %v4510_v6  ;;  %v4941_v6 = vfloor.f32 %v999_v62 }
  0x70   : > { %4280 = vmatprep.subr.bf16.mxu0 %v4511_v7 }
  0x71   : > { %4339 = vmatpush3.bf16.msra.mxu1 %v4540_v35 }
  0x72   : > { %4340 = vmatprep.subr.bf16.mxu1 %v4541_v37 }
  0x73   : > { %4281 = vmatpush3.bf16.msra.mxu0 %v4511_v7  ;;  %v1004_v7 = vmul.f32 0.055555556, %v955_v63 }
  0x74   : > { %4282 = vmatprep.subr.bf16.mxu0 %v4512_v8 }
  0x75   : > { %4341 = vmatpush3.bf16.msra.mxu1 %v4541_v37  ;;  %v4997_v37 = vadd.s32 128, %v4917_v42 }
  0x76   : > { %4342 = vmatprep.subr.bf16.mxu1 %v4542_v38 }
  0x77   : > { %4283 = vmatpush3.bf16.msra.mxu0 %v4512_v8  ;;  %v1096_v8 = vmul.f32 18.0, %v4930_v0  ;;  %v8535_v55 = vcvt.s32.f32 %v4997_v37 }
  0x79   : > { %4343 = vmatpush3.bf16.msra.mxu1 %v4542_v38 }
  0x7a   : > { %4285 = vmatmul.mubr.bf16.vlgmr.msra.gmra.mxu0 %v4514_v9  ;;  %4344 = vmatprep.subr.bf16.mxu1 %v4543_v39  ;;  %v1094_v9 = vmul.f32 18.0, %v4932_v1 }
  0x7b   : > { %4288 = vmatprep.mubr.bf16.mxu0 %v4515_v10  ;;  %v953_v10 = vadd.f32 0.5, %v905_v2 }
  0x7d   : > { %4345 = vmatpush3.bf16.msra.mxu1 %v4543_v39 }
  0x7e   : > { %4346 = vmatprep.subr.bf16.mxu1 %v4544_v40 }
  0x81   : > { %4347 = vmatpush3.bf16.msra.mxu1 %v4544_v40 }
  0x82   : > { %4289 = vmatmul.mubr.bf16.gmra.mxu0 %v4516_v11  ;;  %4364 = vmatprep.subr.bf16.mxu1 %v4545_v43  ;;  %v906_v11 = vcvt.s32.f32 %v4936_v3  ;;  %v5004_v43 = vadd.s32 152, %v4917_v42 }
  0x83   : > { %4292 = vmatprep.mubr.bf16.mxu0 %v4517_v12  ;;  %v1097_v12 = vmul.f32 18.0, %v4938_v4 }
  0x84   : > { %v8537_v60 = vcvt.s32.f32 %v5004_v43 }
  0x8a   : > { %4293 = vmatmul.mubr.bf16.gmra.mxu0 %v4518_v13  ;;  %v956_v13 = vadd.f32 0.5, %v908_v5 }
  0x8b   : > { %4296 = vmatprep.mubr.bf16.mxu0 %v4519_v14  ;;  %v1095_v14 = vmul.f32 18.0, %v4941_v6 }
  0x92   : > { %4297 = vmatmul.mubr.bf16.gmra.mxu0 %v4520_v15  ;;  %v4953_v15 = vadd.s32 80, %v4917_v42 }
  0x93   : > { %4300 = vmatprep.mubr.bf16.mxu0 %v4521_v16  ;;  %v4956_v16 = vadd.s32 64, %v4917_v42 }
  0x94   : > { %v911_v27 = vcvt.s32.f32 %v4953_v15 }
  0x96   : > { %v959_v44 = vadd.f32 0.5, %v911_v27 }
  0x98   : > { %v1008_v62 = vmul.f32 0.055555556, %v959_v44 }
  0x9a   : > { %4301 = vmatmul.mubr.bf16.gmra.mxu0 %v4522_v17  ;;  %v4958_v17 = vfloor.f32 %v1004_v7  ;;  %v5057_v59 = vfloor.f32 %v1008_v62 }
  0x9b   : > { %4304 = vmatprep.mubr.bf16.mxu0 %v4523_v18  ;;  %v4960_v18 = vsub.f32 %v903_v47, %v1096_v8  ;;  %v5012_v47 = vadd.s32 136, %v4917_v42 }
  0x9c   : > { %v1100_v30 = vmul.f32 18.0, %v4958_v17 }
  0x9d   : > { %v8536_v8 = vcvt.s32.f32 %v5012_v47  ;;  %vm1336_vm6 = vcmp.ge.f32.partialorder %v4960_v18, 1.0 }
  0x9e   : > { %vm5336_vm4 = vmand %vm5223_vm12, %vm1336_vm6 }
  0xa2   : > { %4305 = vmatmul.mubr.bf16.gmra.mxu0 %v4524_v19  ;;  %v4962_v19 = vsub.f32 %v901_v48, %v1094_v9  ;;  %v5014_v48 = vsub.f32 %v907_v56, %v1100_v30 }
  0xa3   : > { %4308 = vmatprep.mubr.bf16.mxu0 %v4525_v20  ;;  %v1002_v20 = vmul.f32 0.055555556, %v953_v10 }
  0xa4   : > { %vm1334_vm7 = vcmp.ge.f32.partialorder %v4962_v19, 1.0 }
  0xa5   : > { %v4991_v34 = vfloor.f32 %v1002_v20  ;;  %vm5356_vm6 = vmand %vm5281_vm0, %vm1334_vm7 }
  0xa7   : > { %v1098_v52 = vmul.f32 18.0, %v4991_v34  ;;  %vm1242_vm10 = vcmp.le.f32.partialorder %v4991_v34, 16.0 }
  0xaa   : > { %4309 = vmatmul.mubr.bf16.gmra.mxu0 %v4526_v21  ;;  %v954_v21 = vadd.f32 0.5, %v906_v11 }
  0xab   : > { %4312 = vmatprep.mubr.bf16.mxu0 %v4527_v22  ;;  %v4966_v22 = vsub.f32 %v904_v49, %v1097_v12  ;;  %v8539_v49 = vcvt.s32.f32 %v4983_v31 }
  0xac   : > { %v1003_v35 = vmul.f32 0.055555556, %v954_v21 }
  0xad   : > { %v961_v9 = vadd.f32 0.5, %v8539_v49  ;;  %vm8712_vm5 = vcmp.ge.f32.partialorder %v4966_v22, 1.0 }
  0xae   : > { %v5020_v53 = vfloor.f32 %v1003_v35  ;;  %vm5372_vm7 = vmand %vm5298_vm2, %vm8712_vm5  ;;  %vm8717_vm2 = vcmp.le.f32.partialorder %v4941_v6, 16.0  ;;  %vm8718_vm5 = vcmp.ge.f32.partialorder %v4941_v6, 1.0 }
  0xb0   : > { %v1099_v20 = vmul.f32 18.0, %v5020_v53 }
  0xb2   : > { %4313 = vmatmul.mubr.bf16.gmra.mxu0 %v4528_v23  ;;  %v1005_v23 = vmul.f32 0.055555556, %v956_v13  ;;  %v5040_v13 = vadd.s32 176, %v4917_v42 }
  0xb3   : > { %4316 = vmatprep.mubr.bf16.mxu0 %v4529_v24  ;;  %v4969_v24 = vadd.s32 88, %v4917_v42 }
  0xb4   : > { %v4999_v38 = vfloor.f32 %v1005_v23  ;;  %v965_v23 = vadd.f32 0.5, %v8535_v55  ;;  %v8538_v61 = vcvt.s32.f32 %v5040_v13  ;;  %v8677_v0 = vcvt.s32.f32 %v5040_v13  ;;  %v5257_v13 = vld [vmem:[#allocation2 + $0xd] sm:$0xff] }
  0xb5   : > { %v912_v39 = vcvt.s32.f32 %v4969_v24  ;;  %8683 = vst [vmem:[#allocation32_spill] sm:$0xff] %v5257_v13 }
  0xb6   : > { %v1101_v57 = vmul.f32 18.0, %v4999_v38 }
  0xb7   : > { %v960_v56 = vadd.f32 0.5, %v912_v39 }
  0xb8   : > { %v5053_v30 = vsub.f32 %v908_v5, %v1101_v57  ;;  %v5066_v5 = vsub.f32 %v906_v11, %v1099_v20 }
  0xb9   : > { %v1009_v35 = vmul.f32 0.055555556, %v960_v56  ;;  %v1014_v56 = vmul.f32 0.055555556, %v965_v23 }
  0xba   : > { %4317 = vmatmul.mubr.bf16.gmra.mxu0 %v4530_v25  ;;  %v4972_v25 = vadd.s32 72, %v4917_v42 }
  0xbb   : > { %4320 = vmatprep.mubr.bf16.mxu0 %v4531_v26  ;;  %v4974_v26 = vsub.f32 %v902_v50, %v1095_v14  ;;  %v5044_v14 = vsub.f32 %v905_v2, %v1098_v52  ;;  %v5071_v62 = vfloor.f32 %v1009_v35  ;;  %v971_v35 = vadd.f32 0.5, %v8538_v61 }
  0xbc   : > { %v910_v40 = vcvt.s32.f32 %v4972_v25  ;;  %v5146_v25 = vadd.s32 208, %v4917_v42 }
  0xbd   : > { %vm8734_vm0 = vcmp.ge.f32.partialorder %v4974_v26, 1.0 }
  0xbe   : > { %v958_v58 = vadd.f32 0.5, %v910_v40 }
  0xc0   : > { %v1007_v44 = vmul.f32 0.055555556, %v958_v58  ;;  %v5069_v58 = vadd.s32 160, %v4917_v42 }
  0xc2   : > { %4321 = vmatmul.mubr.bf16.gmra.mxu0 %v4532_v28  ;;  %v909_v28 = vcvt.s32.f32 %v4956_v16 }
  0xc3   : > { %4324 = vmatprep.mubr.bf16.mxu0 %v4533_v29  ;;  %v4979_v29 = vadd.s32 112, %v4917_v42 }
  0xc4   : > { %v957_v45 = vadd.f32 0.5, %v909_v28 }
  0xc5   : > { %v8541_v46 = vcvt.s32.f32 %v4979_v29 }
  0xc6   : > { %v1006_v63 = vmul.f32 0.055555556, %v957_v45  ;;  %v968_v45 = vadd.f32 0.5, %v8537_v60  ;;  %v5096_v60 = vadd.s32 168, %v4917_v42 }
  0xc7   : > { %v963_v7 = vadd.f32 0.5, %v8541_v46 }
  0xc8   : > { %v5059_v2 = vfloor.f32 %v1006_v63  ;;  %v5073_v63 = vfloor.f32 %v1007_v44 }
  0xc9   : > { %v1012_v52 = vmul.f32 0.055555556, %v963_v7  ;;  %v1017_v7 = vmul.f32 0.055555556, %v968_v45  ;;  %v5092_v45 = vfloor.f32 %v1014_v56 }
  0xca   : > { %4325 = vmatmul.mubr.bf16.gmra.mxu0 %v4534_v32  ;;  %v4986_v32 = vadd.s32 120, %v4917_v42 }
  0xcb   : > { %4328 = vmatprep.mubr.bf16.mxu0 %v4535_v33  ;;  %v4989_v33 = vadd.s32 104, %v4917_v42  ;;  %v5080_v3 = vfloor.f32 %v1012_v52  ;;  %8654 = vst [vmem:[#allocation18_spill] sm:$0xff] %v5092_v45  ;;  %v1110_v16 = vmul.f32 18.0, %v5092_v45  ;;  %v8666_v45 = vcvt.s32.f32 %v4997_v37 }
  0xcc   : > { %v8534_v50 = vcvt.s32.f32 %v4986_v32  ;;  %v8671_v37 = vcvt.s32.f32 %v5012_v47 }
  0xcd   : > { %v8533_v51 = vcvt.s32.f32 %v4989_v33  ;;  %8650 = vst [vmem:[#allocation14_spill] sm:$0xff] %v5080_v3  ;;  %v1108_v56 = vmul.f32 18.0, %v5080_v3  ;;  %v5546_v3 = vld [vmem:[#allocation8 + $0x1] ss:$0 sm:$0xff] }
  0xce   : > { %v964_v10 = vadd.f32 0.5, %v8534_v50 }
  0xcf   : > { %v962_v12 = vadd.f32 0.5, %v8533_v51  ;;  %v1010_v51 = vmul.f32 0.055555556, %v961_v9  ;;  %v5076_v9 = vadd.s32 184, %v4917_v42 }
  0xd0   : > { %v1013_v50 = vmul.f32 0.055555556, %v964_v10  ;;  %v1104_v10 = vmul.f32 18.0, %v5057_v59 }
  0xd1   : > { %v1011_v55 = vmul.f32 0.055555556, %v962_v12  ;;  %v1102_v12 = vmul.f32 18.0, %v5059_v2  ;;  %v5082_v20 = vfloor.f32 %v1010_v51  ;;  %v1103_v51 = vmul.f32 18.0, %v5073_v63 }
  0xd2   : > { %4329 = vmatmul.mubr.bf16.gmra.mxu0 %v4536_v36  ;;  %v4994_v36 = vadd.s32 144, %v4917_v42  ;;  %v5105_v52 = vsub.f32 %v911_v27, %v1104_v10  ;;  %v1020_v27 = vmul.f32 0.055555556, %v971_v35 }
  0xd3   : > { %8651 = vst [vmem:[#allocation15_spill] sm:$0xff] %v5082_v20  ;;  %v5086_v23 = vfloor.f32 %v1011_v55  ;;  %v8543_v55 = vcvt.s32.f32 %v5076_v9  ;;  %v5130_v41 = vsub.f32 %v910_v40, %v1103_v51  ;;  %v8659_v40 = vcvt.s32.f32 %v4983_v31 }
  0xd4   : > { %v8532_v54 = vcvt.s32.f32 %v4994_v36 }
  0xd5   : > { %8652 = vst [vmem:[#allocation16_spill] sm:$0xff] %v5086_v23  ;;  %v1107_v15 = vmul.f32 18.0, %v5086_v23  ;;  %v972_v35 = vadd.f32 0.5, %v8543_v55 }
  0xd6   : > { %v967_v21 = vadd.f32 0.5, %v8532_v54  ;;  %v966_v54 = vadd.f32 0.5, %v8536_v8  ;;  %v8542_v8 = vcvt.s32.f32 %v5069_v58 }
  0xd8   : > { %v1016_v57 = vmul.f32 0.055555556, %v967_v21  ;;  %v1015_v11 = vmul.f32 0.055555556, %v966_v54  ;;  %v5084_v21 = vfloor.f32 %v1013_v50  ;;  %v1105_v54 = vmul.f32 18.0, %v5071_v62 }
  0xd9   : > { %v5100_v50 = vfloor.f32 %v1017_v7  ;;  %v1106_v7 = vmul.f32 18.0, %v5082_v20 }
  0xda   : > { %v5090_v44 = vfloor.f32 %v1016_v57  ;;  %v5109_v57 = vsub.f32 %v909_v28, %v1102_v12  ;;  %v5112_v61 = vfloor.f32 %v1015_v11  ;;  %v1109_v49 = vmul.f32 18.0, %v5084_v21 }
  0xdb   : > { %8655 = vst [vmem:[#allocation19_spill] sm:$0xff] %v5100_v50  ;;  %v969_v28 = vadd.f32 0.5, %v8542_v8  ;;  %v5126_v11 = vsub.f32 %v912_v39, %v1105_v54  ;;  %v1113_v46 = vmul.f32 18.0, %v5100_v50  ;;  %v8657_v8 = vcvt.s32.f32 %v4979_v29 }
  0xdc   : > { %8653 = vst [vmem:[#allocation17_spill] sm:$0xff] %v5090_v44  ;;  %8656 = vst [vmem:[#allocation20_spill] sm:$0xff] %v5112_v61  ;;  %v1112_v10 = vmul.f32 18.0, %v5090_v44  ;;  %v1111_v24 = vmul.f32 18.0, %v5112_v61  ;;  %v8658_v39 = vlaneseq  ;;  %v5152_v51 = vsub.f32 %v8659_v40, %v1106_v7 }
  0xdd   : > { %v5139_v12 = vsub.f32 %v8657_v8, %v1108_v56  ;;  %v8660_v29 = vcvt.s32.f32 %v4986_v32  ;;  %v8661_v56 = vcvt.s32.f32 %v4989_v33  ;;  %v8664_v61 = vcvt.s32.f32 %v4994_v36 }
  0xde   : > { %v5143_v54 = vand.u32 127, %v8658_v39  ;;  %v5162_v39 = vfloor.f32 %v1020_v27  ;;  %v5170_v44 = vsub.f32 %v8666_v45, %v1110_v16  ;;  %v1018_v31 = vmul.f32 0.055555556, %v969_v28 }
  0xdf   : > { %v5156_v8 = vsub.f32 %v8660_v29, %v1109_v49  ;;  %v5160_v55 = vsub.f32 %v8661_v56, %v1107_v15  ;;  %v5166_v50 = vsub.f32 %v8664_v61, %v1112_v10  ;;  %v8668_v7 = vcvt.s32.f32 %v5096_v60 }
  0xe0   : > { %8663 = vst [vmem:[#allocation22_spill] sm:$0xff] %v5162_v39  ;;  %8667 = vst [vmem:[#allocation24_spill] sm:$0xff] %v5170_v44  ;;  %v8669_v33 = vcvt.s32.f32 %v5004_v43  ;;  %v1021_v15 = vmul.f32 0.055555556, %v972_v35  ;;  %v5180_v27 = vadd.s32 192, %v4917_v42  ;;  %v5183_v36 = vadd.s32 216, %v4917_v42 }
  0xe1   : > { %8662 = vst [vmem:[#allocation21_spill] sm:$0xff] %v5160_v55  ;;  %8665 = vst [vmem:[#allocation23_spill] sm:$0xff] %v5166_v50  ;;  %v970_v32 = vadd.f32 0.5, %v8668_v7  ;;  %v5188_v61 = vsub.f32 %v8671_v37, %v1111_v24  ;;  %vm1793_vm8 = vcmp.ge.s32.totalorder %v5143_v54, 4  ;;  %vm1794_vm9 = vcmp.lt.s32.totalorder %v5143_v54, 8 }
  0xe2   : > { %v5177_v49 = vsub.f32 %v8669_v33, %v1113_v46  ;;  %v8552_v43 = vcvt.s32.f32 %v5146_v25  ;;  %v1116_v46 = vmul.f32 18.0, %v5162_v39  ;;  %vm1844_vm11 = vcmp.ge.s32.totalorder %v5143_v54, 8  ;;  %vm5249_vm1 = vmand %vm1793_vm8, %vm1794_vm9 }
  0xe3   : > { %8672 = vst [vmem:[#allocation26_spill] sm:$0xff] %v5188_v61  ;;  %v5197_v45 = vadd.s32 200, %v4917_v42  ;;  %v5200_v10 = vadd.s32 240, %v4917_v42  ;;  %vm1845_vm14 = vcmp.lt.s32.totalorder %v5143_v54, 12  ;;  %v5205_v47 = vfloor.f32 %v1018_v31 }
  0xe4   : > { %8670 = vst [vmem:[#allocation25_spill] sm:$0xff] %v5177_v49  ;;  %v1019_v16 = vmul.f32 0.055555556, %v970_v32  ;;  %v5208_v28 = vadd.s32 224, %v4917_v42  ;;  %v5212_v35 = vfloor.f32 %v1021_v15  ;;  %v5217_v29 = vadd.s32 248, %v4917_v42  ;;  %v5243_v15 = vld [vmem:[#allocation2 + $0x5] sm:$0xff]  ;;  %vm5265_vm8 = vmand %vm1844_vm11, %vm1845_vm14 }
  0xe5   : > { %8673 = vst [vmem:[#allocation27_spill] sm:$0xff] %v5205_v47  ;;  %vm1895_vm13 = vcmp.ge.s32.totalorder %v5143_v54, 12  ;;  %v975_v31 = vadd.f32 0.5, %v8552_v43  ;;  %v5233_v7 = vadd.s32 232, %v4917_v42  ;;  %v5236_v32 = vadd.s32 272, %v4917_v42  ;;  %8679 = vst [vmem:[#allocation30_spill] sm:$0xff] %v5243_v15 }
  0xe6   : > { %8674 = vst [vmem:[#allocation28_spill] sm:$0xff] %v5212_v35  ;;  %v5241_v33 = vsub.f32 %v8677_v0, %v1116_v46  ;;  %v8680_v37 = vmov 0  ;;  %vm1896_vm15 = vcmp.lt.s32.totalorder %v5143_v54, 16  ;;  %v5259_v46 = vld [vmem:[#allocation2 + $0x6] sm:$0xff]  ;;  %v8685_v0 = vmov 0 }
  0xe7   : > { %v8681_v37 = vsel %vm5249_vm1, 4294967295, %v8680_v37  ;;  %8684 = vst [vmem:[#allocation33_spill] sm:$0xff] %v5259_v46  ;;  %v8686_v0 = vsel %vm5265_vm8, 4294967295, %v8685_v0  ;;  %v1114_v24 = vmul.f32 18.0, %v5205_v47  ;;  %v5274_v43 = vadd.s32 256, %v4917_v42  ;;  %v5286_v47 = vld [vmem:[#allocation2 + $0xe] sm:$0xff]  ;;  %vm5324_vm3 = vmand %vm1895_vm13, %vm1896_vm15 }
  0xe8   : > { %8678 = vst [vmem:[#allocation29_spill] sm:$0xff] %v5241_v33  ;;  %8682 = vst [vmem:[#allocation31_spill] sm:$0xff] %v8681_v37  ;;  %v5270_v33 = vfloor.f32 %v1019_v16  ;;  %vm1432_vm9 = vcmp.le.f32.partialorder %v4960_v18, 16.0  ;;  %v1117_v16 = vmul.f32 18.0, %v5212_v35  ;;  %v8693_v40 = vcvt.s32.f32 %v5180_v27 }
  0xe9   : > { %8687 = vst [vmem:[#allocation34_spill] sm:$0xff] %v8686_v0  ;;  %8689 = vst [vmem:[#allocation36_spill] sm:$0xff] %v5274_v43  ;;  %v8694_v49 = vcvt.s32.f32 %v5183_v36  ;;  %v1024_v35 = vmul.f32 0.055555556, %v975_v31  ;;  %v8698_v31 = vmov 0  ;;  %v8700_v50 = vcvt.s32.f32 %v5197_v45 }
  0xea   : > { %8688 = vst [vmem:[#allocation35_spill] sm:$0xff] %v5270_v33  ;;  %8692 = vst [vmem:[#allocation37_spill] sm:$0xff] %v5286_v47  ;;  %v973_v61 = vadd.f32 0.5, %v8693_v40  ;;  %v5318_v40 = vld [vmem:[#allocation2 + $0x7] sm:$0xff]  ;;  %v8699_v31 = vsel %vm5324_vm3, 4294967295, %v8698_v31  ;;  %v8701_v15 = vcvt.s32.f32 %v5200_v10  ;;  %v8711_v13 = vcvt.s32.f32 %v5217_v29 }
  0xeb   : > { %v976_v44 = vadd.f32 0.5, %v8694_v49  ;;  %8697 = vst [vmem:[#allocation38_spill] sm:$0xff] %v5318_v40  ;;  %v974_v49 = vadd.f32 0.5, %v8700_v50  ;;  %v8704_v50 = vcvt.s32.f32 %v5069_v58  ;;  %v8709_v58 = vcvt.s32.f32 %v5076_v9  ;;  %vm5391_vm15 = vmand %vm8718_vm5, %vm8717_vm2 }
  0xec   : > { %v979_v4 = vadd.f32 0.5, %v8701_v15  ;;  %v8706_v15 = vcvt.s32.f32 %v5208_v28  ;;  %v980_v56 = vadd.f32 0.5, %v8711_v13  ;;  %vm8723_vm13 = vcmp.le.f32.partialorder %v4958_v17, 16.0  ;;  %vm5438_vm14 = vmand %vm5391_vm15, %vm8734_vm0 }
  0xed   : > { %v5347_v46 = vsub.f32 %v8704_v50, %v1114_v24  ;;  %v5364_v24 = vsub.f32 %v8709_v58, %v1117_v16  ;;  %v1022_v50 = vmul.f32 0.055555556, %v973_v61  ;;  %v8715_v61 = vcvt.s32.f32 %v5233_v7 }
  0xee   : > { %v977_v37 = vadd.f32 0.5, %v8706_v15  ;;  %v1025_v15 = vmul.f32 0.055555556, %v976_v44  ;;  %v8716_v16 = vcvt.s32.f32 %v5236_v32  ;;  %v5385_v58 = vadd.s32 280, %v4917_v42 }
  0xef   : > { %8705 = vst [vmem:[#allocation39_spill] sm:$0xff] %v5347_v46  ;;  %8710 = vst [vmem:[#allocation40_spill] sm:$0xff] %v5364_v24  ;;  %v978_v44 = vadd.f32 0.5, %v8715_v61  ;;  %v1023_v9 = vmul.f32 0.055555556, %v974_v49  ;;  %v5398_v24 = vadd.s32 264, %v4917_v42  ;;  %v5413_v49 = vfloor.f32 %v1024_v35 }
  0xf0   : > { %v983_v13 = vadd.f32 0.5, %v8716_v16  ;;  %v1028_v61 = vmul.f32 0.055555556, %v979_v4  ;;  %v5401_v16 = vadd.s32 304, %v4917_v42  ;;  %vm8724_vm11 = vcmp.ge.f32.partialorder %v4958_v17, 1.0 }
  0xf1   : > { %8721 = vst [vmem:[#allocation41_spill] sm:$0xff] %v5398_v24  ;;  %vm5407_vm2 = vmand %vm8724_vm11, %vm8723_vm13  ;;  %v1026_v4 = vmul.f32 0.055555556, %v977_v37  ;;  %v8728_v46 = vcvt.s32.f32 %v5274_v43  ;;  %vm8729_vm11 = vcmp.ge.f32.partialorder %v4991_v34, 1.0  ;;  %v5429_v35 = vfloor.f32 %v1022_v50 }
  0xf2   : > { %8722 = vst [vmem:[#allocation42_spill] sm:$0xff] %v5401_v16  ;;  %8727 = vst [vmem:[#allocation43_spill] sm:$0xff] %v5413_v49  ;;  %v5431_v37 = vfloor.f32 %v1025_v15  ;;  %v1027_v0 = vmul.f32 0.055555556, %v978_v44  ;;  %v1032_v50 = vmul.f32 0.055555556, %v983_v13  ;;  %v8737_v15 = vcvt.s32.f32 %v5385_v58 }
  0xf3   : > { %v981_v47 = vadd.f32 0.5, %v8728_v46  ;;  %vm5423_vm13 = vmand %vm8729_vm11, %vm1242_vm10  ;;  %8732 = vst [vmem:[#allocation44_spill] sm:$0xff] %v5429_v35  ;;  %v1029_v46 = vmul.f32 0.055555556, %v980_v56  ;;  %vm8738_vm5 = vcmp.ge.f32.partialorder %v5014_v48, 1.0  ;;  %v1115_v44 = vmul.f32 18.0, %v5270_v33 }
  0xf4   : > { %8733 = vst [vmem:[#allocation45_spill] sm:$0xff] %v5431_v37  ;;  %v984_v43 = vadd.f32 0.5, %v8737_v15  ;;  %vm5451_vm12 = vmand %vm5407_vm2, %vm8738_vm5  ;;  %v5458_v13 = vfloor.f32 %v1023_v9  ;;  %v5460_v40 = vfloor.f32 %v1028_v61  ;;  %v8742_v15 = vcvt.s32.f32 %v5398_v24  ;;  %v5481_v61 = vld [vmem:[#allocation2 + $0xf] sm:$0xff] }
  0xf5   : > { %vm5468_vm2 = vmand %vm5336_vm4, %vm1432_vm9  ;;  %vm8745_vm5 = vcmp.ge.f32.partialorder %v5044_v14, 1.0  ;;  %v1030_v18 = vmul.f32 0.055555556, %v981_v47  ;;  %v8749_v33 = vcvt.s32.f32 %v5401_v16  ;;  %vm8750_vm9 = vcmp.le.f32.partialorder %v4999_v38, 16.0 }
  0xf6   : > { %8741 = vst [vmem:[#allocation46_spill] sm:$0xff] %v5460_v40  ;;  %v982_v56 = vadd.f32 0.5, %v8742_v15  ;;  %vm5476_vm0 = vmand %vm5423_vm13, %vm8745_vm5  ;;  %v5483_v15 = vfloor.f32 %v1026_v4  ;;  %v1033_v55 = vmul.f32 0.055555556, %v984_v43  ;;  %vm8751_vm4 = vcmp.ge.f32.partialorder %v4999_v38, 1.0 }
  0xf7   : > { %v987_v24 = vadd.f32 0.5, %v8749_v33  ;;  %vm5491_vm10 = vmand %vm8751_vm4, %vm8750_vm9  ;;  %v1120_v4 = vmul.f32 18.0, %v5413_v49  ;;  %v1118_v47 = vmul.f32 18.0, %v5429_v35  ;;  %v5499_v43 = vfloor.f32 %v1029_v46  ;;  %v5501_v33 = vld [vmem:[#allocation8] ss:$0 sm:$0xff] }
  0xf8   : > { %8748 = vst [vmem:[#allocation47_spill] sm:$0xff] %v5483_v15  ;;  %v1031_v16 = vmul.f32 0.055555556, %v982_v56  ;;  %vm8754_vm15 = vcmp.le.f32.partialorder %v4962_v19, 16.0  ;;  %vm8757_vm4 = vcmp.le.f32.partialorder %v5020_v53, 16.0  ;;  %vm8758_vm5 = vcmp.ge.f32.partialorder %v5020_v53, 1.0 }
  0xf9   : > { %vm5507_vm9 = vmand %vm5356_vm6, %vm8754_vm15  ;;  %v1121_v19 = vmul.f32 18.0, %v5431_v37  ;;  %v5522_v46 = vfloor.f32 %v1027_v0  ;;  %v5524_v23 = vfloor.f32 %v1032_v50  ;;  %v1036_v56 = vmul.f32 0.055555556, %v987_v24 }
  0xfa   : > { %vm5515_vm13 = vmand %vm8758_vm5, %vm8757_vm4  ;;  %vm8761_vm15 = vcmp.le.f32.partialorder %v5057_v59, 16.0  ;;  %vm8762_vm5 = vcmp.ge.f32.partialorder %v5057_v59, 1.0  ;;  %v8765_v24 = vcvt.s32.f32 %v5096_v60  ;;  %v1119_v37 = vmul.f32 18.0, %v5458_v13 }
  0xfb   : > { %vm5531_vm4 = vmand %vm8762_vm5, %vm8761_vm15  ;;  %v1124_v59 = vmul.f32 18.0, %v5460_v40  ;;  %vm8766_vm15 = vcmp.le.f32.partialorder %v4966_v22, 16.0  ;;  %vm8769_vm11 = vcmp.ge.f32.partialorder %v5053_v30, 1.0  ;;  %v1122_v22 = vmul.f32 18.0, %v5483_v15 }
  0xfc   : > { %v5542_v50 = vsub.f32 %v8765_v24, %v1115_v44  ;;  %vm5552_vm5 = vmand %vm5372_vm7, %vm8766_vm15  ;;  %v5567_v44 = vfloor.f32 %v1030_v18  ;;  %v5569_v39 = vfloor.f32 %v1033_v55  ;;  %v5571_v24 = vfloor.f32 %v1031_v16 }
  0xfd   : > { %vm5560_vm8 = vmand %vm5491_vm10, %vm8769_vm11  ;;  %vm8775_vm7 = vcmp.ge.f32.partialorder %v5066_v5, 1.0  ;;  %v8778_v18 = vcvt.s32.f32 %v5146_v25  ;;  %v1125_v49 = vmul.f32 18.0, %v5499_v43  ;;  %v8781_v40 = vmov 0  ;;  %v8873_v25 = vld [vmem:[#allocation30_spill] sm:$0xff] }
  0xfe   : > { %8772 = vst [vmem:[#allocation48_spill] sm:$0xff] %v5567_v44  ;;  %8773 = vst [vmem:[#allocation49_spill] sm:$0xff] %v5569_v39  ;;  %vm8783_vm15 = vcmp.ge.f32.partialorder %v5105_v52, 1.0  ;;  %v1128_v34 = vmul.f32 18.0, %v5524_v23  ;;  %vm8794_vm6 = vcmp.le.f32.partialorder %v5014_v48, 16.0  ;;  %vm8798_vm3 = vcmp.ge.f32.partialorder %v5071_v62, 1.0 }
  0xff   : > { %8774 = vst [vmem:[#allocation50_spill] sm:$0xff] %v5571_v24  ;;  %vm5578_vm10 = vmand %vm5515_vm13, %vm8775_vm7  ;;  %v5587_v16 = vsub.f32 %v8778_v18, %v1120_v4  ;;  %vm8780_vm13 = vcmp.le.f32.partialorder %v4974_v26, 16.0  ;;  %v1123_v26 = vmul.f32 18.0, %v5522_v46  ;;  %v8802_v48 = vcvt.s32.f32 %v5208_v28 }
 0x100   : > { %vm5598_vm7 = vmand %vm5438_vm14, %vm8780_vm13  ;;  %vm8788_vm14 = vcmp.le.f32.partialorder %v5059_v2, 16.0  ;;  %v1126_v1 = vmul.f32 18.0, %v5567_v44  ;;  %vm8827_vm1 = vcmp.ge.f32.partialorder %v5130_v41, 1.0  ;;  %v8834_v60 = vcvt.s32.f32 %v5385_v58 }
 0x101   : > { %v8782_v40 = vsel %vm5598_vm7, 4294967295, %v8781_v40  ;;  %vm5606_vm11 = vmand %vm5531_vm4, %vm8783_vm15  ;;  %vm8789_vm4 = vcmp.ge.f32.partialorder %v5059_v2, 1.0  ;;  %v8795_v2 = vmov 0 }
 0x102   : > { %vm5625_vm15 = vmand %vm8789_vm4, %vm8788_vm14  ;;  %vm8797_vm4 = vcmp.le.f32.partialorder %v5071_v62, 16.0 }
 0x103   : > { %vm5643_vm14 = vmand %vm5451_vm12, %vm8794_vm6  ;;  %vm8803_vm12 = vcmp.le.f32.partialorder %v5073_v63, 16.0  ;;  %vm8804_vm6 = vcmp.ge.f32.partialorder %v5073_v63, 1.0 }
 0x104   : > { %v8796_v2 = vsel %vm5643_vm14, 4294967295, %v8795_v2  ;;  %vm5651_vm13 = vmand %vm8798_vm3, %vm8797_vm4  ;;  %vm8809_vm14 = vcmp.le.f32.partialorder %v5044_v14, 16.0  ;;  %v8817_v14 = vcvt.s32.f32 %v5236_v32  ;;  %v8823_v32 = vld [vmem:[#allocation21_spill] sm:$0xff] }
 0x105   : > { %vm5671_vm4 = vmand %vm8804_vm6, %vm8803_vm12  ;;  %vm8812_vm12 = vcmp.ge.f32.partialorder %v5109_v57, 1.0 }
 0x106   : > { %vm5685_vm3 = vmand %vm5476_vm0, %vm8809_vm14  ;;  %vm8820_vm0 = vcmp.ge.f32.partialorder %v5126_v11, 1.0 }
 0x107   : > { %vm5693_vm6 = vmand %vm5625_vm15, %vm8812_vm12 }
 0x108   : > { %vm5717_vm15 = vmand %vm5651_vm13, %vm8820_vm0  ;;  %vm8853_vm0 = vcmp.lt.s32.totalorder %v5143_v54, 4 }
 0x109   : > { %vm5735_vm13 = vmand %vm5671_vm4, %vm8827_vm1 }
 0x13a   : > { %v4286_v35 = vpop.f32.mrf.mxu0 }
 0x13b   : > { %v705_v0 = vmul.f32 %v4286_v35, %v5501_v33  ;;  %v8779_v35 = vcvt.s32.f32 %v5180_v27  ;;  %v8786_v27 = vcvt.s32.f32 %v5183_v36  ;;  %v8792_v36 = vcvt.s32.f32 %v5197_v45  ;;  %v8830_v45 = vld [vmem:[#allocation17_spill] sm:$0xff] }
 0x13c   : > { %v507_v15 = vpop.f32.mrf.mxu0 }
 0x13d   : > { %v5591_v55 = vsub.f32 %v8779_v35, %v1118_v47  ;;  %v5613_v4 = vsub.f32 %v8786_v27, %v1121_v19  ;;  %v5617_v47 = vfloor.f32 %v1036_v56  ;;  %v758_v18 = vadd.f32 %v5546_v3, %v705_v0 }
 0x13e   : > { %v703_v53 = vmul.f32 %v5501_v33, %v507_v15  ;;  %v5633_v19 = vsub.f32 %v8792_v36, %v1119_v37  ;;  %v8793_v56 = vcvt.s32.f32 %v5200_v10  ;;  %v4287_v15 = vpop.f32.mrf.mxu0  ;;  %v8801_v10 = vld [vmem:[#allocation16_spill] sm:$0xff]  ;;  %v5659_v37 = vsub.f32 %v8802_v48, %v1122_v22 }
 0x13f   : > { %8787 = vst [vmem:[#allocation51_spill] sm:$0xff] %v5617_v47  ;;  %v1127_v27 = vmul.f32 18.0, %v5571_v24  ;;  %v806_v36 = vmax.f32 %v758_v18, 0.0  ;;  %v8807_v22 = vcvt.s32.f32 %v5217_v29  ;;  %v8815_v29 = vcvt.s32.f32 %v5233_v7 }
 0x140   : > { %v5637_v0 = vsub.f32 %v8793_v56, %v1124_v59  ;;  %v1129_v59 = vmul.f32 18.0, %v5569_v39  ;;  %v756_v62 = vadd.f32 %v5546_v3, %v703_v53  ;;  %v706_v56 = vmul.f32 %v4287_v15, %v5501_v33  ;;  %v510_v53 = vpop.f32.mrf.mxu0 }
 0x141   : > { %v5679_v18 = vsub.f32 %v8807_v22, %v1125_v49  ;;  %v5699_v49 = vsub.f32 %v8815_v29, %v1123_v26  ;;  %v5703_v48 = vsub.f32 %v8817_v14, %v1128_v34  ;;  %v1132_v9 = vmul.f32 18.0, %v5617_v47  ;;  %v8921_v34 = vld [vmem:[#allocation37_spill] sm:$0xff] }
 0x142   : > { %v5707_v22 = vadd.s32 288, %v4917_v42  ;;  %v1624_v35 = vsel %vm5468_vm2, %v806_v36, 0.0  ;;  %v804_v24 = vmax.f32 %v756_v62, 0.0  ;;  %v759_v39 = vadd.f32 %v5546_v3, %v706_v56  ;;  %v4290_v6 = vpop.f32.mrf.mxu0  ;;  %v8831_v36 = vld [vmem:[#allocation36_spill] sm:$0xff] }
 0x143   : > { %8808 = vst [vmem:[#allocation16_spill] sm:$0xff] %v5679_v18  ;;  %8816 = vst [vmem:[#allocation52_spill] sm:$0xff] %v5699_v49  ;;  %v704_v44 = vmul.f32 %v5501_v33, %v510_v53  ;;  %vm8824_vm2 = vcmp.le.f32.partialorder %v5053_v30, 16.0  ;;  %v8825_v26 = vmov 0  ;;  %v8832_v30 = vcvt.s32.f32 %v8831_v36  ;;  %v8836_v53 = vld [vmem:[#allocation41_spill] sm:$0xff] }
 0x144   : > { %8818 = vst [vmem:[#allocation53_spill] sm:$0xff] %v5703_v48  ;;  %8819 = vst [vmem:[#allocation54_spill] sm:$0xff] %v5707_v22  ;;  %v5747_v56 = vsub.f32 %v8834_v60, %v1129_v59  ;;  %v8837_v29 = vcvt.s32.f32 %v8836_v53  ;;  %v8613_v28 = vcvt.s32.f32 %v5707_v22  ;;  %v1622_v47 = vsel %vm5507_vm9, %v804_v24, 0.0  ;;  %v8844_v59 = vld [vmem:[#allocation18_spill] sm:$0xff]  ;;  %v523_v38 = vpop.f32.mrf.mxu0 }
 0x145   : > { %1678 = vst [vmem:[#allocation2 + $0x28] sm:$0xff] %v1624_v35  ;;  %vm5727_vm7 = vmand %vm5560_vm8, %vm8824_vm2  ;;  %v5743_v62 = vsub.f32 %v8832_v30, %v1126_v1  ;;  %v807_v48 = vmax.f32 %v759_v39, 0.0  ;;  %v757_v49 = vadd.f32 %v5546_v3, %v704_v44  ;;  %v709_v36 = vmul.f32 %v4290_v6, %v5501_v33  ;;  %v8839_v1 = vld [vmem:[#allocation14_spill] sm:$0xff]  ;;  %v8848_v39 = vld [vmem:[#allocation15_spill] sm:$0xff] }
 0x146   : > { %v8826_v26 = vsel %vm5727_vm7, 4294967295, %v8825_v26  ;;  %8835 = vst [vmem:[#allocation17_spill] sm:$0xff] %v5747_v56  ;;  %v5751_v14 = vsub.f32 %v8837_v29, %v1127_v27  ;;  %vm8840_vm1 = vcmp.le.f32.partialorder %v8839_v1, 16.0  ;;  %vm8841_vm8 = vcmp.ge.f32.partialorder %v8839_v1, 1.0  ;;  %1676 = vst [vmem:[#allocation2 + $0x18] sm:$0xff] %v1622_v47  ;;  %v8854_v6 = vld [vmem:[#allocation42_spill] sm:$0xff]  ;;  %v4291_v20 = vpop.f32.mrf.mxu0 }
 0x147   : > { %8833 = vst [vmem:[#allocation21_spill] sm:$0xff] %v5743_v62  ;;  %vm5762_vm4 = vmand %vm8841_vm8, %vm8840_vm1  ;;  %vm8845_vm9 = vcmp.le.f32.partialorder %v5066_v5, 16.0  ;;  %vm8849_vm1 = vcmp.le.f32.partialorder %v8848_v39, 16.0  ;;  %vm8850_vm8 = vcmp.ge.f32.partialorder %v8848_v39, 1.0  ;;  %v1745_v27 = vsel %vm8853_vm0, %v1622_v47, 0.0 }
 0x148   : > { %8838 = vst [vmem:[#allocation36_spill] sm:$0xff] %v5751_v14  ;;  %vm5773_vm14 = vmand %vm5578_vm10, %vm8845_vm9  ;;  %v8855_v30 = vcvt.s32.f32 %v8854_v6  ;;  %v985_v17 = vadd.f32 0.5, %v8613_v28  ;;  %v5794_v60 = vadd.s32 312, %v4917_v42  ;;  %v1625_v53 = vsel %vm5552_vm5, %v807_v48, 0.0  ;;  %v8869_v48 = vld [vmem:[#allocation24_spill] sm:$0xff] }
 0x149   : > { %vm5781_vm7 = vmand %vm8850_vm8, %vm8849_vm1  ;;  %v805_v29 = vmax.f32 %v757_v49, 0.0  ;;  %v762_v1 = vadd.f32 %v5546_v3, %v709_v36  ;;  %v707_v39 = vmul.f32 %v5501_v33, %v523_v38  ;;  %vm8858_vm0 = vcmp.le.f32.partialorder %v5084_v21, 16.0  ;;  %1679 = vst [vmem:[#allocation2 + $0x30] sm:$0xff] %v1625_v53 }
 0x14a   : > { %v5789_v5 = vsub.f32 %v8855_v30, %v1132_v9  ;;  %8857 = vst [vmem:[#allocation14_spill] sm:$0xff] %v5794_v60  ;;  %vm8859_vm9 = vcmp.ge.f32.partialorder %v5084_v21, 1.0  ;;  %v8862_v9 = vld [vmem:[#allocation23_spill] sm:$0xff]  ;;  %vm8863_vm5 = vcmp.le.f32.partialorder %v5105_v52, 16.0  ;;  %v8864_v49 = vmov 0 }
 0x14b   : > { %vm5805_vm1 = vmand %vm8859_vm9, %vm8858_vm0  ;;  %vm8866_vm10 = vcmp.ge.f32.partialorder %v5139_v12, 1.0  ;;  %vm8870_vm8 = vcmp.lt.s32.totalorder %v5143_v54, 4  ;;  %v8871_v52 = vld [vmem:[#allocation31_spill] sm:$0xff]  ;;  %v1034_v30 = vmul.f32 0.055555556, %v985_v17  ;;  %v810_v42 = vmax.f32 %v762_v1, 0.0 }
 0x14c   : > { %8856 = vst [vmem:[#allocation41_spill] sm:$0xff] %v5789_v5  ;;  %vm5814_vm12 = vmand %vm5606_vm11, %vm8863_vm5  ;;  %v5829_v36 = vsel %vm8870_vm8, %v1624_v35, 0.0  ;;  %vm8872_vm2 = vnez %v8871_v52  ;;  %vm8875_vm11 = vnez %v8782_v40  ;;  %v760_v22 = vadd.f32 %v5546_v3, %v707_v39  ;;  %v526_v40 = vpop.f32.mrf.mxu0  ;;  %v8888_v1 = vld [vmem:[#allocation34_spill] sm:$0xff]  ;;  %v8890_v39 = vld [vmem:[#allocation33_spill] sm:$0xff] }
 0x14d   : > { %v8865_v49 = vsel %vm5814_vm12, 4294967295, %v8864_v49  ;;  %vm5822_vm0 = vmand %vm5762_vm4, %vm8866_vm10  ;;  %v8874_v38 = vsel %vm8872_vm2, %v8873_v25, 0.0  ;;  %v1623_v58 = vsel %vm8875_vm11, %v805_v29, 0.0  ;;  %v710_v5 = vmul.f32 %v4291_v20, %v5501_v33  ;;  %v8886_v29 = vld [vmem:[#allocation20_spill] sm:$0xff] }
 0x14e   : > { %v1812_v6 = vadd.f32 %v8874_v38, %v1745_v27  ;;  %vm8876_vm4 = vcmp.ge.f32.partialorder %v5152_v51, 1.0  ;;  %v8879_v27 = vld [vmem:[#allocation19_spill] sm:$0xff]  ;;  %1677 = vst [vmem:[#allocation2 + $0x20] sm:$0xff] %v1623_v58  ;;  %vm8880_vm11 = vcmp.le.f32.partialorder %v5109_v57, 16.0  ;;  %v8881_v17 = vmov 0 }
 0x14f   : > { %vm5844_vm10 = vmand %vm5781_vm7, %vm8876_vm4  ;;  %vm8883_vm7 = vcmp.ge.f32.partialorder %v5156_v8, 1.0  ;;  %v8884_v24 = vmov 0  ;;  %v1746_v57 = vsel %vm8870_vm8, %v1623_v58, 0.0  ;;  %v5879_v25 = vfloor.f32 %v1034_v30 }
 0x150   : > { %vm5855_vm12 = vmand %vm5693_vm6, %vm8880_vm11  ;;  %vm8889_vm11 = vnez %v8888_v1  ;;  %v808_v28 = vmax.f32 %v760_v22, 0.0  ;;  %v763_v14 = vadd.f32 %v5546_v3, %v710_v5  ;;  %v708_v56 = vmul.f32 %v5501_v33, %v526_v40  ;;  %v2106_v62 = vld [vmem:[#allocation2 + $0x2b] sm:$0xff] }
 0x151   : > { %v8882_v17 = vsel %vm5855_vm12, 4294967295, %v8881_v17  ;;  %vm5863_vm4 = vmand %vm5805_vm1, %vm8883_vm7  ;;  %v8891_v20 = vsel %vm8889_vm11, %v8890_v39, 0.0  ;;  %8892 = vst [vmem:[#allocation18_spill] sm:$0xff] %v5879_v25  ;;  %vm8893_vm1 = vnez %v8796_v2  ;;  %vm8895_vm7 = vcmp.ge.f32.partialorder %v8801_v10, 1.0 }
 0x152   : > { %v8885_v24 = vsel %vm5863_vm4, 4294967295, %v8884_v24  ;;  %vm8887_vm6 = vmmov %vm8870_vm8  ;;  %v1863_v47 = vadd.f32 %v8891_v20, %v1812_v6  ;;  %v1628_v38 = vsel %vm8893_vm1, %v810_v42, 0.0  ;;  %vm8894_vm8 = vcmp.le.f32.partialorder %v8801_v10, 16.0  ;;  %v4294_v42 = vpop.f32.mrf.mxu0  ;;  %v8901_v10 = vld [vmem:[#allocation32_spill] sm:$0xff]  ;;  %v8904_v6 = vld [vmem:[#allocation38_spill] sm:$0xff] }
 0x153   : > { %v5873_v63 = vsel %vm8887_vm6, %v1625_v53, 0.0  ;;  %vm5889_vm6 = vmand %vm8895_vm7, %vm8894_vm8  ;;  %1682 = vst [vmem:[#allocation2 + $0x48] sm:$0xff] %v1628_v38  ;;  %vm8898_vm1 = vcmp.le.f32.partialorder %v5126_v11, 16.0  ;;  %v8899_v2 = vmov 0  ;;  %v8902_v22 = vsel %vm8872_vm2, %v8901_v10, 0.0  ;;  %v8913_v10 = vld [vmem:[#allocation25_spill] sm:$0xff] }
 0x154   : > { %vm5900_vm4 = vmand %vm5717_vm15, %vm8898_vm1  ;;  %v1813_v5 = vadd.f32 %v8902_v22, %v1746_v57  ;;  %vm8903_vm8 = vnez %v8699_v31  ;;  %vm8906_vm7 = vcmp.lt.s32.totalorder %v5143_v54, 20  ;;  %vm8907_vm9 = vcmp.ge.s32.totalorder %v5143_v54, 16  ;;  %v1779_v22 = vld [vmem:[#allocation2 + $0x15] sm:$0xff] }
 0x155   : > { %v8900_v2 = vsel %vm5900_vm4, 4294967295, %v8899_v2  ;;  %v8905_v30 = vsel %vm8903_vm8, %v8904_v6, 0.0  ;;  %vm5918_vm12 = vmand %vm8907_vm9, %vm8906_vm7  ;;  %v8908_v11 = vmov 0  ;;  %v5923_v7 = vmul.f32 18.0, %v5879_v25  ;;  %v1830_v6 = vld [vmem:[#allocation2 + $0x16] sm:$0xff]  ;;  %v6039_v35 = vld [vmem:[#allocation2 + $0x27] sm:$0xff] }
 0x156   : > { %v5912_v58 = vadd.f32 %v8905_v30, %v1863_v47  ;;  %v8909_v11 = vsel %vm5918_vm12, 4294967295, %v8908_v11  ;;  %v8911_v40 = vcvt.s32.f32 %v5794_v60  ;;  %v1626_v39 = vsel %vm5685_vm3, %v808_v28, 0.0  ;;  %v5935_v30 = vld [vmem:[#allocation2 + $0x17] sm:$0xff]  ;;  %v539_v60 = vpop.f32.mrf.mxu0 }
 0x157   : > { %8910 = vst [vmem:[#allocation15_spill] sm:$0xff] %v5923_v7  ;;  %v811_v20 = vmax.f32 %v763_v14, 0.0  ;;  %v761_v47 = vadd.f32 %v5546_v3, %v708_v56  ;;  %v713_v38 = vmul.f32 %v4294_v42, %v5501_v33  ;;  %1680 = vst [vmem:[#allocation2 + $0x38] sm:$0xff] %v1626_v39  ;;  %vm8914_vm1 = vcmp.le.f32.partialorder %v5130_v41, 16.0  ;;  %v8920_v14 = vld [vmem:[#allocation26_spill] sm:$0xff]  ;;  %v8968_v56 = vld [vmem:[#allocation27_spill] sm:$0xff] }
 0x158   : > { %v5927_v57 = vadd.f32 0.5, %v8911_v40  ;;  %vm5941_vm3 = vmand %vm5735_vm13, %vm8914_vm1  ;;  %v8915_v15 = vmov 0  ;;  %vm8917_vm7 = vcmp.ge.f32.partialorder %v8823_v32, 1.0  ;;  %v1798_v28 = vsel %vm8872_vm2, %v1779_v22, 0.0 }
 0x159   : > { %v8916_v15 = vsel %vm5941_vm3, 4294967295, %v8915_v15  ;;  %vm5949_vm15 = vmand %vm5889_vm6, %vm8917_vm7  ;;  %v1849_v41 = vsel %vm8889_vm11, %v1830_v6, 0.0  ;;  %v8922_v42 = vsel %vm8889_vm11, %v8921_v34, 0.0  ;;  %v1900_v53 = vsel %vm8903_vm8, %v5935_v30, 0.0 }
 0x15a   : > { %8912 = vst [vmem:[#allocation42_spill] sm:$0xff] %v5927_v57  ;;  %v1864_v40 = vadd.f32 %v8922_v42, %v1813_v5  ;;  %vm8923_vm13 = vnez %v8826_v26  ;;  %v809_v57 = vmax.f32 %v761_v47, 0.0  ;;  %v766_v7 = vadd.f32 %v5546_v3, %v713_v38  ;;  %v5978_v5 = vld [vmem:[#allocation2 + $0x2f] sm:$0xff]  ;;  %v4295_v26 = vpop.f32.mrf.mxu0  ;;  %v8936_v42 = vld [vmem:[#allocation22_spill] sm:$0xff] }
 0x15b   : > { %v1629_v39 = vsel %vm8923_vm13, %v811_v20, 0.0  ;;  %v711_v22 = vmul.f32 %v5501_v33, %v539_v60  ;;  %vm8924_vm6 = vcmp.le.f32.partialorder %v8830_v45, 16.0  ;;  %vm8925_vm1 = vcmp.ge.f32.partialorder %v8830_v45, 1.0 }
 0x15c   : > { %vm5973_vm7 = vmand %vm8925_vm1, %vm8924_vm6  ;;  %1683 = vst [vmem:[#allocation2 + $0x50] sm:$0xff] %v1629_v39  ;;  %vm8928_vm3 = vcmp.le.f32.partialorder %v5139_v12, 16.0  ;;  %vm8931_vm6 = vcmp.le.f32.partialorder %v8844_v59, 16.0  ;;  %vm8932_vm1 = vcmp.ge.f32.partialorder %v8844_v59, 1.0  ;;  %v1814_v20 = vadd.f32 %v1798_v28, %v5829_v36  ;;  %v1882_v39 = vld [vmem:[#allocation2 + $0x1f] sm:$0xff] }
 0x15d   : > { %vm5986_vm4 = vmand %vm5822_vm0, %vm8928_vm3  ;;  %v8935_v21 = vsel %vm8903_vm8, %v5481_v61, 0.0  ;;  %v1935_v59 = vsel %vm5918_vm12, %v5935_v30, 0.0  ;;  %v1627_v36 = vsel %vm5773_vm14, %v809_v57, 0.0  ;;  %v814_v38 = vmax.f32 %v766_v7, 0.0  ;;  %v1780_v61 = vld [vmem:[#allocation2 + $0x1d] sm:$0xff]  ;;  %v542_v30 = vpop.f32.mrf.mxu0 }
 0x15e   : > { %vm5994_vm9 = vmand %vm8932_vm1, %vm8931_vm6  ;;  %v6006_v47 = vadd.f32 %v8935_v21, %v1864_v40  ;;  %v764_v28 = vadd.f32 %v5546_v3, %v711_v22  ;;  %v714_v34 = vmul.f32 %v4295_v26, %v5501_v33  ;;  %v1831_v40 = vld [vmem:[#allocation2 + $0x1e] sm:$0xff]  ;;  %1681 = vst [vmem:[#allocation2 + $0x40] sm:$0xff] %v1627_v36  ;;  %vm8937_vm0 = vcmp.le.f32.partialorder %v5152_v51, 16.0  ;;  %v2107_v18 = vld [vmem:[#allocation2 + $0x33] sm:$0xff] }
 0x15f   : > { %vm6023_vm3 = vmand %vm5844_vm10, %vm8937_vm0  ;;  %vm8940_vm14 = vcmp.ge.f32.partialorder %v8862_v9, 1.0  ;;  %v1799_v57 = vsel %vm8872_vm2, %v1780_v61, 0.0  ;;  %v1850_v51 = vsel %vm8889_vm11, %v1831_v40, 0.0  ;;  %v1865_v22 = vadd.f32 %v1849_v41, %v1814_v20  ;;  %v4298_v20 = vpop.f32.mrf.mxu0  ;;  %v8988_v41 = vld [vmem:[#allocation28_spill] sm:$0xff] }
 0x160   : > { %vm6031_vm6 = vmand %vm5973_vm7, %vm8940_vm14  ;;  %v1901_v26 = vsel %vm8903_vm8, %v1882_v39, 0.0  ;;  %vm8943_vm7 = vnez %v8865_v49  ;;  %v812_v21 = vmax.f32 %v764_v28, 0.0  ;;  %v767_v36 = vadd.f32 %v5546_v3, %v714_v34 }
 0x161   : > { %v1632_v6 = vsel %vm8943_vm7, %v814_v38, 0.0  ;;  %v712_v61 = vmul.f32 %v5501_v33, %v542_v30  ;;  %vm8944_vm14 = vcmp.ge.f32.partialorder %v8869_v48, 1.0  ;;  %vm8947_vm0 = vcmp.le.f32.partialorder %v5156_v8, 16.0  ;;  %v8955_v38 = vld [vmem:[#allocation29_spill] sm:$0xff] }
 0x162   : > { %vm6053_vm1 = vmand %vm5994_vm9, %vm8944_vm14  ;;  %1686 = vst [vmem:[#allocation2 + $0x68] sm:$0xff] %v1632_v6  ;;  %vm8948_vm7 = vnez %v8885_v24  ;;  %vm8951_vm13 = vcmp.le.f32.partialorder %v8879_v27, 16.0  ;;  %vm8952_vm11 = vcmp.ge.f32.partialorder %v8879_v27, 1.0  ;;  %v1815_v28 = vadd.f32 %v1799_v57, %v5873_v63 }
 0x163   : > { %vm6062_vm5 = vmand %vm8948_vm7, %vm8947_vm0  ;;  %v1916_v24 = vadd.f32 %v1900_v53, %v1865_v22  ;;  %v1936_v34 = vsel %vm5918_vm12, %v1882_v39, 0.0  ;;  %vm8956_vm0 = vnez %v8882_v17  ;;  %v815_v27 = vmax.f32 %v767_v36, 0.0  ;;  %v1967_v53 = vld [vmem:[#allocation2 + $0x19] sm:$0xff]  ;;  %v555_v39 = vpop.f32.mrf.mxu0 }
 0x164   : > { %vm6070_vm9 = vmand %vm8952_vm11, %vm8951_vm13  ;;  %v1630_v40 = vsel %vm8956_vm0, %v812_v21, 0.0  ;;  %v765_v30 = vadd.f32 %v5546_v3, %v712_v61  ;;  %v717_v6 = vmul.f32 %v4298_v20, %v5501_v33  ;;  %vm8957_vm11 = vcmp.le.f32.partialorder %v8886_v29, 16.0  ;;  %v6124_v20 = vld [vmem:[#allocation2 + $0x29] sm:$0xff] }
 0x165   : > { %vm8958_vm13 = vcmp.ge.f32.partialorder %v8886_v29, 1.0  ;;  %1684 = vst [vmem:[#allocation2 + $0x58] sm:$0xff] %v1630_v40  ;;  %vm8961_vm0 = vcmp.le.f32.partialorder %v8823_v32, 16.0  ;;  %v1866_v57 = vadd.f32 %v1850_v51, %v1815_v28  ;;  %v1937_v29 = vsel %vm5918_vm12, %v6039_v35, 0.0  ;;  %v6126_v28 = vld [vmem:[#allocation2 + $0x31] sm:$0xff]  ;;  %v4299_v40 = vpop.f32.mrf.mxu0 }
 0x166   : > { %vm6089_vm7 = vmand %vm8958_vm13, %vm8957_vm11  ;;  %v1938_v22 = vsel %vm5918_vm12, %v5978_v5, 0.0  ;;  %v1951_v21 = vadd.f32 %v1935_v59, %v5912_v58  ;;  %vm8964_vm11 = vcmp.lt.s32.totalorder %v5143_v54, 24  ;;  %vm8965_vm13 = vcmp.ge.s32.totalorder %v5143_v54, 20  ;;  %v1968_v59 = vld [vmem:[#allocation2 + $0x21] sm:$0xff] }
 0x167   : > { %vm6098_vm10 = vmand %vm5949_vm15, %vm8961_vm0  ;;  %v8966_v32 = vmov 0  ;;  %vm8969_vm8 = vnez %v8900_v2  ;;  %v813_v36 = vmax.f32 %v765_v30, 0.0  ;;  %v770_v61 = vadd.f32 %v5546_v3, %v717_v6  ;;  %v558_v60 = vpop.f32.mrf.mxu0 }
 0x168   : > { %vm6113_vm14 = vmand %vm8965_vm13, %vm8964_vm11  ;;  %v1633_v51 = vsel %vm8969_vm8, %v815_v27, 0.0  ;;  %v715_v58 = vmul.f32 %v5501_v33, %v555_v39  ;;  %vm8970_vm11 = vcmp.le.f32.partialorder %v8862_v9, 16.0  ;;  %vm8973_vm8 = vcmp.ge.f32.partialorder %v8913_v10, 1.0 }
 0x169   : > { %v8967_v32 = vsel %vm6113_vm14, 4294967295, %v8966_v32  ;;  %1687 = vst [vmem:[#allocation2 + $0x70] sm:$0xff] %v1633_v51  ;;  %vm6132_vm13 = vmand %vm6031_vm6, %vm8970_vm11  ;;  %v1917_v30 = vadd.f32 %v1901_v26, %v1866_v57  ;;  %v1952_v6 = vadd.f32 %v1936_v34, %v6006_v47  ;;  %v1953_v39 = vadd.f32 %v1937_v29, %v1916_v24  ;;  %v8980_v47 = vld [vmem:[#allocation39_spill] sm:$0xff]  ;;  %v4302_v45 = vpop.f32.mrf.mxu0 }
 0x16a   : > { %vm6140_vm12 = vmand %vm6070_vm9, %vm8973_vm8  ;;  %v1986_v9 = vsel %vm6113_vm14, %v1967_v53, 0.0  ;;  %vm8976_vm6 = vnez %v8916_v15  ;;  %v818_v51 = vmax.f32 %v770_v61, 0.0  ;;  %v768_v12 = vadd.f32 %v5546_v3, %v715_v58  ;;  %v2055_v61 = vld [vmem:[#allocation2 + $0x2a] sm:$0xff]  ;;  %v2056_v58 = vld [vmem:[#allocation2 + $0x32] sm:$0xff] }
 0x16b   : > { %v1631_v7 = vsel %vm8976_vm6, %v813_v36, 0.0  ;;  %v718_v8 = vmul.f32 %v4299_v40, %v5501_v33  ;;  %vm8977_vm9 = vcmp.ge.f32.partialorder %v8920_v14, 1.0  ;;  %vm8981_vm15 = vcmp.le.f32.partialorder %v8869_v48, 16.0  ;;  %v8993_v40 = vld [vmem:[#allocation35_spill] sm:$0xff]  ;;  %v571_v44 = vpop.f32.mrf.mxu0 }
 0x16c   : > { %vm6155_vm11 = vmand %vm6089_vm7, %vm8977_vm9  ;;  %1685 = vst [vmem:[#allocation2 + $0x60] sm:$0xff] %v1631_v7  ;;  %v1954_v24 = vadd.f32 %v1938_v22, %v1917_v30  ;;  %v1987_v34 = vsel %vm6113_vm14, %v1968_v59, 0.0  ;;  %v1988_v63 = vsel %vm6113_vm14, %v6124_v20, 0.0  ;;  %v1989_v53 = vsel %vm6113_vm14, %v6126_v28, 0.0 }
 0x16d   : > { %vm6164_vm6 = vmand %vm6053_vm1, %vm8981_vm15  ;;  %vm8984_vm7 = vcmp.lt.s32.totalorder %v5143_v54, 28  ;;  %vm8985_vm9 = vcmp.ge.s32.totalorder %v5143_v54, 24  ;;  %v8986_v48 = vmov 0  ;;  %v1636_v57 = vsel %vm5986_vm4, %v818_v51, 0.0 }
 0x16e   : > { %vm6180_vm1 = vmand %vm8985_vm9, %vm8984_vm7  ;;  %v816_v29 = vmax.f32 %v768_v12, 0.0  ;;  %v771_v22 = vadd.f32 %v5546_v3, %v718_v8  ;;  %v716_v36 = vmul.f32 %v5501_v33, %v558_v60  ;;  %vm8989_vm0 = vcmp.lt.s32.totalorder %v5143_v54, 32  ;;  %1690 = vst [vmem:[#allocation2 + $0x88] sm:$0xff] %v1636_v57 }
 0x16f   : > { %v8987_v48 = vsel %vm6180_vm1, 4294967295, %v8986_v48  ;;  %vm8990_vm7 = vcmp.ge.s32.totalorder %v5143_v54, 28  ;;  %vm1259_vm8 = vcmp.le.f32.partialorder %v8993_v40, 16.0  ;;  %vm8994_vm4 = vcmp.le.f32.partialorder %v8936_v42, 16.0 }
 0x170   : > { %vm6194_vm9 = vmand %vm8990_vm7, %vm8989_vm0  ;;  %vm8995_vm14 = vcmp.ge.f32.partialorder %v8936_v42, 1.0  ;;  %v2002_v8 = vadd.f32 %v1986_v9, %v1951_v21  ;;  %v2003_v30 = vadd.f32 %v1987_v34, %v1952_v6  ;;  %v6208_v7 = vadd.f32 %v1988_v63, %v1953_v39  ;;  %v9002_v6 = vld [vmem:[#allocation40_spill] sm:$0xff] }
 0x171   : > { %vm6204_vm2 = vmand %vm8995_vm14, %vm8994_vm4  ;;  %v6210_v51 = vadd.f32 %v1989_v53, %v1954_v24  ;;  %v1634_v60 = vsel %vm6023_vm3, %v816_v29, 0.0  ;;  %v819_v57 = vmax.f32 %v771_v22, 0.0  ;;  %v769_v25 = vadd.f32 %v5546_v3, %v716_v36  ;;  %v6257_v29 = vld [vmem:[#allocation2 + $0x39] sm:$0xff]  ;;  %v6259_v22 = vld [vmem:[#allocation2 + $0x41] sm:$0xff] }
 0x172   : > { %v721_v42 = vmul.f32 %v4302_v45, %v5501_v33  ;;  %vm8998_vm14 = vcmp.lt.s32.totalorder %v5143_v54, 36  ;;  %vm8999_vm7 = vcmp.ge.s32.totalorder %v5143_v54, 32  ;;  %v9000_v21 = vmov 0  ;;  %1688 = vst [vmem:[#allocation2 + $0x78] sm:$0xff] %v1634_v60  ;;  %v9009_v36 = vld [vmem:[#allocation43_spill] sm:$0xff] }
 0x173   : > { %vm6221_vm4 = vmand %vm8999_vm7, %vm8998_vm14  ;;  %vm9003_vm3 = vcmp.le.f32.partialorder %v8913_v10, 16.0  ;;  %v2023_v9 = vsel %vm6180_vm1, %v6124_v20, 0.0  ;;  %v2024_v24 = vsel %vm6180_vm1, %v6126_v28, 0.0  ;;  %v2074_v34 = vsel %vm6194_vm9, %v2055_v61, 0.0 }
 0x174   : > { %v9001_v21 = vsel %vm6221_vm4, 4294967295, %v9000_v21  ;;  %vm6230_vm15 = vmand %vm6140_vm12, %vm9003_vm3  ;;  %v2075_v10 = vsel %vm6194_vm9, %v2056_v58, 0.0  ;;  %v1637_v27 = vsel %vm6062_vm5, %v819_v57, 0.0  ;;  %v817_v63 = vmax.f32 %v769_v25, 0.0  ;;  %v4303_v25 = vpop.f32.mrf.mxu0 }
 0x175   : > { %v774_v53 = vadd.f32 %v5546_v3, %v721_v42  ;;  %v719_v20 = vmul.f32 %v5501_v33, %v571_v44  ;;  %vm9006_vm12 = vcmp.ge.f32.partialorder %v8955_v38, 1.0  ;;  %vm1264_vm5 = vcmp.le.f32.partialorder %v9009_v36, 16.0  ;;  %1691 = vst [vmem:[#allocation2 + $0x90] sm:$0xff] %v1637_v27  ;;  %v2108_v27 = vld [vmem:[#allocation2 + $0x3b] sm:$0xff] }
 0x176   : > { %vm6253_vm7 = vmand %vm6204_vm2, %vm9006_vm12  ;;  %vm9010_vm14 = vcmp.le.f32.partialorder %v8920_v14, 16.0  ;;  %v2039_v61 = vadd.f32 %v2023_v9, %v2002_v8  ;;  %v2040_v58 = vadd.f32 %v2024_v24, %v2003_v30  ;;  %v2125_v45 = vsel %vm6221_vm4, %v2106_v62, 0.0 }
 0x177   : > { %vm6267_vm0 = vmand %vm6155_vm11, %vm9010_vm14  ;;  %v2126_v12 = vsel %vm6221_vm4, %v2107_v18, 0.0  ;;  %v1635_v60 = vsel %vm6098_vm10, %v817_v63, 0.0  ;;  %v822_v14 = vmax.f32 %v774_v53, 0.0  ;;  %v772_v26 = vadd.f32 %v5546_v3, %v719_v20  ;;  %v574_v18 = vpop.f32.mrf.mxu0  ;;  %v9020_v63 = vld [vmem:[#allocation44_spill] sm:$0xff] }
 0x178   : > { %v722_v57 = vmul.f32 %v4303_v25, %v5501_v33  ;;  %vm9013_vm11 = vcmp.le.f32.partialorder %v8968_v56, 16.0  ;;  %vm9014_vm14 = vcmp.ge.f32.partialorder %v8968_v56, 1.0  ;;  %vm1451_vm3 = vcmp.le.f32.partialorder %v5542_v50, 16.0  ;;  %1689 = vst [vmem:[#allocation2 + $0x80] sm:$0xff] %v1635_v60 }
 0x179   : > { %vm6284_vm12 = vmand %vm9014_vm14, %vm9013_vm11  ;;  %vm9017_vm2 = vcmp.le.f32.partialorder %v8955_v38, 16.0  ;;  %v2090_v17 = vadd.f32 %v2074_v34, %v2039_v61  ;;  %v2091_v30 = vadd.f32 %v2075_v10, %v2040_v58  ;;  %v2025_v56 = vsel %vm6180_vm1, %v6257_v29, 0.0  ;;  %v2057_v34 = vld [vmem:[#allocation2 + $0x3a] sm:$0xff]  ;;  %v2058_v10 = vld [vmem:[#allocation2 + $0x42] sm:$0xff]  ;;  %v4306_v53 = vpop.f32.mrf.mxu0 }
 0x17a   : > { %vm6293_vm10 = vmand %vm6253_vm7, %vm9017_vm2  ;;  %v2026_v42 = vsel %vm6180_vm1, %v6259_v22, 0.0  ;;  %v1640_v38 = vsel %vm6132_vm13, %v822_v14, 0.0  ;;  %v820_v44 = vmax.f32 %v772_v26, 0.0  ;;  %v775_v9 = vadd.f32 %v5546_v3, %v722_v57 }
 0x17b   : > { %v720_v24 = vmul.f32 %v5501_v33, %v574_v18  ;;  %1694 = vst [vmem:[#allocation2 + $0xa8] sm:$0xff] %v1640_v38  ;;  %v2141_v20 = vadd.f32 %v2125_v45, %v2090_v17  ;;  %v2142_v28 = vadd.f32 %v2126_v12, %v2091_v30  ;;  %vm9021_vm14 = vcmp.ge.f32.partialorder %v8980_v47, 1.0  ;;  %v2109_v12 = vld [vmem:[#allocation2 + $0x43] sm:$0xff] }
 0x17c   : > { %vm6314_vm13 = vmand %vm6284_vm12, %vm9021_vm14  ;;  %v2041_v25 = vadd.f32 %v2025_v56, %v6208_v7  ;;  %v2042_v61 = vadd.f32 %v2026_v42, %v6210_v51  ;;  %v1638_v58 = vsel %vm6164_vm6, %v820_v44, 0.0  ;;  %v823_v60 = vmax.f32 %v775_v9, 0.0  ;;  %v1730_v7 = vld [vmem:[#allocation2 + $0x38] sm:$0xff]  ;;  %v587_v51 = vpop.f32.mrf.mxu0  ;;  %v1731_v38 = vld [vmem:[#allocation2 + $0x40] sm:$0xff] }
 0x17d   : > { %v773_v14 = vadd.f32 %v5546_v3, %v720_v24  ;;  %v725_v45 = vmul.f32 %v4306_v53, %v5501_v33  ;;  %vm9024_vm7 = vcmp.le.f32.partialorder %v8988_v41, 16.0  ;;  %vm9025_vm12 = vcmp.ge.f32.partialorder %v8988_v41, 1.0  ;;  %1692 = vst [vmem:[#allocation2 + $0x98] sm:$0xff] %v1638_v58  ;;  %v1781_v44 = vld [vmem:[#allocation2 + $0x25] sm:$0xff] }
 0x17e   : > { %vm6328_vm14 = vmand %vm9025_vm12, %vm9024_vm7  ;;  %v2157_v15 = vpack.c.bf16 %v2142_v28, %v2141_v20  ;;  %v2076_v57 = vsel %vm6194_vm9, %v2057_v34, 0.0  ;;  %v2077_v8 = vsel %vm6194_vm9, %v2058_v10, 0.0  ;;  %v2127_v18 = vsel %vm6221_vm4, %v2108_v27, 0.0  ;;  %v4307_v34 = vpop.f32.mrf.mxu0  ;;  %v4546_v41 = vld [vmem:[#allocation6 + $0x70] sm:$0xff]  }
 0x17f   : > { %vm9028_vm6 = vcmp.ge.f32.partialorder %v8993_v40, 1.0  ;;  %vm1358_vm12 = vcmp.ge.f32.partialorder %v5591_v55, 1.0  ;;  %v1641_v17 = vsel %vm6230_vm15, %v823_v60, 0.0  ;;  %v821_v30 = vmax.f32 %v773_v14, 0.0 }
 0x180   : > { %vm6343_vm7 = vmand %vm9028_vm6, %vm1259_vm8  ;;  %v778_v56 = vadd.f32 %v5546_v3, %v725_v45  ;;  %v723_v42 = vmul.f32 %v5501_v33, %v587_v51  ;;  %vm9031_vm2 = vcmp.le.f32.partialorder %v8980_v47, 16.0  ;;  %1695 = vst [vmem:[#allocation2 + $0xb0] sm:$0xff] %v1641_v17  ;;  %4348 = vmatprep.mubr.bf16.mxu1 %v2157_v15  ;;  %v2092_v9 = vadd.f32 %v2076_v57, %v2041_v25  ;;  %v1782_v25 = vld [vmem:[#allocation2 + $0x2d] sm:$0xff]  ;;  %v590_v49 = vpop.f32.mrf.mxu0 }
 0x181   : > { %vm6356_vm11 = vmand %vm6314_vm13, %vm9031_vm2  ;;  %v2093_v39 = vadd.f32 %v2077_v8, %v2042_v61  ;;  %v2128_v24 = vsel %vm6221_vm4, %v2109_v12, 0.0  ;;  %vm9034_vm8 = vcmp.ge.f32.partialorder %v9002_v6, 1.0  ;;  %vm9037_vm2 = vcmp.lt.s32.totalorder %v5143_v54, 4  ;;  %v1832_v61 = vld [vmem:[#allocation2 + $0x26] sm:$0xff]  ;;  %v1833_v57 = vld [vmem:[#allocation2 + $0x2e] sm:$0xff] }
 0x182   : > { %vm6366_vm15 = vmand %vm6328_vm14, %vm9034_vm8  ;;  %v1749_v10 = vsel %vm9037_vm2, %v1730_v7, 0.0  ;;  %v1639_v27 = vsel %vm6267_vm0, %v821_v30, 0.0  ;;  %v826_v53 = vmax.f32 %v778_v56, 0.0  ;;  %v776_v20 = vadd.f32 %v5546_v3, %v723_v42  ;;  %v6409_v8 = vld [vmem:[#allocation2 + $0x37] sm:$0xff]  ;;  %v4310_v17 = vpop.f32.mrf.mxu0 }
 0x183   : > { %v726_v28 = vmul.f32 %v4307_v34, %v5501_v33  ;;  %vm9038_vm13 = vcmp.ge.f32.partialorder %v5542_v50, 1.0  ;;  %1693 = vst [vmem:[#allocation2 + $0xa0] sm:$0xff] %v1639_v27  ;;  %v2143_v58 = vadd.f32 %v2127_v18, %v2092_v9  ;;  %v2144_v60 = vadd.f32 %v2128_v24, %v2093_v39  ;;  %vm9044_vm8 = vmmov %vm9037_vm2  ;;  %v9049_v18 = vld [vmem:[#allocation45_spill] sm:$0xff]  ;;  %v6446_v27 = vld [vmem:[#allocation2 + $0x49] sm:$0xff] }
 0x184   : > { %vm6380_vm6 = vmand %vm6343_vm7, %vm9038_vm13  ;;  %vm9041_vm0 = vcmp.ge.f32.partialorder %v9009_v36, 1.0  ;;  %v1750_v45 = vsel %vm9044_vm8, %v1731_v38, 0.0  ;;  %vm9045_vm7 = vnez %v8871_v52  ;;  %vm1454_vm2 = vcmp.le.f32.partialorder %v5591_v55, 16.0  ;;  %v6425_v38 = vld [vmem:[#allocation2 + $0x3f] sm:$0xff]  ;;  %v603_v14 = vpop.f32.mrf.mxu0  ;;  %v6490_v36 = vld [vmem:[#allocation2 + $0x4b] sm:$0xff] }
 0x185   : > { %vm6388_vm14 = vmand %vm9041_vm0, %vm1264_vm5  ;;  %v1800_v12 = vsel %vm9045_vm7, %v1781_v44, 0.0  ;;  %v1644_v26 = vsel %vm6293_vm10, %v826_v53, 0.0  ;;  %v824_v7 = vmax.f32 %v776_v20, 0.0  ;;  %v779_v15 = vadd.f32 %v5546_v3, %v726_v28  ;;  %v6448_v53 = vld [vmem:[#allocation2 + $0x51] sm:$0xff]  ;;  %v4561_v28 = vld [vmem:[#allocation6 + $0x78] sm:$0xff]  }
 0x186   : > { %vm9046_vm13 = vcmp.le.f32.partialorder %v9002_v6, 16.0  ;;  %v724_v51 = vmul.f32 %v5501_v33, %v590_v49  ;;  %1698 = vst [vmem:[#allocation2 + $0xc8] sm:$0xff] %v1644_v26  ;;  %v2158_v62 = vpack.c.bf16 %v2144_v60, %v2143_v58  ;;  %v1801_v30 = vsel %vm9045_vm7, %v1782_v25, 0.0  ;;  %v6465_v60 = vld [vmem:[#allocation2 + $0x4a] sm:$0xff]  ;;  %v6469_v49 = vld [vmem:[#allocation6 + $0x68] sm:$0xff]   ;;  %v6532_v20 = vpop.f32.mrf.mxu0 }
 0x187   : > { %vm6404_vm5 = vmand %vm6366_vm15, %vm9046_vm13  ;;  %v1816_v56 = vadd.f32 %v1800_v12, %v1749_v10  ;;  %vm9052_vm8 = vnez %v8888_v1  ;;  %v1642_v50 = vsel %vm6356_vm11, %v824_v7, 0.0  ;;  %v827_v44 = vmax.f32 %v779_v15, 0.0  ;;  %v1733_v6 = vld [vmem:[#allocation2 + $0x50] sm:$0xff]  ;;  %v1784_v24 = vld [vmem:[#allocation2 + $0x3d] sm:$0xff] }
 0x188   : > { %vm6417_vm15 = vmand %vm6380_vm6, %vm1451_vm3  ;;  %v1851_v42 = vsel %vm9052_vm8, %v1832_v61, 0.0  ;;  %v777_v9 = vadd.f32 %v5546_v3, %v724_v51  ;;  %v729_v39 = vmul.f32 %v4310_v17, %v5501_v33  ;;  %vm9053_vm3 = vcmp.ge.f32.partialorder %v5587_v16, 1.0  ;;  %1696 = vst [vmem:[#allocation2 + $0xb8] sm:$0xff] %v1642_v50  ;;  %4349 = vmatmul.mubr.bf16.vlgmr.msra.gmra.mxu1 %v2158_v62  ;;  %v6492_v51 = vld [vmem:[#allocation2 + $0x53] sm:$0xff]  ;;  %v6556_v55 = vld [vmem:[#allocation2 + $0x47] sm:$0xff] }
 0x189   : > { %vm6437_vm6 = vmand %vm6388_vm14, %vm9053_vm3  ;;  %v1817_v34 = vadd.f32 %v1801_v30, %v1750_v45  ;;  %v1852_v40 = vsel %vm9052_vm8, %v1833_v57, 0.0  ;;  %v1867_v47 = vadd.f32 %v1851_v42, %v1816_v56  ;;  %vm9056_vm11 = vnez %v8909_v11  ;;  %4365 = vmatpush3.bf16.msra.mxu1 %v4561_v28  ;;  %v9067_v57 = vld [vmem:[#allocation46_spill] sm:$0xff]  ;;  %v1732_v30 = vld [vmem:[#allocation2 + $0x48] sm:$0xff] }
 0x18a   : > { %v1939_v10 = vsel %vm9056_vm11, %v6409_v8, 0.0  ;;  %vm9057_vm14 = vcmp.le.f32.partialorder %v9020_v63, 16.0  ;;  %vm9058_vm3 = vcmp.ge.f32.partialorder %v9020_v63, 1.0  ;;  %v1645_v2 = vsel %vm6404_vm5, %v827_v44, 0.0  ;;  %v6467_v63 = vld [vmem:[#allocation2 + $0x52] sm:$0xff]  ;;  %4366 = vmatprep.subr.bf16.mxu1 %v4546_v41 }
 0x18b   : > { %vm6454_vm13 = vmand %vm9058_vm3, %vm9057_vm14  ;;  %v825_v25 = vmax.f32 %v777_v9, 0.0  ;;  %v782_v61 = vadd.f32 %v5546_v3, %v729_v39  ;;  %v1940_v58 = vsel %vm9056_vm11, %v6425_v38, 0.0  ;;  %1699 = vst [vmem:[#allocation2 + $0xd0] sm:$0xff] %v1645_v2  ;;  %vm9061_vm5 = vcmp.le.f32.partialorder %v5587_v16, 16.0  ;;  %v1783_v39 = vld [vmem:[#allocation2 + $0x35] sm:$0xff] }
 0x18c   : > { %vm6476_vm3 = vmand %vm6437_vm6, %vm9061_vm5  ;;  %v1868_v12 = vadd.f32 %v1852_v40, %v1817_v34  ;;  %vm9064_vm0 = vnez %v8699_v31  ;;  %vm9066_vm10 = vnez %v8967_v32  ;;  %vm1220_vm6 = vcmp.ge.f32.partialorder %v9067_v57, 1.0  ;;  %v1834_v34 = vld [vmem:[#allocation2 + $0x36] sm:$0xff]  ;;  %v3547_v31 = vld [vmem:[#allocation2 + $0x1a3] sm:$0xff] }
 0x18d   : > { %v9065_v26 = vsel %vm9064_vm0, %v6039_v35, 0.0  ;;  %v1990_v15 = vsel %vm9066_vm10, %v6257_v29, 0.0  ;;  %v1991_v16 = vsel %vm9066_vm10, %v6259_v22, 0.0  ;;  %vm1268_vm5 = vcmp.le.f32.partialorder %v9067_v57, 16.0  ;;  %vm6508_vm14 = vmand %vm6454_vm13, %vm1358_vm12  ;;  %4367 = vmatpush3.bf16.msra.mxu1 %v4546_v41  ;;  %v1734_v57 = vld [vmem:[#allocation2 + $0x58] sm:$0xff] }
 0x18e   : > { %v1918_v7 = vadd.f32 %v9065_v26, %v1867_v47  ;;  %v1643_v35 = vsel %vm6417_vm15, %v825_v25, 0.0  ;;  %v830_v62 = vmax.f32 %v782_v61, 0.0  ;;  %v2027_v29 = vsel %vm6180_vm1, %v6446_v27, 0.0  ;;  %4368 = vmatprep.subr.bf16.mxu1 %v6469_v49  ;;  %v1835_v61 = vld [vmem:[#allocation2 + $0x3e] sm:$0xff]  ;;  %vm6546_vm15 = vmand %vm6508_vm14, %vm1454_vm2 }
 0x18f   : > { %v2028_v22 = vsel %vm6180_vm1, %v6448_v53, 0.0  ;;  %1697 = vst [vmem:[#allocation2 + $0xc0] sm:$0xff] %v1643_v35  ;;  %v9070_v56 = vsel %vm9064_vm0, %v5978_v5, 0.0  ;;  %v2078_v44 = vsel %vm6194_vm9, %v6465_v60, 0.0  ;;  %v2079_v9 = vsel %vm6194_vm9, %v6467_v63, 0.0  ;;  %v4548_v60 = vld [vmem:[#allocation6 + $0x60] sm:$0xff]  }
 0x190   : > { %v1919_v42 = vadd.f32 %v9070_v56, %v1868_v12  ;;  %v1955_v50 = vadd.f32 %v1939_v10, %v1918_v7  ;;  %v1648_v40 = vsel %vm6476_vm3, %v830_v62, 0.0  ;;  %v2129_v5 = vsel %vm6221_vm4, %v6490_v36, 0.0 }
 0x191   : > { %v2130_v47 = vsel %vm6221_vm4, %v6492_v51, 0.0  ;;  %v727_v10 = vmul.f32 %v5501_v33, %v603_v14  ;;  %1702 = vst [vmem:[#allocation2 + $0xe8] sm:$0xff] %v1648_v40  ;;  %vm9071_vm13 = vcmp.lt.s32.totalorder %v5143_v54, 4  ;;  %v1802_v63 = vsel %vm9045_vm7, %v1783_v39, 0.0  ;;  %4369 = vmatpush3.bf16.msra.mxu1 %v6469_v49  ;;  %v6588_v39 = vld [vmem:[#allocation2 + $0x61] sm:$0xff] }
 0x192   : > { %v1956_v28 = vadd.f32 %v1940_v58, %v1919_v42  ;;  %v2006_v41 = vadd.f32 %v1990_v15, %v1955_v50  ;;  %v1751_v2 = vsel %vm9071_vm13, %v1732_v30, 0.0  ;;  %vm9072_vm3 = vmmov %vm9071_vm13  ;;  %v1803_v14 = vsel %vm9045_vm7, %v1784_v24, 0.0  ;;  %v6558_v15 = vld [vmem:[#allocation2 + $0x4f] sm:$0xff]  ;;  %v6586_v50 = vld [vmem:[#allocation2 + $0x59] sm:$0xff]  ;;  %4370 = vmatprep.subr.bf16.mxu1 %v4548_v60 }
 0x193   : > { %v1752_v25 = vsel %vm9072_vm3, %v1733_v6, 0.0  ;;  %v780_v33 = vadd.f32 %v5546_v3, %v727_v10  ;;  %v1853_v45 = vsel %vm9052_vm8, %v1834_v34, 0.0  ;;  %v1818_v3 = vadd.f32 %v1802_v63, %v1751_v2  ;;  %v4549_v30 = vld [vmem:[#allocation6 + $0x58] sm:$0xff]   ;;  %v6613_v2 = vld [vmem:[#allocation2 + $0x5b] sm:$0xff]  ;;  %v6660_v51 = vld [vmem:[#allocation8] ss:$0 sm:$0xff] }
 0x194   : > { %v2007_v12 = vadd.f32 %v1991_v16, %v1956_v28  ;;  %v2043_v26 = vadd.f32 %v2027_v29, %v2006_v41  ;;  %v1819_v7 = vadd.f32 %v1803_v14, %v1752_v25  ;;  %vm9075_vm2 = vcmp.le.f32.partialorder %v9049_v18, 16.0  ;;  %v6603_v24 = vld [vmem:[#allocation2 + $0x62] sm:$0xff] }
 0x195   : > { %vm9076_vm14 = vcmp.ge.f32.partialorder %v9049_v18, 1.0  ;;  %v828_v35 = vmax.f32 %v780_v33, 0.0  ;;  %v1854_v16 = vsel %vm9052_vm8, %v1835_v61, 0.0  ;;  %v1904_v62 = vsel %vm9064_vm0, %v6409_v8, 0.0  ;;  %v606_v18 = vpop.f32.mrf.mxu0  ;;  %v6615_v25 = vld [vmem:[#allocation2 + $0x63] sm:$0xff]  ;;  %4371 = vmatpush3.bf16.msra.mxu1 %v4548_v60 }
 0x196   : > { %vm6564_vm13 = vmand %vm9076_vm14, %vm9075_vm2  ;;  %v1905_v29 = vsel %vm9064_vm0, %v6425_v38, 0.0  ;;  %vm9079_vm2 = vcmp.le.f32.partialorder %v5458_v13, 16.0  ;;  %vm9080_vm14 = vcmp.ge.f32.partialorder %v5458_v13, 1.0  ;;  %v2044_v6 = vadd.f32 %v2028_v22, %v2007_v12  ;;  %v6590_v38 = vld [vmem:[#allocation2 + $0x5a] sm:$0xff]  ;;  %v9091_v63 = vld [vmem:[#allocation47_spill] sm:$0xff]  ;;  %4372 = vmatprep.subr.bf16.mxu1 %v4549_v30 }
 0x197   : > { %vm6582_vm3 = vmand %vm9080_vm14, %vm9079_vm2  ;;  %v2094_v56 = vadd.f32 %v2078_v44, %v2043_v26  ;;  %v1869_v42 = vadd.f32 %v1853_v45, %v1818_v3  ;;  %v1870_v8 = vadd.f32 %v1854_v16, %v1819_v7  ;;  %v1646_v49 = vsel %vm6546_vm15, %v828_v35, 0.0  ;;  %v4314_v58 = vpop.f32.mrf.mxu0  ;;  %v1735_v26 = vld [vmem:[#allocation2 + $0x60] sm:$0xff]  ;;  %v6731_v35 = vld [vmem:[#allocation2 + $0x71] sm:$0xff] }
 0x198   : > { %v1941_v13 = vsel %vm9056_vm11, %v6556_v55, 0.0  ;;  %v1942_v22 = vsel %vm9056_vm11, %v6558_v15, 0.0  ;;  %v1992_v44 = vsel %vm9066_vm10, %v6446_v27, 0.0  ;;  %vm9083_vm2 = vcmp.ge.f32.partialorder %v5613_v4, 1.0  ;;  %1700 = vst [vmem:[#allocation2 + $0xd8] sm:$0xff] %v1646_v49  ;;  %v4550_v3 = vld [vmem:[#allocation6 + $0x50] sm:$0xff]  }
 0x199   : > { %vm6609_vm14 = vmand %vm6564_vm13, %vm9083_vm2  ;;  %v2095_v40 = vadd.f32 %v2079_v9, %v2044_v6  ;;  %v2145_v10 = vadd.f32 %v2129_v5, %v2094_v56  ;;  %v1920_v28 = vadd.f32 %v1904_v62, %v1869_v42  ;;  %v1921_v41 = vadd.f32 %v1905_v29, %v1870_v8  ;;  %v1785_v62 = vld [vmem:[#allocation2 + $0x45] sm:$0xff]  ;;  %v6683_v42 = vld [vmem:[#allocation8 + $0x1] ss:$0 sm:$0xff]  ;;  %4373 = vmatpush3.bf16.msra.mxu1 %v4549_v30 }
 0x19a   : > { %vm9086_vm15 = vcmp.ge.f32.partialorder %v5633_v19, 1.0  ;;  %v1993_v9 = vsel %vm9066_vm10, %v6448_v53, 0.0  ;;  %v2029_v5 = vsel %vm6180_vm1, %v6586_v50, 0.0  ;;  %v2030_v61 = vsel %vm6180_vm1, %v6588_v39, 0.0  ;;  %vm6641_vm13 = vmand %vm1220_vm6, %vm1268_vm5  ;;  %v1836_v34 = vld [vmem:[#allocation2 + $0x46] sm:$0xff]  ;;  %4374 = vmatprep.subr.bf16.mxu1 %v4550_v3 }
 0x19b   : > { %vm6621_vm12 = vmand %vm6582_vm3, %vm9086_vm15  ;;  %v2080_v33 = vsel %vm6194_vm9, %v6590_v38, 0.0  ;;  %v2146_v14 = vadd.f32 %v2130_v47, %v2095_v40  ;;  %v1957_v45 = vadd.f32 %v1941_v13, %v1920_v28  ;;  %v1958_v60 = vadd.f32 %v1942_v22, %v1921_v41  ;;  %v1837_v40 = vld [vmem:[#allocation2 + $0x4e] sm:$0xff] }
 0x19c   : > { %v2081_v12 = vsel %vm6194_vm9, %v6603_v24, 0.0  ;;  %v2131_v7 = vsel %vm6221_vm4, %v6613_v2, 0.0  ;;  %v2132_v36 = vsel %vm6221_vm4, %v6615_v25, 0.0  ;;  %v730_v47 = vmul.f32 %v6660_v51, %v6532_v20  ;;  %v1786_v20 = vld [vmem:[#allocation2 + $0x4d] sm:$0xff] }
 0x19d   : > { %vm9092_vm6 = vcmp.le.f32.partialorder %v5613_v4, 16.0  ;;  %v728_v16 = vmul.f32 %v6660_v51, %v606_v18  ;;  %v2159_v29 = vpack.c.bf16 %v2146_v14, %v2145_v10  ;;  %v2008_v17 = vadd.f32 %v1992_v44, %v1957_v45  ;;  %v4551_v10 = vld [vmem:[#allocation6 + $0x48] sm:$0xff]   ;;  %4375 = vmatpush3.bf16.msra.mxu1 %v4550_v3  ;;  %v1736_v38 = vld [vmem:[#allocation2 + $0x68] sm:$0xff] }
 0x19e   : > { %vm6668_vm5 = vmand %vm6609_vm14, %vm9092_vm6  ;;  %v2009_v6 = vadd.f32 %v1993_v9, %v1958_v60  ;;  %v733_v56 = vmul.f32 %v6660_v51, %v4314_v58  ;;  %vm9095_vm15 = vcmp.ge.f32.partialorder %v5637_v0, 1.0  ;;  %vm1362_vm14 = vcmp.ge.f32.partialorder %v5659_v37, 1.0  ;;  %v6713_v58 = vld [vmem:[#allocation2 + $0x57] sm:$0xff]  ;;  %v6723_v60 = vld [vmem:[#allocation2 + $0x5f] sm:$0xff]  ;;  %4376 = vmatprep.subr.bf16.mxu1 %v4551_v10 }
 0x19f   : > { %vm6678_vm3 = vmand %vm6641_vm13, %vm9095_vm15  ;;  %v783_v18 = vadd.f32 %v6683_v42, %v730_v47  ;;  %v781_v8 = vadd.f32 %v6683_v42, %v728_v16  ;;  %vm9098_vm6 = vcmp.le.f32.partialorder %v5633_v19, 16.0  ;;  %vm9101_vm13 = vcmp.lt.s32.totalorder %v5143_v54, 4  ;;  %4352 = vmatprep.mubr.bf16.mxu1 %v2159_v29  ;;  %v6729_v47 = vld [vmem:[#allocation2 + $0x69] sm:$0xff] }
 0x1a0   : > { %vm6691_vm2 = vmand %vm6621_vm12, %vm9098_vm6  ;;  %v1753_v49 = vsel %vm9101_vm13, %v1734_v57, 0.0  ;;  %v2045_v22 = vadd.f32 %v2029_v5, %v2008_v17  ;;  %v2046_v44 = vadd.f32 %v2030_v61, %v2009_v6  ;;  %v786_v24 = vadd.f32 %v6683_v42, %v733_v56  ;;  %v4552_v16 = vld [vmem:[#allocation6 + $0x40] sm:$0xff]   ;;  %v619_v56 = vpop.f32.mrf.mxu0  ;;  %v6788_v30 = vld [vmem:[#allocation6 + $0x78] sm:$0xff]  }
 0x1a1   : > { %vm9102_vm15 = vmmov %vm9101_vm13  ;;  %v1804_v19 = vsel %vm9045_vm7, %v1785_v62, 0.0  ;;  %v831_v28 = vmax.f32 %v783_v18, 0.0  ;;  %v829_v41 = vmax.f32 %v781_v8, 0.0  ;;  %vm9103_vm12 = vcmp.le.f32.partialorder %v5637_v0, 16.0  ;;  %v6742_v29 = vld [vmem:[#allocation2 + $0x6a] sm:$0xff]  ;;  %v6744_v17 = vld [vmem:[#allocation2 + $0x72] sm:$0xff]  ;;  %4377 = vmatpush3.bf16.msra.mxu1 %v4551_v10 }
 0x1a2   : > { %v1754_v13 = vsel %vm9102_vm15, %v1735_v26, 0.0  ;;  %vm6706_vm6 = vmand %vm6678_vm3, %vm9103_vm12  ;;  %v1805_v2 = vsel %vm9045_vm7, %v1786_v20, 0.0  ;;  %v1820_v25 = vadd.f32 %v1804_v19, %v1753_v49  ;;  %vm1458_vm13 = vcmp.le.f32.partialorder %v5659_v37, 16.0  ;;  %v6746_v6 = vld [vmem:[#allocation2 + $0x6b] sm:$0xff]  ;;  %v6756_v18 = vld [vmem:[#allocation2 + $0x73] sm:$0xff]  ;;  %4378 = vmatprep.subr.bf16.mxu1 %v4552_v16 }
 0x1a3   : > { %v2096_v27 = vadd.f32 %v2080_v33, %v2045_v22  ;;  %v2097_v9 = vadd.f32 %v2081_v12, %v2046_v44  ;;  %v834_v5 = vmax.f32 %v786_v24, 0.0  ;;  %v1821_v61 = vadd.f32 %v1805_v2, %v1754_v13  ;;  %v1737_v22 = vld [vmem:[#allocation2 + $0x70] sm:$0xff]  ;;  %v1788_v24 = vld [vmem:[#allocation2 + $0x5d] sm:$0xff] }
 0x1a4   : > { %v1649_v0 = vsel %vm6668_vm5, %v831_v28, 0.0  ;;  %v1647_v53 = vsel %vm6691_vm2, %v829_v41, 0.0  ;;  %v1855_v14 = vsel %vm9052_vm8, %v1836_v34, 0.0  ;;  %v1856_v45 = vsel %vm9052_vm8, %v1837_v40, 0.0  ;;  %v1787_v44 = vld [vmem:[#allocation2 + $0x55] sm:$0xff]  ;;  %v9110_v19 = vld [vmem:[#allocation16_spill] sm:$0xff] }
 0x1a5   : > { %vm1269_vm15 = vcmp.le.f32.partialorder %v5499_v43, 16.0  ;;  %v2147_v33 = vadd.f32 %v2131_v7, %v2096_v27  ;;  %v2148_v12 = vadd.f32 %v2132_v36, %v2097_v9  ;;  %1703 = vst [vmem:[#allocation2 + $0xf0] sm:$0xff] %v1649_v0  ;;  %1701 = vst [vmem:[#allocation2 + $0xe0] sm:$0xff] %v1647_v53  ;;  %v1652_v57 = vsel %vm6706_vm6, %v834_v5, 0.0  ;;  %v9111_v41 = vld [vmem:[#allocation52_spill] sm:$0xff]  ;;  %v1838_v5 = vld [vmem:[#allocation2 + $0x56] sm:$0xff]  ;;  %v6804_v0 = vpop.f32.mrf.mxu0  ;;  %4379 = vmatpush3.bf16.msra.mxu1 %v4552_v16 }
 0x1a6   : > { %v1871_v26 = vadd.f32 %v1855_v14, %v1820_v25  ;;  %1706 = vst [vmem:[#allocation2 + $0x108] sm:$0xff] %v1652_v57  ;;  %v1872_v62 = vadd.f32 %v1856_v45, %v1821_v61  ;;  %v1906_v3 = vsel %vm9064_vm0, %v6556_v55, 0.0  ;;  %v1907_v7 = vsel %vm9064_vm0, %v6558_v15, 0.0  ;;  %v1839_v61 = vld [vmem:[#allocation2 + $0x5e] sm:$0xff]  ;;  %v9115_v53 = vld [vmem:[#allocation53_spill] sm:$0xff]  ;;  %4396 = vmatprep.subr.bf16.mxu1 %v6788_v30 }
 0x1a7   : > { %v1943_v36 = vsel %vm9056_vm11, %v6713_v58, 0.0  ;;  %v2160_v55 = vpack.c.bf16 %v2148_v12, %v2147_v33  ;;  %v1944_v15 = vsel %vm9056_vm11, %v6723_v60, 0.0  ;;  %v1994_v20 = vsel %vm9066_vm10, %v6586_v50, 0.0 }
 0x1a8   : > { %v1922_v4 = vadd.f32 %v1906_v3, %v1871_v26  ;;  %vm9106_vm12 = vcmp.le.f32.partialorder %v9091_v63, 16.0  ;;  %vm9107_vm6 = vcmp.ge.f32.partialorder %v9091_v63, 1.0  ;;  %v1923_v49 = vadd.f32 %v1907_v7, %v1872_v62  ;;  %v6815_v7 = vld [vmem:[#allocation2 + $0x67] sm:$0xff] }
 0x1a9   : > { %vm6762_vm3 = vmand %vm9107_vm6, %vm9106_vm12  ;;  %v1995_v50 = vsel %vm9066_vm10, %v6588_v39, 0.0  ;;  %v2031_v13 = vsel %vm6180_vm1, %v6729_v47, 0.0  ;;  %v2032_v63 = vsel %vm6180_vm1, %v6731_v35, 0.0  ;;  %4353 = vmatmul.mubr.bf16.gmra.mxu1 %v2160_v55  ;;  %v2082_v39 = vsel %vm6194_vm9, %v6742_v29, 0.0 }
 0x1aa   : > { %v1959_v34 = vadd.f32 %v1943_v36, %v1922_v4  ;;  %v2083_v40 = vsel %vm6194_vm9, %v6744_v17, 0.0  ;;  %v2133_v28 = vsel %vm6221_vm4, %v6746_v6, 0.0  ;;  %v1960_v10 = vadd.f32 %v1944_v15, %v1923_v49  ;;  %vm6798_vm12 = vmand %vm6762_vm3, %vm1362_vm14  ;;  %v6817_v36 = vld [vmem:[#allocation2 + $0x6f] sm:$0xff] }
 0x1ab   : > { %v2134_v2 = vsel %vm6221_vm4, %v6756_v18, 0.0  ;;  %v731_v25 = vmul.f32 %v6660_v51, %v619_v56  ;;  %vm9114_vm6 = vcmp.lt.s32.totalorder %v5143_v54, 4  ;;  %vm1368_vm2 = vcmp.ge.f32.partialorder %v9115_v53, 1.0  ;;  %v622_v18 = vpop.f32.mrf.mxu0 }
 0x1ac   : > { %v1755_v9 = vsel %vm9114_vm6, %v1736_v38, 0.0  ;;  %v2010_v14 = vadd.f32 %v1994_v20, %v1959_v34  ;;  %vm9116_vm5 = vmmov %vm9114_vm6  ;;  %v1806_v33 = vsel %vm9045_vm7, %v1787_v44, 0.0  ;;  %v1807_v12 = vsel %vm9045_vm7, %v1788_v24, 0.0  ;;  %v6837_v20 = vld [vmem:[#allocation2 + $0x79] sm:$0xff] }
 0x1ad   : > { %v1756_v45 = vsel %vm9116_vm5, %v1737_v22, 0.0  ;;  %v2011_v57 = vadd.f32 %v1995_v50, %v1960_v10  ;;  %v784_v26 = vadd.f32 %v6683_v42, %v731_v25  ;;  %v1822_v62 = vadd.f32 %v1806_v33, %v1755_v9  ;;  %vm6824_vm5 = vmand %vm6798_vm12, %vm1458_vm13  ;;  %v6848_v50 = vld [vmem:[#allocation2 + $0x81] sm:$0xff] }
 0x1ae   : > { %v1823_v3 = vadd.f32 %v1807_v12, %v1756_v45  ;;  %v2047_v29 = vadd.f32 %v2031_v13, %v2010_v14  ;;  %v1857_v6 = vsel %vm9052_vm8, %v1838_v5, 0.0  ;;  %v1858_v56 = vsel %vm9052_vm8, %v1839_v61, 0.0  ;;  %v2065_v13 = vld [vmem:[#allocation2 + $0x7a] sm:$0xff]  ;;  %v6864_v25 = vld [vmem:[#allocation2 + $0x83] sm:$0xff] }
 0x1af   : > { %v1908_v55 = vsel %vm9064_vm0, %v6713_v58, 0.0  ;;  %v2048_v37 = vadd.f32 %v2032_v63, %v2011_v57  ;;  %v832_v16 = vmax.f32 %v784_v26, 0.0  ;;  %v1873_v4 = vadd.f32 %v1857_v6, %v1822_v62  ;;  %v6862_v10 = vld [vmem:[#allocation2 + $0x7b] sm:$0xff]  ;;  %v1789_v62 = vld [vmem:[#allocation2 + $0x65] sm:$0xff] }
 0x1b0   : > { %v1874_v15 = vadd.f32 %v1858_v56, %v1823_v3  ;;  %v2098_v8 = vadd.f32 %v2082_v39, %v2047_v29  ;;  %v1909_v38 = vsel %vm9064_vm0, %v6723_v60, 0.0  ;;  %v1945_v58 = vsel %vm9056_vm11, %v6815_v7, 0.0  ;;  %v9122_v60 = vld [vmem:[#allocation48_spill] sm:$0xff]  ;;  %v2066_v39 = vld [vmem:[#allocation2 + $0x82] sm:$0xff] }
 0x1b1   : > { %v1946_v49 = vsel %vm9056_vm11, %v6817_v36, 0.0  ;;  %vm9119_vm13 = vcmp.ge.f32.partialorder %v5499_v43, 1.0  ;;  %v2099_v22 = vadd.f32 %v2083_v40, %v2048_v37  ;;  %v1650_v44 = vsel %vm6824_vm5, %v832_v16, 0.0  ;;  %v1739_v33 = vld [vmem:[#allocation2 + $0x80] sm:$0xff]  ;;  %v9137_v37 = vld [vmem:[#allocation21_spill] sm:$0xff] }
 0x1b2   : > { %vm6854_vm12 = vmand %vm9119_vm13, %vm1269_vm15  ;;  %v1924_v24 = vadd.f32 %v1908_v55, %v1873_v4  ;;  %v1925_v34 = vadd.f32 %v1909_v38, %v1874_v15  ;;  %v2149_v43 = vadd.f32 %v2133_v28, %v2098_v8  ;;  %1704 = vst [vmem:[#allocation2 + $0xf8] sm:$0xff] %v1650_v44  ;;  %v1996_v27 = vsel %vm9066_vm10, %v6729_v47, 0.0  ;;  %v1790_v55 = vld [vmem:[#allocation2 + $0x6d] sm:$0xff] }
 0x1b3   : > { %v1997_v40 = vsel %vm9066_vm10, %v6731_v35, 0.0  ;;  %v2033_v9 = vsel %vm6180_vm1, %v6837_v20, 0.0  ;;  %vm9123_vm15 = vcmp.le.f32.partialorder %v5522_v46, 16.0  ;;  %vm9124_vm5 = vcmp.ge.f32.partialorder %v5522_v46, 1.0  ;;  %v4318_v35 = vpop.f32.mrf.mxu0  ;;  %v1738_v46 = vld [vmem:[#allocation2 + $0x78] sm:$0xff]  ;;  %v1840_v63 = vld [vmem:[#allocation2 + $0x66] sm:$0xff] }
 0x1b4   : > { %vm6879_vm13 = vmand %vm9124_vm5, %vm9123_vm15  ;;  %v2150_v28 = vadd.f32 %v2134_v2, %v2099_v22  ;;  %v1961_v61 = vadd.f32 %v1945_v58, %v1924_v24  ;;  %v1962_v14 = vadd.f32 %v1946_v49, %v1925_v34  ;;  %v2034_v47 = vsel %vm6180_vm1, %v6848_v50, 0.0  ;;  %v1841_v22 = vld [vmem:[#allocation2 + $0x6e] sm:$0xff] }
 0x1b5   : > { %vm9127_vm6 = vcmp.le.f32.partialorder %v5524_v23, 16.0  ;;  %vm9128_vm3 = vcmp.ge.f32.partialorder %v5524_v23, 1.0  ;;  %v2084_v2 = vsel %vm6194_vm9, %v2065_v13, 0.0  ;;  %v2085_v12 = vsel %vm6194_vm9, %v2066_v39, 0.0  ;;  %v1740_v49 = vld [vmem:[#allocation2 + $0x88] sm:$0xff] }
 0x1b6   : > { %vm6890_vm14 = vmand %vm9128_vm3, %vm9127_vm6  ;;  %v2135_v57 = vsel %vm6221_vm4, %v6862_v10, 0.0  ;;  %v2136_v23 = vsel %vm6221_vm4, %v6864_v25, 0.0  ;;  %vm9131_vm3 = vcmp.ge.f32.partialorder %v9110_v19, 1.0  ;;  %v2161_v3 = vpack.c.bf16 %v2150_v28, %v2149_v43 }
 0x1b7   : > { %vm6908_vm6 = vmand %vm6854_vm12, %vm9131_vm3  ;;  %v2012_v29 = vadd.f32 %v1996_v27, %v1961_v61  ;;  %v2013_v17 = vadd.f32 %v1997_v40, %v1962_v14  ;;  %v734_v6 = vmul.f32 %v6660_v51, %v6804_v0  ;;  %vm9134_vm15 = vcmp.ge.f32.partialorder %v9111_v41, 1.0  ;;  %v9151_v40 = vld [vmem:[#allocation49_spill] sm:$0xff]  ;;  %v9152_v14 = vld [vmem:[#allocation50_spill] sm:$0xff] }
 0x1b8   : > { %vm6918_vm5 = vmand %vm6879_vm13, %vm9134_vm15  ;;  %v732_v16 = vmul.f32 %v6660_v51, %v622_v18  ;;  %v737_v4 = vmul.f32 %v6660_v51, %v4318_v35  ;;  %vm9140_vm13 = vcmp.lt.s32.totalorder %v5143_v54, 4  ;;  %4356 = vmatprep.mubr.bf16.mxu1 %v2161_v3  ;;  %vm9142_vm12 = vcmp.le.f32.partialorder %v9110_v19, 16.0  ;;  %v7002_v3 = vld [vmem:[#allocation2 + $0x91] sm:$0xff] }
 0x1b9   : > { %vm6929_vm3 = vmand %vm6890_vm14, %vm1368_vm2  ;;  %v1757_v15 = vsel %vm9140_vm13, %v1738_v46, 0.0  ;;  %v2049_v38 = vadd.f32 %v2033_v9, %v2012_v29  ;;  %v2050_v58 = vadd.f32 %v2034_v47, %v2013_v17  ;;  %v787_v18 = vadd.f32 %v6683_v42, %v734_v6  ;;  %v2067_v29 = vld [vmem:[#allocation2 + $0x8a] sm:$0xff]  ;;  %v635_v17 = vpop.f32.mrf.mxu0  ;;  %v9158_v6 = vld [vmem:[#allocation17_spill] sm:$0xff] }
 0x1ba   : > { %vm9141_vm15 = vmmov %vm9140_vm13  ;;  %v1808_v13 = vsel %vm9045_vm7, %v1789_v62, 0.0  ;;  %v785_v44 = vadd.f32 %v6683_v42, %v732_v16  ;;  %vm9145_vm2 = vcmp.le.f32.partialorder %v9111_v41, 16.0  ;;  %v790_v19 = vadd.f32 %v6683_v42, %v737_v4  ;;  %v7000_v62 = vld [vmem:[#allocation2 + $0x89] sm:$0xff]  ;;  %v2068_v4 = vld [vmem:[#allocation2 + $0x92] sm:$0xff] }
 0x1bb   : > { %v1758_v8 = vsel %vm9141_vm15, %v1739_v33, 0.0  ;;  %vm6942_vm4 = vmand %vm6908_vm6, %vm9142_vm12  ;;  %v1809_v34 = vsel %vm9045_vm7, %v1790_v55, 0.0  ;;  %v1824_v39 = vadd.f32 %v1808_v13, %v1757_v15  ;;  %vm1462_vm6 = vcmp.le.f32.partialorder %v9137_v37, 16.0  ;;  %v6981_v33 = vld [vmem:[#allocation2 + $0x7f] sm:$0xff]  ;;  %v7011_v0 = vld [vmem:[#allocation2 + $0x8b] sm:$0xff] }
 0x1bc   : > { %vm6953_vm14 = vmand %vm6918_vm5, %vm9145_vm2  ;;  %v2100_v10 = vadd.f32 %v2084_v2, %v2049_v38  ;;  %v2101_v25 = vadd.f32 %v2085_v12, %v2050_v58  ;;  %v835_v43 = vmax.f32 %v787_v18, 0.0  ;;  %vm9148_vm12 = vcmp.le.f32.partialorder %v9115_v53, 16.0  ;;  %v6975_v53 = vld [vmem:[#allocation2 + $0x77] sm:$0xff]  ;;  %v9157_v12 = vld [vmem:[#allocation51_spill] sm:$0xff] }
 0x1bd   : > { %vm6965_vm13 = vmand %vm6929_vm3, %vm9148_vm12  ;;  %v1825_v27 = vadd.f32 %v1809_v34, %v1758_v8  ;;  %v833_v9 = vmax.f32 %v785_v44, 0.0  ;;  %v838_v5 = vmax.f32 %v790_v19, 0.0  ;;  %v1859_v28 = vsel %vm9052_vm8, %v1840_v63, 0.0  ;;  %v7013_v15 = vld [vmem:[#allocation2 + $0x93] sm:$0xff]  ;;  %v1792_v19 = vld [vmem:[#allocation2 + $0x7d] sm:$0xff] }
 0x1be   : > { %v1860_v61 = vsel %vm9052_vm8, %v1841_v22, 0.0  ;;  %v2151_v47 = vadd.f32 %v2135_v57, %v2100_v10  ;;  %v2152_v35 = vadd.f32 %v2136_v23, %v2101_v25  ;;  %v1653_v45 = vsel %vm6942_vm4, %v835_v43, 0.0  ;;  %v9159_v8 = vld [vmem:[#allocation36_spill] sm:$0xff]  ;;  %v1842_v34 = vld [vmem:[#allocation2 + $0x76] sm:$0xff] }
 0x1bf   : > { %v1875_v46 = vadd.f32 %v1859_v28, %v1824_v39  ;;  %vm9153_vm12 = vcmp.le.f32.partialorder %v9122_v60, 16.0  ;;  %vm9154_vm5 = vcmp.ge.f32.partialorder %v9122_v60, 1.0  ;;  %vm1276_vm2 = vcmp.le.f32.partialorder %v9157_v12, 16.0  ;;  %1707 = vst [vmem:[#allocation2 + $0x110] sm:$0xff] %v1653_v45  ;;  %v1741_v13 = vld [vmem:[#allocation2 + $0x90] sm:$0xff] }
 0x1c0   : > { %vm6987_vm15 = vmand %vm9154_vm5, %vm9153_vm12  ;;  %v1651_v57 = vsel %vm6953_vm14, %v833_v9, 0.0  ;;  %v1656_v23 = vsel %vm6965_vm13, %v838_v5, 0.0  ;;  %v1876_v26 = vadd.f32 %v1860_v61, %v1825_v27  ;;  %v1910_v60 = vsel %vm9064_vm0, %v6815_v7, 0.0  ;;  %v9160_v39 = vld [vmem:[#allocation41_spill] sm:$0xff]  ;;  %v7050_v27 = vpop.f32.mrf.mxu0 }
 0x1c1   : > { %v2162_v56 = vpack.c.bf16 %v2152_v35, %v2151_v47  ;;  %1705 = vst [vmem:[#allocation2 + $0x100] sm:$0xff] %v1651_v57  ;;  %1710 = vst [vmem:[#allocation2 + $0x128] sm:$0xff] %v1656_v23  ;;  %v1911_v55 = vsel %vm9064_vm0, %v6817_v36, 0.0  ;;  %v1926_v16 = vadd.f32 %v1910_v60, %v1875_v46  ;;  %v1947_v7 = vsel %vm9056_vm11, %v6975_v53, 0.0  ;;  %v1843_v47 = vld [vmem:[#allocation2 + $0x7e] sm:$0xff] }
 0x1c2   : > { %v1927_v38 = vadd.f32 %v1911_v55, %v1876_v26  ;;  %v1948_v58 = vsel %vm9056_vm11, %v6981_v33, 0.0  ;;  %v1998_v36 = vsel %vm9066_vm10, %v6837_v20, 0.0  ;;  %v1999_v18 = vsel %vm9066_vm10, %v6848_v50, 0.0  ;;  %v1791_v20 = vld [vmem:[#allocation2 + $0x75] sm:$0xff] }
 0x1c3   : > { %4357 = vmatmul.mubr.bf16.gmra.mxu1 %v2162_v56  ;;  %v1963_v63 = vadd.f32 %v1947_v7, %v1926_v16  ;;  %v2035_v22 = vsel %vm6180_vm1, %v7000_v62, 0.0  ;;  %v2036_v44 = vsel %vm6180_vm1, %v7002_v3, 0.0  ;;  %v2086_v24 = vsel %vm6194_vm9, %v2067_v29, 0.0  ;;  %v7076_v56 = vld [vmem:[#allocation2 + $0x8f] sm:$0xff] }
 0x1c4   : > { %v1964_v50 = vadd.f32 %v1948_v58, %v1927_v38  ;;  %v2087_v10 = vsel %vm6194_vm9, %v2068_v4, 0.0  ;;  %vm9161_vm5 = vnez %v9001_v21  ;;  %vm9162_vm12 = vcmp.ge.f32.partialorder %v9137_v37, 1.0  ;;  %v2513_v4 = vld [vmem:[#allocation2 + $0x85] sm:$0xff] }
 0x1c5   : > { %v2137_v25 = vsel %vm9161_vm5, %v7011_v0, 0.0  ;;  %v2138_v43 = vsel %vm9161_vm5, %v7013_v15, 0.0  ;;  %vm7046_vm14 = vmand %vm6987_vm15, %vm9162_vm12  ;;  %v2014_v9 = vadd.f32 %v1998_v36, %v1963_v63  ;;  %v735_v5 = vmul.f32 %v6660_v51, %v635_v17  ;;  %v7074_v17 = vld [vmem:[#allocation2 + $0x87] sm:$0xff]  ;;  %v638_v0 = vpop.f32.mrf.mxu0 }
 0x1c6   : > { %vm9165_vm13 = vcmp.lt.s32.totalorder %v5143_v54, 4  ;;  %v2015_v35 = vadd.f32 %v1999_v18, %v1964_v50  ;;  %v1810_v45 = vsel %vm9045_vm7, %v1791_v20, 0.0  ;;  %v1811_v46 = vsel %vm9045_vm7, %v1792_v19, 0.0  ;;  %v7095_v18 = vld [vmem:[#allocation2 + $0x99] sm:$0xff] }
 0x1c7   : > { %v1759_v28 = vsel %vm9165_vm13, %v1740_v49, 0.0  ;;  %vm9166_vm4 = vmmov %vm9165_vm13  ;;  %v1861_v2 = vsel %vm9052_vm8, %v1842_v34, 0.0  ;;  %v2051_v57 = vadd.f32 %v2035_v22, %v2014_v9  ;;  %v788_v23 = vadd.f32 %v6683_v42, %v735_v5  ;;  %v2069_v22 = vld [vmem:[#allocation2 + $0x9a] sm:$0xff] }
 0x1c8   : > { %v1760_v61 = vsel %vm9166_vm4, %v1741_v13, 0.0  ;;  %vm7070_vm4 = vmand %vm7046_vm14, %vm1462_vm6  ;;  %v1826_v60 = vadd.f32 %v1810_v45, %v1759_v28  ;;  %v2052_v55 = vadd.f32 %v2036_v44, %v2015_v35  ;;  %v1862_v16 = vsel %vm9052_vm8, %v1843_v47, 0.0  ;;  %v2070_v44 = vld [vmem:[#allocation2 + $0xa2] sm:$0xff]  ;;  %v2465_v35 = vld [vmem:[#allocation2 + $0x98] sm:$0xff] }
 0x1c9   : > { %v1827_v29 = vadd.f32 %v1811_v46, %v1760_v61  ;;  %v1912_v37 = vsel %vm9064_vm0, %v6975_v53, 0.0  ;;  %v1913_v7 = vsel %vm9064_vm0, %v6981_v33, 0.0  ;;  %vm9169_vm6 = vcmp.le.f32.partialorder %v9151_v40, 16.0  ;;  %v7097_v53 = vld [vmem:[#allocation2 + $0xa1] sm:$0xff]  ;;  %v2563_v5 = vld [vmem:[#allocation2 + $0x96] sm:$0xff] }
 0x1ca   : > { %vm9170_vm14 = vcmp.ge.f32.partialorder %v9151_v40, 1.0  ;;  %v2102_v15 = vadd.f32 %v2086_v24, %v2051_v57  ;;  %v836_v38 = vmax.f32 %v788_v23, 0.0  ;;  %v1877_v58 = vadd.f32 %v1861_v2, %v1826_v60  ;;  %v2120_v50 = vld [vmem:[#allocation2 + $0x9b] sm:$0xff]  ;;  %v2467_v46 = vld [vmem:[#allocation2 + $0xa8] sm:$0xff] }
 0x1cb   : > { %vm7091_vm12 = vmand %vm9170_vm14, %vm9169_vm6  ;;  %v1878_v36 = vadd.f32 %v1862_v16, %v1827_v29  ;;  %vm9173_vm13 = vcmp.le.f32.partialorder %v9152_v14, 16.0  ;;  %vm9174_vm15 = vcmp.ge.f32.partialorder %v9152_v14, 1.0  ;;  %v2103_v40 = vadd.f32 %v2087_v10, %v2052_v55  ;;  %v2121_v10 = vld [vmem:[#allocation2 + $0xa3] sm:$0xff] }
 0x1cc   : > { %vm7103_vm3 = vmand %vm9174_vm15, %vm9173_vm13  ;;  %v1949_v49 = vsel %vm9056_vm11, %v7074_v17, 0.0  ;;  %v1950_v13 = vsel %vm9056_vm11, %v7076_v56, 0.0  ;;  %v2000_v63 = vsel %vm9066_vm10, %v7000_v62, 0.0  ;;  %vm9177_vm15 = vcmp.ge.f32.partialorder %v9157_v12, 1.0  ;;  %v2466_v45 = vld [vmem:[#allocation2 + $0xa0] sm:$0xff] }
 0x1cd   : > { %vm7120_vm13 = vmand %vm9177_vm15, %vm1276_vm2  ;;  %v2153_v24 = vadd.f32 %v2137_v25, %v2102_v15  ;;  %v1654_v20 = vsel %vm7070_vm4, %v836_v38, 0.0  ;;  %v1928_v19 = vadd.f32 %v1912_v37, %v1877_v58  ;;  %v1929_v34 = vadd.f32 %v1913_v7, %v1878_v36  ;;  %v2468_v7 = vld [vmem:[#allocation2 + $0xb0] sm:$0xff]  ;;  %v2612_v60 = vld [vmem:[#allocation2 + $0x9f] sm:$0xff] }
 0x1ce   : > { %vm9180_vm6 = vcmp.ge.f32.partialorder %v9158_v6, 1.0  ;;  %v2154_v12 = vadd.f32 %v2138_v43, %v2103_v40  ;;  %1708 = vst [vmem:[#allocation2 + $0x118] sm:$0xff] %v1654_v20  ;;  %v2001_v25 = vsel %vm9066_vm10, %v7002_v3, 0.0  ;;  %v2037_v41 = vsel %vm6180_vm1, %v7095_v18, 0.0  ;;  %v4322_v43 = vpop.f32.mrf.mxu0  ;;  %v2514_v15 = vld [vmem:[#allocation2 + $0x8d] sm:$0xff] }
 0x1cf   : > { %vm7130_vm14 = vmand %vm7091_vm12, %vm9180_vm6  ;;  %v2038_v9 = vsel %vm6180_vm1, %v7097_v53, 0.0  ;;  %vm9183_vm2 = vcmp.ge.f32.partialorder %v9159_v8, 1.0  ;;  %v1965_v28 = vadd.f32 %v1949_v49, %v1928_v19  ;;  %v1966_v61 = vadd.f32 %v1950_v13, %v1929_v34 }
 0x1d0   : > { %vm7147_vm4 = vmand %vm7103_vm3, %vm9183_vm2  ;;  %v2088_v3 = vsel %vm6194_vm9, %v2069_v22, 0.0  ;;  %v2089_v47 = vsel %vm6194_vm9, %v2070_v44, 0.0  ;;  %v2163_v2 = vpack.c.bf16 %v2154_v12, %v2153_v24  ;;  %v2139_v57 = vsel %vm9161_vm5, %v2120_v50, 0.0  ;;  %v2516_v22 = vld [vmem:[#allocation2 + $0x9d] sm:$0xff] }
 0x1d1   : > { %v2140_v23 = vsel %vm9161_vm5, %v2121_v10, 0.0  ;;  %v738_v26 = vmul.f32 %v6660_v51, %v7050_v27  ;;  %vm9186_vm3 = vcmp.ge.f32.partialorder %v9160_v39, 1.0  ;;  %v2016_v29 = vadd.f32 %v2000_v63, %v1965_v28  ;;  %v2515_v63 = vld [vmem:[#allocation2 + $0x95] sm:$0xff] }
 0x1d2   : > { %vm7165_vm12 = vmand %vm7120_vm13, %vm9186_vm3  ;;  %v2017_v55 = vadd.f32 %v2001_v25, %v1966_v61  ;;  %v736_v16 = vmul.f32 %v6660_v51, %v638_v0  ;;  %v741_v37 = vmul.f32 %v6660_v51, %v4322_v43  ;;  %4360 = vmatprep.mubr.bf16.mxu1 %v2163_v2  ;;  %vm9189_vm15 = vcmp.le.f32.partialorder %v9158_v6, 16.0  ;;  %v2564_v43 = vld [vmem:[#allocation2 + $0x9e] sm:$0xff] }
 0x1d3   : > { %v791_v27 = vadd.f32 %v6683_v42, %v738_v26  ;;  %vm7176_vm13 = vmand %vm7130_vm14, %vm9189_vm15  ;;  %vm9192_vm6 = vcmp.lt.s32.totalorder %v5143_v54, 4  ;;  %v2053_v33 = vadd.f32 %v2037_v41, %v2016_v29  ;;  %vm9195_vm5 = vcmp.le.f32.partialorder %v9159_v8, 16.0  ;;  %v2611_v26 = vld [vmem:[#allocation2 + $0x97] sm:$0xff] }
 0x1d4   : > { %v2481_v58 = vsel %vm9192_vm6, %v2465_v35, 0.0  ;;  %vm9193_vm2 = vmmov %vm9192_vm6  ;;  %v2054_v40 = vadd.f32 %v2038_v9, %v2017_v55  ;;  %v789_v49 = vadd.f32 %v6683_v42, %v736_v16  ;;  %v794_v13 = vadd.f32 %v6683_v42, %v741_v37  ;;  %v2562_v9 = vld [vmem:[#allocation2 + $0x8e] sm:$0xff] }
 0x1d5   : > { %v2482_v0 = vsel %vm9193_vm2, %v2466_v45, 0.0  ;;  %vm9194_vm3 = vmmov %vm9193_vm2  ;;  %v839_v44 = vmax.f32 %v791_v27, 0.0  ;;  %vm9198_vm15 = vcmp.le.f32.partialorder %v9160_v39, 16.0  ;;  %v2484_v8 = vsel %vm9193_vm2, %v2468_v7, 0.0  ;;  %v2561_v39 = vld [vmem:[#allocation2 + $0x86] sm:$0xff]  ;;  %v7230_v27 = vld [vmem:[#allocation2 + $0xaf] sm:$0xff] }
 0x1d6   : > { %v2483_v36 = vsel %vm9194_vm3, %v2467_v46, 0.0  ;;  %vm7191_vm14 = vmand %vm7147_vm4, %vm9195_vm5  ;;  %v2529_v24 = vsel %vm9045_vm7, %v2513_v4, 0.0  ;;  %v2530_v20 = vsel %vm9045_vm7, %v2514_v15, 0.0  ;;  %v2104_v19 = vadd.f32 %v2088_v3, %v2053_v33  ;;  %v7228_v15 = vld [vmem:[#allocation2 + $0xa7] sm:$0xff]  ;;  %v651_v33 = vpop.f32.mrf.mxu0 }
 0x1d7   : > { %vm7200_vm6 = vmand %vm7165_vm12, %vm9198_vm15  ;;  %v2105_v34 = vadd.f32 %v2089_v47, %v2054_v40  ;;  %v837_v50 = vmax.f32 %v789_v49, 0.0  ;;  %v842_v10 = vmax.f32 %v794_v13, 0.0  ;;  %v1657_v62 = vsel %vm7176_vm13, %v839_v44, 0.0  ;;  %v9201_v40 = vld [vmem:[#allocation18_spill] sm:$0xff]  ;;  %v2694_v44 = vld [vmem:[#allocation2 + $0xb1] sm:$0xff] }
 0x1d8   : > { %v2531_v12 = vsel %vm9045_vm7, %v2515_v63, 0.0  ;;  %v2532_v25 = vsel %vm9045_vm7, %v2516_v22, 0.0  ;;  %v2545_v41 = vadd.f32 %v2529_v24, %v2481_v58  ;;  %v2155_v28 = vadd.f32 %v2139_v57, %v2104_v19  ;;  %1711 = vst [vmem:[#allocation2 + $0x130] sm:$0xff] %v1657_v62  ;;  %v2693_v22 = vld [vmem:[#allocation2 + $0xa9] sm:$0xff] }
 0x1d9   : > { %v2156_v61 = vadd.f32 %v2140_v23, %v2105_v34  ;;  %v1655_v3 = vsel %vm7191_vm14, %v837_v50, 0.0  ;;  %v1660_v47 = vsel %vm7200_vm6, %v842_v10, 0.0  ;;  %v2546_v35 = vadd.f32 %v2530_v20, %v2482_v0  ;;  %v7253_v50 = vld [vmem:[#allocation2 + $0xb9] sm:$0xff]  ;;  %v7255_v10 = vld [vmem:[#allocation2 + $0xc1] sm:$0xff] }
 0x1da   : > { %1709 = vst [vmem:[#allocation2 + $0x120] sm:$0xff] %v1655_v3  ;;  %1714 = vst [vmem:[#allocation2 + $0x148] sm:$0xff] %v1660_v47  ;;  %v2547_v45 = vadd.f32 %v2531_v12, %v2483_v36  ;;  %v2548_v46 = vadd.f32 %v2532_v25, %v2484_v8  ;;  %v2577_v2 = vsel %vm9052_vm8, %v2561_v39, 0.0  ;;  %v2578_v57 = vsel %vm9052_vm8, %v2562_v9, 0.0  ;;  %v4323_v9 = vpop.f32.mrf.mxu0  ;;  %v2774_v3 = vld [vmem:[#allocation2 + $0xb2] sm:$0xff] }
 0x1db   : > { %v2164_v29 = vpack.c.bf16 %v2156_v61, %v2155_v28  ;;  %v2579_v23 = vsel %vm9052_vm8, %v2563_v5, 0.0  ;;  %v2580_v55 = vsel %vm9052_vm8, %v2564_v43, 0.0  ;;  %v2593_v16 = vadd.f32 %v2577_v2, %v2545_v41  ;;  %v2773_v41 = vld [vmem:[#allocation2 + $0xaa] sm:$0xff] }
 0x1dc   : > { %v2594_v37 = vadd.f32 %v2578_v57, %v2546_v35  ;;  %v2595_v7 = vadd.f32 %v2579_v23, %v2547_v45  ;;  %v2596_v4 = vadd.f32 %v2580_v55, %v2548_v46  ;;  %v2625_v38 = vsel %vm9064_vm0, %v7074_v17, 0.0  ;;  %v2821_v47 = vld [vmem:[#allocation2 + $0xab] sm:$0xff]  ;;  %v2822_v35 = vld [vmem:[#allocation2 + $0xb3] sm:$0xff]  ;;  %v2776_v23 = vld [vmem:[#allocation2 + $0xc2] sm:$0xff] }
 0x1dd   : > { %4361 = vmatmul.mubr.bf16.gmra.mxu1 %v2164_v29  ;;  %v2626_v58 = vsel %vm9064_vm0, %v7076_v56, 0.0  ;;  %v2627_v0 = vsel %vm9064_vm0, %v2611_v26, 0.0  ;;  %v2628_v36 = vsel %vm9064_vm0, %v2612_v60, 0.0  ;;  %vm1226_vm5 = vcmp.ge.f32.partialorder %v9201_v40, 1.0  ;;  %v2775_v57 = vld [vmem:[#allocation2 + $0xba] sm:$0xff] }
 0x1de   : > { %v2641_v49 = vadd.f32 %v2625_v38, %v2593_v16  ;;  %v2642_v6 = vadd.f32 %v2626_v58, %v2594_v37  ;;  %v2643_v13 = vadd.f32 %v2627_v0, %v2595_v7  ;;  %v2644_v63 = vadd.f32 %v2628_v36, %v2596_v4  ;;  %v2823_v55 = vld [vmem:[#allocation2 + $0xbb] sm:$0xff]  ;;  %v654_v38 = vpop.f32.mrf.mxu0 }
 0x1df   : > { %v2659_v17 = vsel %vm9056_vm11, %v2611_v26, 0.0  ;;  %v2660_v56 = vsel %vm9056_vm11, %v2612_v60, 0.0  ;;  %v2661_v14 = vsel %vm9056_vm11, %v7228_v15, 0.0  ;;  %v2662_v8 = vsel %vm9056_vm11, %v7230_v27, 0.0 }
 0x1e0   : > { %v2675_v24 = vadd.f32 %v2659_v17, %v2641_v49  ;;  %v2676_v20 = vadd.f32 %v2660_v56, %v2642_v6  ;;  %v2677_v19 = vadd.f32 %v2661_v14, %v2643_v13  ;;  %v2678_v34 = vadd.f32 %v2662_v8, %v2644_v63  ;;  %v9203_v49 = vld [vmem:[#allocation15_spill] sm:$0xff]  ;;  %v9204_v6 = vld [vmem:[#allocation54_spill] sm:$0xff] }
 0x1e1   : > { %v2707_v39 = vsel %vm9066_vm10, %v7095_v18, 0.0  ;;  %v2708_v62 = vsel %vm9066_vm10, %v7097_v53, 0.0  ;;  %v2709_v12 = vsel %vm9066_vm10, %v2693_v22, 0.0  ;;  %v2710_v25 = vsel %vm9066_vm10, %v2694_v44, 0.0 }
 0x1e2   : > { %v2723_v5 = vadd.f32 %v2707_v39, %v2675_v24  ;;  %v2724_v43 = vadd.f32 %v2708_v62, %v2676_v20  ;;  %v2725_v28 = vadd.f32 %v2709_v12, %v2677_v19  ;;  %v2726_v61 = vadd.f32 %v2710_v25, %v2678_v34  ;;  %v4326_v34 = vpop.f32.mrf.mxu0  ;;  %v9206_v25 = vld [vmem:[#allocation42_spill] sm:$0xff] }
 0x1e3   : > { %v2741_v18 = vsel %vm6180_vm1, %v2693_v22, 0.0  ;;  %v2742_v53 = vsel %vm6180_vm1, %v2694_v44, 0.0  ;;  %v2743_v45 = vsel %vm6180_vm1, %v7253_v50, 0.0  ;;  %v2744_v46 = vsel %vm6180_vm1, %v7255_v10, 0.0  ;;  %v2824_v22 = vld [vmem:[#allocation2 + $0xc3] sm:$0xff] }
 0x1e4   : > { %v2757_v2 = vadd.f32 %v2741_v18, %v2723_v5  ;;  %v2758_v26 = vadd.f32 %v2742_v53, %v2724_v43  ;;  %v2759_v60 = vadd.f32 %v2743_v45, %v2725_v28  ;;  %v2760_v29 = vadd.f32 %v2744_v46, %v2726_v61  ;;  %v9207_v28 = vld [vmem:[#allocation13_spill] sm:$0xff]  ;;  %v4554_v18 = vld [vmem:[#allocation6 + $0x70] sm:$0xff]  }
 0x1e5   : > { %v2789_v16 = vsel %vm6194_vm9, %v2773_v41, 0.0  ;;  %v2790_v37 = vsel %vm6194_vm9, %v2774_v3, 0.0  ;;  %vm9202_vm4 = vnez %v9001_v21  ;;  %v739_v36 = vmul.f32 %v6660_v51, %v651_v33 }
 0x1e6   : > { %v2837_v7 = vsel %vm9202_vm4, %v2821_v47, 0.0  ;;  %v2838_v4 = vsel %vm9202_vm4, %v2822_v35, 0.0  ;;  %v2805_v58 = vadd.f32 %v2789_v16, %v2757_v2  ;;  %v2806_v0 = vadd.f32 %v2790_v37, %v2758_v26  ;;  %v2469_v26 = vld [vmem:[#allocation2 + $0xb8] sm:$0xff] }
 0x1e7   : > { %v9205_v13 = vcvt.s32.f32 %v9204_v6  ;;  %vm1274_vm12 = vcmp.le.f32.partialorder %v9201_v40, 16.0  ;;  %v2791_v44 = vsel %vm6194_vm9, %v2775_v57, 0.0  ;;  %v2792_v17 = vsel %vm6194_vm9, %v2776_v23, 0.0  ;;  %v2565_v6 = vld [vmem:[#allocation2 + $0xa6] sm:$0xff] }
 0x1e8   : > { %v2839_v56 = vsel %vm9202_vm4, %v2823_v55, 0.0  ;;  %v2853_v14 = vadd.f32 %v2837_v7, %v2805_v58  ;;  %v2854_v8 = vadd.f32 %v2838_v4, %v2806_v0  ;;  %v792_v33 = vadd.f32 %v6683_v42, %v739_v36  ;;  %vm1322_vm13 = vmand %vm1226_vm5, %vm1274_vm12  ;;  %v2518_v55 = vld [vmem:[#allocation2 + $0xad] sm:$0xff]  ;;  %v9208_v4 = vld [vmem:[#allocation14_spill] sm:$0xff] }
 0x1e9   : > { %v1178_v63 = vsub.f32 %v9205_v13, %v9203_v49  ;;  %v2807_v24 = vadd.f32 %v2791_v44, %v2759_v60  ;;  %v2808_v20 = vadd.f32 %v2792_v17, %v2760_v29  ;;  %v2840_v19 = vsel %vm9202_vm4, %v2824_v22, 0.0  ;;  %v2470_v60 = vld [vmem:[#allocation2 + $0xc0] sm:$0xff]  ;;  %v2566_v13 = vld [vmem:[#allocation2 + $0xae] sm:$0xff]  ;;  %v4555_v17 = vld [vmem:[#allocation6 + $0x68] sm:$0xff]  }
 0x1ea   : > { %v2869_v39 = vpack.c.bf16 %v2854_v8, %v2853_v14  ;;  %v840_v62 = vmax.f32 %v792_v33, 0.0  ;;  %v742_v12 = vmul.f32 %v6660_v51, %v4323_v9  ;;  %v1037_v41 = vmul.f32 0.055555556, %v9206_v25  ;;  %v2517_v29 = vld [vmem:[#allocation2 + $0xa5] sm:$0xff] }
 0x1eb   : > { %vm1370_vm3 = vcmp.ge.f32.partialorder %v1178_v63, 1.0  ;;  %vm1466_vm15 = vcmp.le.f32.partialorder %v1178_v63, 16.0  ;;  %v2855_v5 = vadd.f32 %v2839_v56, %v2807_v24  ;;  %v2856_v43 = vadd.f32 %v2840_v19, %v2808_v20  ;;  %v7345_v19 = vld [vmem:[#allocation2 + $0xb7] sm:$0xff] }
 0x1ec   : > { %vm1418_vm14 = vmand %vm1322_vm13, %vm1370_vm3  ;;  %v740_v40 = vmul.f32 %v6660_v51, %v654_v38  ;;  %v7305_v61 = vadd.s32 296, %v9207_v28  ;;  %4380 = vmatprep.mubr.bf16.mxu1 %v2869_v39  ;;  %v795_v47 = vadd.f32 %v6683_v42, %v742_v12  ;;  %v1085_v35 = vfloor.f32 %v1037_v41 }
 0x1ed   : > { %vm1514_vm6 = vmand %vm1418_vm14, %vm1466_vm15  ;;  %v745_v53 = vmul.f32 %v6660_v51, %v4326_v34  ;;  %v2870_v45 = vpack.c.bf16 %v2856_v43, %v2855_v5  ;;  %v7314_v2 = vadd.s32 336, %v9207_v28  ;;  %v9209_v38 = vcvt.s32.f32 %v9208_v4  ;;  %v4556_v43 = vld [vmem:[#allocation6 + $0x60] sm:$0xff]   ;;  %v4557_v4 = vld [vmem:[#allocation6 + $0x58] sm:$0xff]  }
 0x1ee   : > { %v1658_v3 = vsel %vm1514_vm6, %v840_v62, 0.0  ;;  %v7310_v9 = vadd.f32 %v6683_v42, %v740_v40  ;;  %v938_v46 = vcvt.s32.f32 %v7305_v61  ;;  %v843_v57 = vmax.f32 %v795_v47, 0.0  ;;  %v7347_v62 = vld [vmem:[#allocation2 + $0xbf] sm:$0xff] }
 0x1ef   : > { %1712 = vst [vmem:[#allocation2 + $0x138] sm:$0xff] %v1658_v3  ;;  %v1133_v23 = vmul.f32 18.0, %v1085_v35  ;;  %vm1229_vm2 = vcmp.ge.f32.partialorder %v1085_v35, 1.0  ;;  %vm1277_vm5 = vcmp.le.f32.partialorder %v1085_v35, 16.0  ;;  %4381 = vmatmul.mubr.bf16.vlgmr.msra.gmra.mxu1 %v2870_v45  ;;  %v7318_v37 = vadd.f32 %v6683_v42, %v745_v53  ;;  %v7358_v35 = vld [vmem:[#allocation2 + $0xc9] sm:$0xff]  ;;  %v7367_v53 = vld [vmem:[#allocation2 + $0xd1] sm:$0xff] }
 0x1f0   : > { %v841_v51 = vmax.f32 %v7310_v9, 0.0  ;;  %v986_v16 = vadd.f32 0.5, %v938_v46  ;;  %v943_v7 = vcvt.s32.f32 %v7314_v2  ;;  %4397 = vmatpush3.bf16.msra.mxu1 %v6788_v30  ;;  %vm7324_vm12 = vmand %vm1229_vm2, %vm1277_vm5  ;;  %vm9212_vm13 = vcmp.lt.s32.totalorder %v5143_v54, 4 }
 0x1f1   : > { %v1181_v58 = vsub.f32 %v9209_v38, %v1133_v23  ;;  %v2485_v36 = vsel %vm9212_vm13, %v2469_v26, 0.0  ;;  %vm9213_vm3 = vmmov %vm9212_vm13  ;;  %v2533_v42 = vsel %vm9045_vm7, %v2517_v29, 0.0  ;;  %4398 = vmatprep.subr.bf16.mxu1 %v4554_v18  ;;  %v846_v63 = vmax.f32 %v7318_v37, 0.0  ;;  %v2825_v23 = vld [vmem:[#allocation2 + $0xcb] sm:$0xff] }
 0x1f2   : > { %v2486_v49 = vsel %vm9213_vm3, %v2470_v60, 0.0  ;;  %v1035_v30 = vmul.f32 0.055555556, %v986_v16  ;;  %v991_v22 = vadd.f32 0.5, %v943_v7  ;;  %v2534_v44 = vsel %vm9045_vm7, %v2518_v55, 0.0  ;;  %v2777_v60 = vld [vmem:[#allocation2 + $0xca] sm:$0xff] }
 0x1f3   : > { %vm1373_vm14 = vcmp.ge.f32.partialorder %v1181_v58, 1.0  ;;  %vm1469_vm15 = vcmp.le.f32.partialorder %v1181_v58, 16.0  ;;  %v2549_v56 = vadd.f32 %v2533_v42, %v2485_v36  ;;  %v2550_v14 = vadd.f32 %v2534_v44, %v2486_v49  ;;  %v2826_v55 = vld [vmem:[#allocation2 + $0xd3] sm:$0xff]  ;;  %v667_v49 = vpop.f32.mrf.mxu0  ;;  %v2471_v42 = vld [vmem:[#allocation2 + $0xc8] sm:$0xff]  ;;  %v2520_v44 = vld [vmem:[#allocation2 + $0xbd] sm:$0xff] }
 0x1f4   : > { %vm1421_vm6 = vmand %vm7324_vm12, %vm1373_vm14  ;;  %v1083_v8 = vfloor.f32 %v1035_v30  ;;  %v1040_v33 = vmul.f32 0.055555556, %v991_v22  ;;  %v2581_v24 = vsel %vm9052_vm8, %v2565_v6, 0.0  ;;  %v2582_v20 = vsel %vm9052_vm8, %v2566_v13, 0.0  ;;  %4399 = vmatpush3.bf16.msra.mxu1 %v4554_v18  ;;  %v2472_v6 = vld [vmem:[#allocation2 + $0xd0] sm:$0xff] }
 0x1f5   : > { %vm1517_vm2 = vmand %vm1421_vm6, %vm1469_vm15  ;;  %v2597_v34 = vadd.f32 %v2581_v24, %v2549_v56  ;;  %v2598_v39 = vadd.f32 %v2582_v20, %v2550_v14  ;;  %v2629_v12 = vsel %vm9064_vm0, %v7228_v15, 0.0  ;;  %v2630_v25 = vsel %vm9064_vm0, %v7230_v27, 0.0  ;;  %4400 = vmatprep.subr.bf16.mxu1 %v4555_v17  ;;  %v2519_v22 = vld [vmem:[#allocation2 + $0xb5] sm:$0xff]  ;;  %v4558_v20 = vld [vmem:[#allocation6 + $0x50] sm:$0xff]  }
 0x1f6   : > { %v1661_v41 = vsel %vm1517_vm2, %v843_v57, 0.0  ;;  %v1131_v5 = vmul.f32 18.0, %v1083_v8  ;;  %vm1227_vm5 = vcmp.ge.f32.partialorder %v1083_v8, 1.0  ;;  %vm1275_vm12 = vcmp.le.f32.partialorder %v1083_v8, 16.0  ;;  %v2778_v57 = vld [vmem:[#allocation2 + $0xd2] sm:$0xff] }
 0x1f7   : > { %1715 = vst [vmem:[#allocation2 + $0x150] sm:$0xff] %v1661_v41  ;;  %v1088_v40 = vfloor.f32 %v1040_v33  ;;  %v2645_v61 = vadd.f32 %v2629_v12, %v2597_v34  ;;  %v2646_v3 = vadd.f32 %v2630_v25, %v2598_v39  ;;  %v2663_v47 = vsel %vm9056_vm11, %v7345_v19, 0.0  ;;  %vm7360_vm13 = vmand %vm1227_vm5, %vm1275_vm12  ;;  %v7401_v8 = vld [vmem:[#allocation8] ss:$0 sm:$0xff]  ;;  %v2568_v41 = vld [vmem:[#allocation2 + $0xbe] sm:$0xff] }
 0x1f8   : > { %v1179_v15 = vsub.f32 %v938_v46, %v1131_v5  ;;  %v2664_v27 = vsel %vm9056_vm11, %v7347_v62, 0.0  ;;  %v2711_v45 = vsel %vm9066_vm10, %v7253_v50, 0.0  ;;  %v2712_v26 = vsel %vm9066_vm10, %v7255_v10, 0.0  ;;  %4401 = vmatpush3.bf16.msra.mxu1 %v4555_v17  ;;  %v4327_v5 = vpop.f32.mrf.mxu0 }
 0x1f9   : > { %v1136_v46 = vmul.f32 18.0, %v1088_v40  ;;  %vm1232_vm3 = vcmp.ge.f32.partialorder %v1088_v40, 1.0  ;;  %vm1280_vm14 = vcmp.le.f32.partialorder %v1088_v40, 16.0  ;;  %v2679_v29 = vadd.f32 %v2663_v47, %v2645_v61  ;;  %4402 = vmatprep.subr.bf16.mxu1 %v4556_v43  ;;  %v7417_v61 = vld [vmem:[#allocation8 + $0x1] ss:$0 sm:$0xff] }
 0x1fa   : > { %vm1371_vm15 = vcmp.ge.f32.partialorder %v1179_v15, 1.0  ;;  %vm1467_vm6 = vcmp.le.f32.partialorder %v1179_v15, 16.0  ;;  %vm7375_vm2 = vmand %vm1232_vm3, %vm1280_vm14  ;;  %v2680_v50 = vadd.f32 %v2664_v27, %v2646_v3  ;;  %v2745_v10 = vsel %vm6180_vm1, %v7358_v35, 0.0 }
 0x1fb   : > { %vm1419_vm5 = vmand %vm7360_vm13, %vm1371_vm15  ;;  %v1184_v38 = vsub.f32 %v943_v7, %v1136_v46  ;;  %v2727_v58 = vadd.f32 %v2711_v45, %v2679_v29  ;;  %v2746_v0 = vsel %vm6180_vm1, %v7367_v53, 0.0  ;;  %v2793_v36 = vsel %vm6194_vm9, %v2777_v60, 0.0  ;;  %v7427_v60 = vld [vmem:[#allocation2 + $0xcf] sm:$0xff] }
 0x1fc   : > { %vm1515_vm12 = vmand %vm1419_vm5, %vm1467_vm6  ;;  %v2728_v13 = vadd.f32 %v2712_v26, %v2680_v50  ;;  %v2794_v30 = vsel %vm6194_vm9, %v2778_v57, 0.0  ;;  %v2841_v2 = vsel %vm9202_vm4, %v2825_v23, 0.0  ;;  %v2842_v7 = vsel %vm9202_vm4, %v2826_v55, 0.0  ;;  %4403 = vmatpush3.bf16.msra.mxu1 %v4556_v43  ;;  %v7425_v26 = vld [vmem:[#allocation2 + $0xc7] sm:$0xff]  ;;  %v4559_v57 = vld [vmem:[#allocation6 + $0x48] sm:$0xff]  }
 0x1fd   : > { %v1659_v17 = vsel %vm1515_vm12, %v841_v51, 0.0  ;;  %vm1376_vm13 = vcmp.ge.f32.partialorder %v1184_v38, 1.0  ;;  %vm1472_vm3 = vcmp.le.f32.partialorder %v1184_v38, 16.0  ;;  %v2761_v56 = vadd.f32 %v2745_v10, %v2727_v58  ;;  %v2567_v51 = vld [vmem:[#allocation2 + $0xb6] sm:$0xff]  ;;  %4404 = vmatprep.subr.bf16.mxu1 %v4557_v4  ;;  %v670_v58 = vpop.f32.mrf.mxu0 }
 0x1fe   : > { %1713 = vst [vmem:[#allocation2 + $0x140] sm:$0xff] %v1659_v17  ;;  %vm1424_vm14 = vmand %vm7375_vm2, %vm1376_vm13  ;;  %v2762_v14 = vadd.f32 %v2746_v0, %v2728_v13  ;;  %v743_v33 = vmul.f32 %v7401_v8, %v667_v49  ;;  %v7405_v24 = vadd.s32 320, %v9207_v28  ;;  %vm9218_vm15 = vcmp.lt.s32.totalorder %v5143_v54, 4  ;;  %v7438_v10 = vld [vmem:[#allocation2 + $0xd9] sm:$0xff] }
 0x1ff   : > { %v2487_v9 = vsel %vm9218_vm15, %v2471_v42, 0.0  ;;  %vm1520_vm6 = vmand %vm1424_vm14, %vm1472_vm3  ;;  %v2809_v34 = vadd.f32 %v2793_v36, %v2761_v56  ;;  %v2535_v12 = vsel %vm9045_vm7, %v2519_v22, 0.0  ;;  %v2536_v25 = vsel %vm9045_vm7, %v2520_v44, 0.0  ;;  %v2779_v38 = vld [vmem:[#allocation2 + $0xda] sm:$0xff]  ;;  %v2780_v42 = vld [vmem:[#allocation2 + $0xe2] sm:$0xff] }
 0x200   : > { %vm9219_vm5 = vmmov %vm9218_vm15  ;;  %v1664_v43 = vsel %vm1520_vm6, %v846_v63, 0.0  ;;  %v2810_v40 = vadd.f32 %v2794_v30, %v2762_v14  ;;  %v7420_v3 = vadd.f32 %v7417_v61, %v743_v33  ;;  %v941_v47 = vcvt.s32.f32 %v7405_v24  ;;  %4405 = vmatpush3.bf16.msra.mxu1 %v4557_v4  ;;  %v7440_v4 = vld [vmem:[#allocation2 + $0xe1] sm:$0xff] }
 0x201   : > { %v2488_v39 = vsel %vm9219_vm5, %v2472_v6, 0.0  ;;  %1718 = vst [vmem:[#allocation2 + $0x168] sm:$0xff] %v1664_v43  ;;  %v2857_v15 = vadd.f32 %v2841_v2, %v2809_v34  ;;  %v2551_v18 = vadd.f32 %v2535_v12, %v2487_v9  ;;  %v2583_v45 = vsel %vm9052_vm8, %v2567_v51, 0.0  ;;  %4406 = vmatprep.subr.bf16.mxu1 %v4558_v20  ;;  %v2827_v6 = vld [vmem:[#allocation2 + $0xdb] sm:$0xff]  ;;  %v4330_v9 = vpop.f32.mrf.mxu0 }
 0x202   : > { %v2552_v27 = vadd.f32 %v2536_v25, %v2488_v39  ;;  %v2858_v37 = vadd.f32 %v2842_v7, %v2810_v40  ;;  %v844_v63 = vmax.f32 %v7420_v3, 0.0  ;;  %v989_v46 = vadd.f32 0.5, %v941_v47  ;;  %v2828_v7 = vld [vmem:[#allocation2 + $0xe3] sm:$0xff] }
 0x203   : > { %v2584_v29 = vsel %vm9052_vm8, %v2568_v41, 0.0  ;;  %v2599_v23 = vadd.f32 %v2583_v45, %v2551_v18  ;;  %v2631_v16 = vsel %vm9064_vm0, %v7345_v19, 0.0  ;;  %v2632_v50 = vsel %vm9064_vm0, %v7347_v62, 0.0 }
 0x204   : > { %v2600_v55 = vadd.f32 %v2584_v29, %v2552_v27  ;;  %v2871_v0 = vpack.c.bf16 %v2858_v37, %v2857_v15  ;;  %v1038_v36 = vmul.f32 0.055555556, %v989_v46  ;;  %v2665_v49 = vsel %vm9056_vm11, %v7425_v26, 0.0  ;;  %4407 = vmatpush3.bf16.msra.mxu1 %v4558_v20 }
 0x205   : > { %v2666_v19 = vsel %vm9056_vm11, %v7427_v60, 0.0  ;;  %v2647_v13 = vadd.f32 %v2631_v16, %v2599_v23  ;;  %v2713_v30 = vsel %vm9066_vm10, %v7358_v35, 0.0  ;;  %v2714_v2 = vsel %vm9066_vm10, %v7367_v53, 0.0  ;;  %4408 = vmatprep.subr.bf16.mxu1 %v4559_v57  ;;  %v4560_v35 = vld [vmem:[#allocation6 + $0x40] sm:$0xff]  }
 0x206   : > { %v2648_v62 = vadd.f32 %v2632_v50, %v2600_v55  ;;  %4384 = vmatprep.mubr.bf16.mxu1 %v2871_v0  ;;  %v1086_v22 = vfloor.f32 %v1038_v36  ;;  %v2747_v44 = vsel %vm6180_vm1, %v7438_v10, 0.0  ;;  %v2748_v17 = vsel %vm6180_vm1, %v7440_v4, 0.0  ;;  %v2473_v55 = vld [vmem:[#allocation2 + $0xd8] sm:$0xff]  ;;  %v2474_v0 = vld [vmem:[#allocation2 + $0xe0] sm:$0xff] }
 0x207   : > { %v2795_v56 = vsel %vm6194_vm9, %v2779_v38, 0.0  ;;  %v2681_v14 = vadd.f32 %v2665_v49, %v2647_v13  ;;  %v2796_v53 = vsel %vm6194_vm9, %v2780_v42, 0.0  ;;  %v2843_v24 = vsel %vm9202_vm4, %v2827_v6, 0.0  ;;  %v2521_v36 = vld [vmem:[#allocation2 + $0xc5] sm:$0xff]  ;;  %v2522_v13 = vld [vmem:[#allocation2 + $0xcd] sm:$0xff] }
 0x208   : > { %v2682_v33 = vadd.f32 %v2666_v19, %v2648_v62  ;;  %v1134_v51 = vmul.f32 18.0, %v1086_v22  ;;  %vm1230_vm2 = vcmp.ge.f32.partialorder %v1086_v22, 1.0  ;;  %vm1278_vm12 = vcmp.le.f32.partialorder %v1086_v22, 16.0  ;;  %4409 = vmatpush3.bf16.msra.mxu1 %v4559_v57 }
 0x209   : > { %v2844_v20 = vsel %vm9202_vm4, %v2828_v7, 0.0  ;;  %v2729_v34 = vadd.f32 %v2713_v30, %v2681_v14  ;;  %v746_v12 = vmul.f32 %v7401_v8, %v4327_v5  ;;  %v896_v25 = vadd.s32 344, %v9207_v28  ;;  %vm1326_vm13 = vmand %vm1230_vm2, %vm1278_vm12  ;;  %4410 = vmatprep.subr.bf16.mxu1 %v4560_v35 }
 0x20a   : > { %v2730_v39 = vadd.f32 %v2714_v2, %v2682_v33  ;;  %v1182_v41 = vsub.f32 %v941_v47, %v1134_v51  ;;  %v744_v43 = vmul.f32 %v7401_v8, %v670_v58  ;;  %v894_v40 = vadd.s32 328, %v9207_v28  ;;  %vm9220_vm2 = vmmov %vm9219_vm5  ;;  %v2569_v33 = vld [vmem:[#allocation2 + $0xc6] sm:$0xff] }
 0x20b   : > { %v749_v15 = vmul.f32 %v7401_v8, %v4330_v9  ;;  %v2763_v18 = vadd.f32 %v2747_v44, %v2729_v34  ;;  %v7474_v45 = vadd.f32 %v7417_v61, %v746_v12  ;;  %v944_v37 = vcvt.s32.f32 %v896_v25  ;;  %v7499_v34 = vld [vmem:[#allocation2 + $0xd7] sm:$0xff] }
 0x20c   : > { %v2764_v27 = vadd.f32 %v2748_v17, %v2730_v39  ;;  %vm1374_vm3 = vcmp.ge.f32.partialorder %v1182_v41, 1.0  ;;  %vm1470_vm14 = vcmp.le.f32.partialorder %v1182_v41, 16.0  ;;  %v7477_v5 = vadd.f32 %v7417_v61, %v744_v43  ;;  %4411 = vmatpush3.bf16.msra.mxu1 %v4560_v35 }
 0x20d   : > { %v942_v47 = vcvt.s32.f32 %v894_v40  ;;  %vm1422_vm15 = vmand %vm1326_vm13, %vm1374_vm3  ;;  %v2811_v46 = vadd.f32 %v2795_v56, %v2763_v18  ;;  %v847_v57 = vmax.f32 %v7474_v45, 0.0  ;;  %v992_v23 = vadd.f32 0.5, %v944_v37 }
 0x20e   : > { %v2812_v29 = vadd.f32 %v2796_v53, %v2764_v27  ;;  %vm1518_vm6 = vmand %vm1422_vm15, %vm1470_vm14  ;;  %v845_v16 = vmax.f32 %v7477_v5, 0.0  ;;  %v7482_v38 = vadd.f32 %v7417_v61, %v749_v15  ;;  %v7485_v58 = vadd.s32 368, %v9207_v28  ;;  %v2570_v53 = vld [vmem:[#allocation2 + $0xce] sm:$0xff]  ;;  %v7508_v27 = vld [vmem:[#allocation2 + $0xdf] sm:$0xff] }
 0x20f   : > { %v990_v50 = vadd.f32 0.5, %v942_v47  ;;  %v1662_v49 = vsel %vm1518_vm6, %v844_v63, 0.0  ;;  %v2859_v19 = vadd.f32 %v2843_v24, %v2811_v46  ;;  %v1041_v6 = vmul.f32 0.055555556, %v992_v23  ;;  %v7524_v23 = vld [vmem:[#allocation2 + $0xf1] sm:$0xff] }
 0x210   : > { %v2860_v42 = vadd.f32 %v2844_v20, %v2812_v29  ;;  %1716 = vst [vmem:[#allocation2 + $0x158] sm:$0xff] %v1662_v49  ;;  %v850_v30 = vmax.f32 %v7482_v38, 0.0  ;;  %v947_v2 = vcvt.s32.f32 %v7485_v58  ;;  %v2489_v7 = vsel %vm9219_vm5, %v2473_v55, 0.0  ;;  %v7522_v29 = vld [vmem:[#allocation2 + $0xe9] sm:$0xff] }
 0x211   : > { %v1039_v62 = vmul.f32 0.055555556, %v990_v50  ;;  %v1089_v44 = vfloor.f32 %v1041_v6  ;;  %v2490_v17 = vsel %vm9220_vm2, %v2474_v0, 0.0  ;;  %v2537_v3 = vsel %vm9045_vm7, %v2521_v36, 0.0  ;;  %v2781_v58 = vld [vmem:[#allocation2 + $0xea] sm:$0xff] }
 0x212   : > { %v2872_v22 = vpack.c.bf16 %v2860_v42, %v2859_v19  ;;  %v995_v56 = vadd.f32 0.5, %v947_v2  ;;  %v2538_v35 = vsel %vm9045_vm7, %v2522_v13, 0.0  ;;  %v2553_v14 = vadd.f32 %v2537_v3, %v2489_v7  ;;  %v2782_v42 = vld [vmem:[#allocation2 + $0xf2] sm:$0xff]  ;;  %v2475_v7 = vld [vmem:[#allocation2 + $0xe8] sm:$0xff] }
 0x213   : > { %v1087_v63 = vfloor.f32 %v1039_v62  ;;  %v1137_v24 = vmul.f32 18.0, %v1089_v44  ;;  %vm1233_vm12 = vcmp.ge.f32.partialorder %v1089_v44, 1.0  ;;  %vm1281_vm13 = vcmp.le.f32.partialorder %v1089_v44, 16.0  ;;  %v2829_v6 = vld [vmem:[#allocation2 + $0xeb] sm:$0xff] }
 0x214   : > { %4385 = vmatmul.mubr.bf16.gmra.mxu1 %v2872_v22  ;;  %v2554_v9 = vadd.f32 %v2538_v35, %v2490_v17  ;;  %v1044_v20 = vmul.f32 0.055555556, %v995_v56  ;;  %vm1329_vm15 = vmand %vm1233_vm12, %vm1281_vm13  ;;  %v2585_v12 = vsel %vm9052_vm8, %v2569_v33, 0.0  ;;  %v2586_v25 = vsel %vm9052_vm8, %v2570_v53, 0.0  ;;  %v2476_v44 = vld [vmem:[#allocation2 + $0xf0] sm:$0xff]  ;;  %v2524_v56 = vld [vmem:[#allocation2 + $0xdd] sm:$0xff] }
 0x215   : > { %v1135_v51 = vmul.f32 18.0, %v1087_v63  ;;  %vm1231_vm3 = vcmp.ge.f32.partialorder %v1087_v63, 1.0  ;;  %vm1279_vm14 = vcmp.le.f32.partialorder %v1087_v63, 16.0  ;;  %v1185_v39 = vsub.f32 %v944_v37, %v1137_v24  ;;  %v7576_v37 = vld [vmem:[#allocation2 + $0xe7] sm:$0xff] }
 0x216   : > { %v2633_v41 = vsel %vm9064_vm0, %v7425_v26, 0.0  ;;  %v1092_v40 = vfloor.f32 %v1044_v20  ;;  %v2601_v15 = vadd.f32 %v2585_v12, %v2553_v14  ;;  %v2602_v18 = vadd.f32 %v2586_v25, %v2554_v9  ;;  %vm7512_vm2 = vmand %vm1231_vm3, %vm1279_vm14  ;;  %v2572_v12 = vld [vmem:[#allocation2 + $0xde] sm:$0xff] }
 0x217   : > { %v1183_v43 = vsub.f32 %v942_v47, %v1135_v51  ;;  %vm1377_vm6 = vcmp.ge.f32.partialorder %v1185_v39, 1.0  ;;  %vm1473_vm5 = vcmp.le.f32.partialorder %v1185_v39, 16.0  ;;  %v2634_v46 = vsel %vm9064_vm0, %v7427_v60, 0.0  ;;  %v2571_v39 = vld [vmem:[#allocation2 + $0xd6] sm:$0xff] }
 0x218   : > { %v2667_v26 = vsel %vm9056_vm11, %v7499_v34, 0.0  ;;  %vm1425_vm12 = vmand %vm1329_vm15, %vm1377_vm6  ;;  %v1140_v47 = vmul.f32 18.0, %v1092_v40  ;;  %vm1236_vm7 = vcmp.ge.f32.partialorder %v1092_v40, 1.0  ;;  %vm1284_vm14 = vcmp.le.f32.partialorder %v1092_v40, 16.0 }
 0x219   : > { %vm1375_vm13 = vcmp.ge.f32.partialorder %v1183_v43, 1.0  ;;  %vm1471_vm8 = vcmp.le.f32.partialorder %v1183_v43, 16.0  ;;  %vm1521_vm3 = vmand %vm1425_vm12, %vm1473_vm5  ;;  %v2649_v55 = vadd.f32 %v2633_v41, %v2601_v15  ;;  %v2650_v50 = vadd.f32 %v2634_v46, %v2602_v18 }
 0x21a   : > { %v2668_v60 = vsel %vm9056_vm11, %v7508_v27, 0.0  ;;  %v1665_v0 = vsel %vm1521_vm3, %v847_v57, 0.0  ;;  %vm1423_vm15 = vmand %vm7512_vm2, %vm1375_vm13  ;;  %v1188_v36 = vsub.f32 %v947_v2, %v1140_v47  ;;  %v2715_v49 = vsel %vm9066_vm10, %v7438_v10, 0.0  ;;  %v2830_v10 = vld [vmem:[#allocation2 + $0xf3] sm:$0xff]  ;;  %v683_v2 = vpop.f32.mrf.mxu0 }
 0x21b   : > { %v2716_v19 = vsel %vm9066_vm10, %v7440_v4, 0.0  ;;  %1719 = vst [vmem:[#allocation2 + $0x170] sm:$0xff] %v1665_v0  ;;  %vm1519_vm6 = vmand %vm1423_vm15, %vm1471_vm8  ;;  %v2683_v13 = vadd.f32 %v2667_v26, %v2649_v55  ;;  %v2684_v45 = vadd.f32 %v2668_v60, %v2650_v50  ;;  %v2749_v57 = vsel %vm6180_vm1, %v7522_v29, 0.0  ;;  %v7583_v50 = vld [vmem:[#allocation2 + $0xef] sm:$0xff] }
 0x21c   : > { %v2750_v62 = vsel %vm6180_vm1, %v7524_v23, 0.0  ;;  %v7548_v4 = vsel %vm1519_vm6, %v845_v16, 0.0  ;;  %vm1332_vm8 = vmand %vm1236_vm7, %vm1284_vm14  ;;  %vm1380_vm5 = vcmp.ge.f32.partialorder %v1188_v36, 1.0  ;;  %vm1476_vm2 = vcmp.le.f32.partialorder %v1188_v36, 16.0  ;;  %v2523_v16 = vld [vmem:[#allocation2 + $0xd5] sm:$0xff] }
 0x21d   : > { %v2797_v22 = vsel %vm6194_vm9, %v2781_v58, 0.0  ;;  %1717 = vst [vmem:[#allocation2 + $0x160] sm:$0xff] %v7548_v4  ;;  %vm1428_vm12 = vmand %vm1332_vm8, %vm1380_vm5  ;;  %v2731_v17 = vadd.f32 %v2715_v49, %v2683_v13  ;;  %v2732_v3 = vadd.f32 %v2716_v19, %v2684_v45  ;;  %v2798_v63 = vsel %vm6194_vm9, %v2782_v42, 0.0  ;;  %v7585_v49 = vld [vmem:[#allocation2 + $0xf9] sm:$0xff]  ;;  %v7587_v19 = vld [vmem:[#allocation2 + $0x101] sm:$0xff]  ;;  %v4331_v42 = vpop.f32.mrf.mxu0 }
 0x21e   : > { %v2845_v5 = vsel %vm9202_vm4, %v2829_v6, 0.0  ;;  %vm1524_vm7 = vmand %vm1428_vm12, %vm1476_vm2  ;;  %v2846_v35 = vsel %vm9202_vm4, %v2830_v10, 0.0  ;;  %v747_v14 = vmul.f32 %v7401_v8, %v683_v2  ;;  %v897_v33 = vadd.s32 352, %v9207_v28 }
 0x21f   : > { %vm9223_vm13 = vcmp.lt.s32.totalorder %v5143_v54, 4  ;;  %v1668_v24 = vsel %vm1524_vm7, %v850_v30, 0.0  ;;  %v2765_v9 = vadd.f32 %v2749_v57, %v2731_v17  ;;  %v2766_v51 = vadd.f32 %v2750_v62, %v2732_v3  ;;  %v2783_v62 = vld [vmem:[#allocation2 + $0xfa] sm:$0xff] }
 0x220   : > { %v2491_v53 = vsel %vm9223_vm13, %v2475_v7, 0.0  ;;  %vm9224_vm3 = vmmov %vm9223_vm13  ;;  %1722 = vst [vmem:[#allocation2 + $0x188] sm:$0xff] %v1668_v24  ;;  %v7570_v25 = vadd.f32 %v7417_v61, %v747_v14  ;;  %v945_v41 = vcvt.s32.f32 %v897_v33  ;;  %vm9225_vm14 = vnez %v8871_v52  ;;  %v686_v14 = vpop.f32.mrf.mxu0 }
 0x221   : > { %v2492_v20 = vsel %vm9224_vm3, %v2476_v44, 0.0  ;;  %v2539_v43 = vsel %vm9225_vm14, %v2523_v16, 0.0  ;;  %v2540_v40 = vsel %vm9225_vm14, %v2524_v56, 0.0  ;;  %v2813_v38 = vadd.f32 %v2797_v22, %v2765_v9  ;;  %v2784_v44 = vld [vmem:[#allocation2 + $0x102] sm:$0xff]  ;;  %vm9227_vm2 = vmmov %vm9224_vm3 }
 0x222   : > { %v2814_v30 = vadd.f32 %v2798_v63, %v2766_v51  ;;  %v2555_v15 = vadd.f32 %v2539_v43, %v2491_v53  ;;  %v2556_v18 = vadd.f32 %v2540_v40, %v2492_v20  ;;  %v848_v46 = vmax.f32 %v7570_v25, 0.0  ;;  %v2831_v63 = vld [vmem:[#allocation2 + $0xfb] sm:$0xff] }
 0x223   : > { %v993_v26 = vadd.f32 0.5, %v945_v41  ;;  %vm9226_vm15 = vnez %v8888_v1  ;;  %v2861_v60 = vadd.f32 %v2845_v5, %v2813_v38  ;;  %v2635_v13 = vsel %vm9064_vm0, %v7499_v34, 0.0  ;;  %v2832_v5 = vld [vmem:[#allocation2 + $0x103] sm:$0xff]  ;;  %v2477_v53 = vld [vmem:[#allocation2 + $0xf8] sm:$0xff] }
 0x224   : > { %v2587_v47 = vsel %vm9226_vm15, %v2571_v39, 0.0  ;;  %v2588_v55 = vsel %vm9226_vm15, %v2572_v12, 0.0  ;;  %v2862_v58 = vadd.f32 %v2846_v35, %v2814_v30  ;;  %v2636_v45 = vsel %vm9064_vm0, %v7508_v27, 0.0 }
 0x225   : > { %v2603_v0 = vadd.f32 %v2587_v47, %v2555_v15  ;;  %v2604_v36 = vadd.f32 %v2588_v55, %v2556_v18  ;;  %v1042_v6 = vmul.f32 0.055555556, %v993_v26  ;;  %v2669_v57 = vsel %vm9056_vm11, %v7576_v37, 0.0  ;;  %v2478_v18 = vld [vmem:[#allocation2 + $0x100] sm:$0xff] }
 0x226   : > { %v2873_v10 = vpack.c.bf16 %v2862_v58, %v2861_v60  ;;  %v2670_v22 = vsel %vm9056_vm11, %v7583_v50, 0.0  ;;  %v2717_v34 = vsel %vm9066_vm10, %v7522_v29, 0.0  ;;  %v2718_v27 = vsel %vm9066_vm10, %v7524_v23, 0.0  ;;  %v2525_v47 = vld [vmem:[#allocation2 + $0xe5] sm:$0xff] }
 0x227   : > { %v2651_v2 = vadd.f32 %v2635_v13, %v2603_v0  ;;  %v2652_v7 = vadd.f32 %v2636_v45, %v2604_v36  ;;  %v1090_v17 = vfloor.f32 %v1042_v6  ;;  %v2751_v3 = vsel %vm6180_vm1, %v7585_v49, 0.0  ;;  %v2526_v0 = vld [vmem:[#allocation2 + $0xed] sm:$0xff] }
 0x228   : > { %4388 = vmatprep.mubr.bf16.mxu1 %v2873_v10  ;;  %v2752_v35 = vsel %vm6180_vm1, %v7587_v19, 0.0  ;;  %v2799_v29 = vsel %vm6194_vm9, %v2783_v62, 0.0  ;;  %v2800_v23 = vsel %vm6194_vm9, %v2784_v44, 0.0  ;;  %v2847_v51 = vsel %vm9202_vm4, %v2831_v63, 0.0  ;;  %v2573_v45 = vld [vmem:[#allocation2 + $0xe6] sm:$0xff] }
 0x229   : > { %v2685_v16 = vadd.f32 %v2669_v57, %v2651_v2  ;;  %v2686_v56 = vadd.f32 %v2670_v22, %v2652_v7  ;;  %v1138_v33 = vmul.f32 18.0, %v1090_v17  ;;  %vm1234_vm6 = vcmp.ge.f32.partialorder %v1090_v17, 1.0  ;;  %v2574_v57 = vld [vmem:[#allocation2 + $0xee] sm:$0xff] }
 0x22a   : > { %vm1282_vm8 = vcmp.le.f32.partialorder %v1090_v17, 16.0  ;;  %v2848_v20 = vsel %vm9202_vm4, %v2832_v5, 0.0  ;;  %v750_v12 = vmul.f32 %v7401_v8, %v4331_v42  ;;  %v900_v43 = vadd.s32 376, %v9207_v28 }
 0x22b   : > { %v2733_v24 = vadd.f32 %v2717_v34, %v2685_v16  ;;  %v2734_v9 = vadd.f32 %v2718_v27, %v2686_v56  ;;  %v1186_v39 = vsub.f32 %v945_v41, %v1138_v33  ;;  %vm1330_vm5 = vmand %vm1234_vm6, %vm1282_vm8  ;;  %v748_v40 = vmul.f32 %v7401_v8, %v686_v14  ;;  %v7649_v34 = vld [vmem:[#allocation2 + $0xf7] sm:$0xff]  ;;  %v7651_v27 = vld [vmem:[#allocation2 + $0xff] sm:$0xff] }
 0x22c   : > { %v7625_v15 = vadd.s32 360, %v9207_v28  ;;  %v2493_v26 = vsel %vm9227_vm2, %v2477_v53, 0.0  ;;  %v7630_v41 = vadd.f32 %v7417_v61, %v750_v12  ;;  %v948_v55 = vcvt.s32.f32 %v900_v43  ;;  %vm9228_vm6 = vmmov %vm9227_vm2  ;;  %v2785_v12 = vld [vmem:[#allocation2 + $0x10a] sm:$0xff] }
 0x22d   : > { %v2767_v38 = vadd.f32 %v2751_v3, %v2733_v24  ;;  %v2768_v30 = vadd.f32 %v2752_v35, %v2734_v9  ;;  %vm1378_vm12 = vcmp.ge.f32.partialorder %v1186_v39, 1.0  ;;  %vm1474_vm7 = vcmp.le.f32.partialorder %v1186_v39, 16.0  ;;  %v7669_v9 = vld [vmem:[#allocation2 + $0x109] sm:$0xff] }
 0x22e   : > { %vm1426_vm13 = vmand %vm1330_vm5, %vm1378_vm12  ;;  %v7633_v8 = vadd.f32 %v7417_v61, %v748_v40  ;;  %v946_v28 = vcvt.s32.f32 %v7625_v15  ;;  %v851_v36 = vmax.f32 %v7630_v41, 0.0  ;;  %v996_v42 = vadd.f32 0.5, %v948_v55  ;;  %v2833_v15 = vld [vmem:[#allocation2 + $0x10b] sm:$0xff]  ;;  %v2788_v40 = vld [vmem:[#allocation2 + $0x122] sm:$0xff] }
 0x22f   : > { %v2815_v60 = vadd.f32 %v2799_v29, %v2767_v38  ;;  %v2816_v58 = vadd.f32 %v2800_v23, %v2768_v30  ;;  %vm1522_vm3 = vmand %vm1426_vm13, %vm1474_vm7  ;;  %v2494_v6 = vsel %vm9228_vm6, %v2478_v18, 0.0  ;;  %v2541_v13 = vsel %vm9225_vm14, %v2525_v47, 0.0  ;;  %v2786_v30 = vld [vmem:[#allocation2 + $0x112] sm:$0xff] }
 0x230   : > { %v7643_v62 = vsel %vm1522_vm3, %v848_v46, 0.0  ;;  %v849_v2 = vmax.f32 %v7633_v8, 0.0  ;;  %v1045_v7 = vmul.f32 0.055555556, %v996_v42  ;;  %v994_v22 = vadd.f32 0.5, %v946_v28  ;;  %v2834_v47 = vld [vmem:[#allocation2 + $0x113] sm:$0xff] }
 0x231   : > { %v2863_v61 = vadd.f32 %v2847_v51, %v2815_v60  ;;  %v2864_v10 = vadd.f32 %v2848_v20, %v2816_v58  ;;  %1720 = vst [vmem:[#allocation2 + $0x178] sm:$0xff] %v7643_v62  ;;  %v2542_v44 = vsel %vm9225_vm14, %v2526_v0, 0.0  ;;  %v2557_v17 = vadd.f32 %v2541_v13, %v2493_v26  ;;  %v2527_v60 = vld [vmem:[#allocation2 + $0xf5] sm:$0xff]  ;;  %v3224_v0 = vld [vmem:[#allocation2 + $0x105] sm:$0xff] }
 0x232   : > { %v2558_v25 = vadd.f32 %v2542_v44, %v2494_v6  ;;  %v2589_v46 = vsel %vm9226_vm15, %v2573_v45, 0.0  ;;  %v2590_v63 = vsel %vm9226_vm15, %v2574_v57, 0.0  ;;  %v1093_v5 = vfloor.f32 %v1045_v7  ;;  %v2480_v6 = vld [vmem:[#allocation2 + $0x110] sm:$0xff]  ;;  %v2576_v7 = vld [vmem:[#allocation2 + $0xfe] sm:$0xff] }
 0x233   : > { %v2874_v3 = vpack.c.bf16 %v2864_v10, %v2863_v61  ;;  %v1043_v16 = vmul.f32 0.055555556, %v994_v22  ;;  %v2605_v56 = vadd.f32 %v2589_v46, %v2557_v17  ;;  %v2637_v35 = vsel %vm9064_vm0, %v7576_v37, 0.0  ;;  %v7671_v37 = vld [vmem:[#allocation2 + $0x111] sm:$0xff]  ;;  %v2528_v10 = vld [vmem:[#allocation2 + $0xfd] sm:$0xff] }
 0x234   : > { %v2606_v29 = vadd.f32 %v2590_v63, %v2558_v25  ;;  %v2638_v14 = vsel %vm9064_vm0, %v7583_v50, 0.0  ;;  %v2671_v33 = vsel %vm9056_vm11, %v7649_v34, 0.0  ;;  %v2672_v23 = vsel %vm9056_vm11, %v7651_v27, 0.0  ;;  %v2575_v13 = vld [vmem:[#allocation2 + $0xf6] sm:$0xff]  ;;  %v7713_v63 = vld [vmem:[#allocation2 + $0x107] sm:$0xff] }
 0x235   : > { %4389 = vmatmul.mubr.bf16.gmra.mxu1 %v2874_v3  ;;  %v1141_v53 = vmul.f32 18.0, %v1093_v5  ;;  %vm1237_vm8 = vcmp.ge.f32.partialorder %v1093_v5, 1.0  ;;  %vm1285_vm5 = vcmp.le.f32.partialorder %v1093_v5, 16.0  ;;  %v1091_v24 = vfloor.f32 %v1043_v16 }
 0x236   : > { %v2653_v51 = vadd.f32 %v2637_v35, %v2605_v56  ;;  %v2654_v20 = vadd.f32 %v2638_v14, %v2606_v29  ;;  %v2719_v50 = vsel %vm9066_vm10, %v7585_v49, 0.0  ;;  %v2720_v39 = vsel %vm9066_vm10, %v7587_v19, 0.0  ;;  %vm7679_vm2 = vmand %vm1237_vm8, %vm1285_vm5  ;;  %v7724_v56 = vld [vmem:[#allocation2 + $0x10f] sm:$0xff] }
 0x237   : > { %v1189_v43 = vsub.f32 %v948_v55, %v1141_v53  ;;  %v1139_v38 = vmul.f32 18.0, %v1091_v24  ;;  %vm1235_vm12 = vcmp.ge.f32.partialorder %v1091_v24, 1.0  ;;  %vm1283_vm7 = vcmp.le.f32.partialorder %v1091_v24, 16.0  ;;  %v2479_v55 = vld [vmem:[#allocation2 + $0x108] sm:$0xff] }
 0x238   : > { %v2687_v18 = vadd.f32 %v2671_v33, %v2653_v51  ;;  %v2688_v26 = vadd.f32 %v2672_v23, %v2654_v20  ;;  %v2753_v49 = vsel %vm6180_vm1, %v7669_v9, 0.0  ;;  %v2754_v19 = vsel %vm6180_vm1, %v7671_v37, 0.0  ;;  %vm7689_vm6 = vmand %vm1235_vm12, %vm1283_vm7  ;;  %v7730_v23 = vld [vmem:[#allocation2 + $0x119] sm:$0xff] }
 0x239   : > { %vm1381_vm13 = vcmp.ge.f32.partialorder %v1189_v43, 1.0  ;;  %vm1477_vm3 = vcmp.le.f32.partialorder %v1189_v43, 16.0  ;;  %v1187_v58 = vsub.f32 %v946_v28, %v1139_v38  ;;  %v2801_v42 = vsel %vm6194_vm9, %v2785_v12, 0.0  ;;  %v2787_v20 = vld [vmem:[#allocation2 + $0x11a] sm:$0xff]  ;;  %v7749_v38 = vld [vmem:[#allocation2 + $0x123] sm:$0xff] }
 0x23a   : > { %vm1429_vm8 = vmand %vm7679_vm2, %vm1381_vm13  ;;  %v2735_v45 = vadd.f32 %v2719_v50, %v2687_v18  ;;  %v2736_v57 = vadd.f32 %v2720_v39, %v2688_v26  ;;  %v2802_v61 = vsel %vm6194_vm9, %v2786_v30, 0.0  ;;  %v2849_v28 = vsel %vm9202_vm4, %v2833_v15, 0.0  ;;  %v3176_v26 = vld [vmem:[#allocation2 + $0x118] sm:$0xff] }
 0x23b   : > { %vm1525_vm5 = vmand %vm1429_vm8, %vm1477_vm3  ;;  %vm1379_vm12 = vcmp.ge.f32.partialorder %v1187_v58, 1.0  ;;  %vm1475_vm7 = vcmp.le.f32.partialorder %v1187_v58, 16.0  ;;  %v2850_v22 = vsel %vm9202_vm4, %v2834_v47, 0.0  ;;  %vm9233_vm1 = vcmp.lt.s32.totalorder %v5143_v54, 4  ;;  %v3179_v58 = vld [vmem:[#allocation2 + $0x130] sm:$0xff] }
 0x23c   : > { %v2495_v44 = vsel %vm9233_vm1, %v2479_v55, 0.0  ;;  %v7707_v17 = vsel %vm1525_vm5, %v851_v36, 0.0  ;;  %vm1427_vm2 = vmand %vm7689_vm6, %vm1379_vm12  ;;  %v2769_v3 = vadd.f32 %v2753_v49, %v2735_v45  ;;  %v2770_v25 = vadd.f32 %v2754_v19, %v2736_v57  ;;  %v3177_v49 = vld [vmem:[#allocation2 + $0x120] sm:$0xff]  ;;  %v3178_v19 = vld [vmem:[#allocation2 + $0x128] sm:$0xff] }
 0x23d   : > { %vm9234_vm13 = vmmov %vm9233_vm1  ;;  %1723 = vst [vmem:[#allocation2 + $0x190] sm:$0xff] %v7707_v17  ;;  %v2543_v5 = vsel %vm9225_vm14, %v2527_v60, 0.0  ;;  %v2544_v41 = vsel %vm9225_vm14, %v2528_v10, 0.0  ;;  %v2591_v36 = vsel %vm9226_vm15, %v2575_v13, 0.0  ;;  %v2592_v16 = vsel %vm9226_vm15, %v2576_v7, 0.0  ;;  %v3226_v57 = vld [vmem:[#allocation2 + $0x115] sm:$0xff] }
 0x23e   : > { %v2496_v46 = vsel %vm9234_vm13, %v2480_v6, 0.0  ;;  %vm1523_vm3 = vmand %vm1427_vm2, %vm1475_vm7  ;;  %v2817_v29 = vadd.f32 %v2801_v42, %v2769_v3  ;;  %v2818_v14 = vadd.f32 %v2802_v61, %v2770_v25  ;;  %v2559_v33 = vadd.f32 %v2543_v5, %v2495_v44  ;;  %v3225_v42 = vld [vmem:[#allocation2 + $0x10d] sm:$0xff]  ;;  %v3227_v61 = vld [vmem:[#allocation2 + $0x11d] sm:$0xff] }
 0x23f   : > { %v7728_v35 = vsel %vm1523_vm3, %v849_v2, 0.0  ;;  %v2560_v53 = vadd.f32 %v2544_v41, %v2496_v46  ;;  %v2639_v24 = vsel %vm9064_vm0, %v7649_v34, 0.0  ;;  %v2640_v51 = vsel %vm9064_vm0, %v7651_v27, 0.0  ;;  %v7742_v2 = vld [vmem:[#allocation2 + $0x121] sm:$0xff]  ;;  %vm9236_vm6 = vmmov %vm9234_vm13  ;;  %v3273_v41 = vld [vmem:[#allocation2 + $0x10e] sm:$0xff] }
 0x240   : > { %1721 = vst [vmem:[#allocation2 + $0x180] sm:$0xff] %v7728_v35  ;;  %v2673_v8 = vsel %vm9056_vm11, %v7713_v63, 0.0  ;;  %v2865_v50 = vadd.f32 %v2849_v28, %v2817_v29  ;;  %v2866_v39 = vadd.f32 %v2850_v22, %v2818_v14  ;;  %v2607_v12 = vadd.f32 %v2591_v36, %v2559_v33  ;;  %v7747_v34 = vld [vmem:[#allocation2 + $0x11b] sm:$0xff]  ;;  %vm9237_vm8 = vmmov %vm9236_vm6  ;;  %v3272_v5 = vld [vmem:[#allocation2 + $0x106] sm:$0xff] }
 0x241   : > { %v2674_v43 = vsel %vm9056_vm11, %v7724_v56, 0.0  ;;  %v2608_v27 = vadd.f32 %v2592_v16, %v2560_v53  ;;  %v2721_v30 = vsel %vm9066_vm10, %v7669_v9, 0.0  ;;  %v2722_v15 = vsel %vm9066_vm10, %v7671_v37, 0.0  ;;  %vm9238_vm5 = vmmov %vm9236_vm6  ;;  %v3274_v36 = vld [vmem:[#allocation2 + $0x116] sm:$0xff]  ;;  %v3275_v53 = vld [vmem:[#allocation2 + $0x11e] sm:$0xff] }
 0x242   : > { %vm9235_vm1 = vnez %v8987_v48  ;;  %v2875_v47 = vpack.c.bf16 %v2866_v39, %v2865_v50  ;;  %v2655_v55 = vadd.f32 %v2639_v24, %v2607_v12  ;;  %v2803_v9 = vsel %vm6194_vm9, %v2787_v20, 0.0  ;;  %vm9239_vm12 = vmmov %vm9238_vm5 }
 0x243   : > { %v2755_v18 = vsel %vm9235_vm1, %v7730_v23, 0.0  ;;  %v2756_v60 = vsel %vm9235_vm1, %v7742_v2, 0.0  ;;  %v2656_v37 = vadd.f32 %v2640_v51, %v2608_v27  ;;  %v2804_v6 = vsel %vm6194_vm9, %v2788_v40, 0.0  ;;  %v3322_v40 = vld [vmem:[#allocation2 + $0x117] sm:$0xff]  ;;  %vm9240_vm7 = vmmov %vm9238_vm5 }
 0x244   : > { %v2851_v13 = vsel %vm9202_vm4, %v7747_v34, 0.0  ;;  %v2852_v45 = vsel %vm9202_vm4, %v7749_v38, 0.0  ;;  %4392 = vmatprep.mubr.bf16.mxu1 %v2875_v47  ;;  %v2689_v28 = vadd.f32 %v2673_v8, %v2655_v55  ;;  %v3192_v10 = vsel %vm9236_vm6, %v3176_v26, 0.0  ;;  %v3323_v34 = vld [vmem:[#allocation2 + $0x11f] sm:$0xff]  ;;  %v7800_v55 = vld [vmem:[#allocation2 + $0x127] sm:$0xff]  ;;  %vm9241_vm2 = vmmov %vm9238_vm5 }
 0x245   : > { %v3193_v7 = vsel %vm9237_vm8, %v3177_v49, 0.0  ;;  %v3194_v22 = vsel %vm9238_vm5, %v3178_v19, 0.0  ;;  %v2690_v44 = vadd.f32 %v2674_v43, %v2656_v37  ;;  %v3195_v3 = vsel %vm9239_vm12, %v3179_v58, 0.0  ;;  %v7802_v58 = vld [vmem:[#allocation2 + $0x12f] sm:$0xff]  ;;  %vm9242_vm13 = vmmov %vm9241_vm2 }
 0x246   : > { %v3240_v25 = vsel %vm9225_vm14, %v3224_v0, 0.0  ;;  %v3241_v46 = vsel %vm9225_vm14, %v3225_v42, 0.0  ;;  %v2737_v16 = vadd.f32 %v2721_v30, %v2689_v28  ;;  %v3242_v29 = vsel %vm9225_vm14, %v3226_v57, 0.0  ;;  %vm9243_vm3 = vmmov %vm9241_vm2 }
 0x247   : > { %v3243_v14 = vsel %vm9225_vm14, %v3227_v61, 0.0  ;;  %v3256_v33 = vadd.f32 %v3240_v25, %v3192_v10  ;;  %v2738_v24 = vadd.f32 %v2722_v15, %v2690_v44  ;;  %v3257_v51 = vadd.f32 %v3241_v46, %v3193_v7  ;;  %v3404_v7 = vld [vmem:[#allocation2 + $0x129] sm:$0xff]  ;;  %vm9244_vm6 = vmmov %vm9241_vm2 }
 0x248   : > { %v3258_v8 = vadd.f32 %v3242_v29, %v3194_v22  ;;  %v3259_v20 = vadd.f32 %v3243_v14, %v3195_v3  ;;  %v2771_v50 = vadd.f32 %v2755_v18, %v2737_v16  ;;  %v3288_v39 = vsel %vm9226_vm15, %v3272_v5, 0.0  ;;  %v7821_v5 = vld [vmem:[#allocation2 + $0x139] sm:$0xff]  ;;  %vm9245_vm8 = vmmov %vm9241_vm2 }
 0x249   : > { %v3289_v12 = vsel %vm9226_vm15, %v3273_v41, 0.0  ;;  %v3290_v43 = vsel %vm9226_vm15, %v3274_v36, 0.0  ;;  %v2772_v38 = vadd.f32 %v2756_v60, %v2738_v24  ;;  %v3291_v27 = vsel %vm9226_vm15, %v3275_v53, 0.0  ;;  %v7823_v41 = vld [vmem:[#allocation2 + $0x141] sm:$0xff]  ;;  %v3484_v53 = vld [vmem:[#allocation2 + $0x12a] sm:$0xff]  ;;  %vm9246_vm5 = vmmov %vm9241_vm2 }
 0x24a   : > { %v3304_v30 = vadd.f32 %v3288_v39, %v3256_v33  ;;  %v3305_v15 = vadd.f32 %v3289_v12, %v3257_v51  ;;  %v2819_v26 = vadd.f32 %v2803_v9, %v2771_v50  ;;  %v3306_v49 = vadd.f32 %v3290_v43, %v3258_v8  ;;  %v3532_v50 = vld [vmem:[#allocation2 + $0x12b] sm:$0xff]  ;;  %v3533_v39 = vld [vmem:[#allocation2 + $0x133] sm:$0xff]  ;;  %vm9247_vm12 = vmmov %vm9241_vm2 }
 0x24b   : > { %v3307_v18 = vadd.f32 %v3291_v27, %v3259_v20  ;;  %v3336_v19 = vsel %vm9064_vm0, %v7713_v63, 0.0  ;;  %v2820_v47 = vadd.f32 %v2804_v6, %v2772_v38  ;;  %v3337_v60 = vsel %vm9064_vm0, %v7724_v56, 0.0  ;;  %v3405_v56 = vld [vmem:[#allocation2 + $0x131] sm:$0xff]  ;;  %v3487_v38 = vld [vmem:[#allocation2 + $0x142] sm:$0xff] }
 0x24c   : > { %v3338_v0 = vsel %vm9064_vm0, %v3322_v40, 0.0  ;;  %v3339_v9 = vsel %vm9064_vm0, %v3323_v34, 0.0  ;;  %v2867_v42 = vadd.f32 %v2851_v13, %v2819_v26  ;;  %v3352_v37 = vadd.f32 %v3336_v19, %v3304_v30  ;;  %v3534_v27 = vld [vmem:[#allocation2 + $0x13b] sm:$0xff] }
 0x24d   : > { %v3353_v57 = vadd.f32 %v3337_v60, %v3305_v15  ;;  %v3354_v61 = vadd.f32 %v3338_v0, %v3306_v49  ;;  %v2868_v63 = vadd.f32 %v2852_v45, %v2820_v47  ;;  %v3355_v6 = vadd.f32 %v3339_v9, %v3307_v18  ;;  %v3535_v18 = vld [vmem:[#allocation2 + $0x143] sm:$0xff]  ;;  %v3180_v9 = vld [vmem:[#allocation2 + $0x138] sm:$0xff] }
 0x24e   : > { %v3370_v28 = vsel %vm9056_vm11, %v3322_v40, 0.0  ;;  %v3371_v10 = vsel %vm9056_vm11, %v3323_v34, 0.0  ;;  %v3372_v22 = vsel %vm9056_vm11, %v7800_v55, 0.0  ;;  %v3373_v13 = vsel %vm9056_vm11, %v7802_v58, 0.0  ;;  %v3486_v34 = vld [vmem:[#allocation2 + $0x13a] sm:$0xff] }
 0x24f   : > { %v3386_v44 = vadd.f32 %v3370_v28, %v3352_v37  ;;  %v3387_v3 = vadd.f32 %v3371_v10, %v3353_v57  ;;  %v2876_v45 = vpack.c.bf16 %v2868_v63, %v2867_v42  ;;  %v3388_v25 = vadd.f32 %v3372_v22, %v3354_v61  ;;  %v3181_v42 = vld [vmem:[#allocation2 + $0x140] sm:$0xff]  ;;  %v3229_v28 = vld [vmem:[#allocation2 + $0x12d] sm:$0xff] }
 0x250   : > { %v3389_v46 = vadd.f32 %v3373_v13, %v3355_v6  ;;  %v3418_v36 = vsel %vm9066_vm10, %v7730_v23, 0.0  ;;  %v3419_v16 = vsel %vm9066_vm10, %v7742_v2, 0.0  ;;  %v3420_v29 = vsel %vm9066_vm10, %v3404_v7, 0.0  ;;  %v3485_v23 = vld [vmem:[#allocation2 + $0x132] sm:$0xff]  ;;  %v3228_v37 = vld [vmem:[#allocation2 + $0x125] sm:$0xff] }
 0x251   : > { %v3421_v14 = vsel %vm9066_vm10, %v3405_v56, 0.0  ;;  %v3434_v33 = vadd.f32 %v3418_v36, %v3386_v44  ;;  %4393 = vmatmul.mubr.bf16.gmra.mxu1 %v2876_v45  ;;  %v3435_v24 = vadd.f32 %v3419_v16, %v3387_v3  ;;  %v3436_v51 = vadd.f32 %v3420_v29, %v3388_v25  ;;  %v3276_v13 = vld [vmem:[#allocation2 + $0x126] sm:$0xff]  ;;  %v3277_v44 = vld [vmem:[#allocation2 + $0x12e] sm:$0xff] }
 0x252   : > { %v3437_v8 = vadd.f32 %v3421_v14, %v3389_v46  ;;  %v3452_v20 = vsel %vm9235_vm1, %v3404_v7, 0.0  ;;  %v3453_v2 = vsel %vm9235_vm1, %v3405_v56, 0.0  ;;  %v3454_v12 = vsel %vm9235_vm1, %v7821_v5, 0.0 }
 0x253   : > { %v3455_v43 = vsel %vm9235_vm1, %v7823_v41, 0.0  ;;  %v3468_v40 = vadd.f32 %v3452_v20, %v3434_v33  ;;  %v3469_v30 = vadd.f32 %v3453_v2, %v3435_v24  ;;  %v3470_v15 = vadd.f32 %v3454_v12, %v3436_v51  ;;  %v7869_v33 = vld [vmem:[#allocation2 + $0x137] sm:$0xff] }
 0x254   : > { %v3471_v26 = vadd.f32 %v3455_v43, %v3437_v8  ;;  %v3500_v49 = vsel %vm6194_vm9, %v3484_v53, 0.0  ;;  %v3501_v19 = vsel %vm6194_vm9, %v3485_v23, 0.0  ;;  %v3548_v60 = vsel %vm9202_vm4, %v3532_v50, 0.0  ;;  %v7871_v53 = vld [vmem:[#allocation2 + $0x13f] sm:$0xff]  ;;  %v7877_v23 = vld [vmem:[#allocation2 + $0x149] sm:$0xff]  ;;  %v7879_v50 = vld [vmem:[#allocation2 + $0x151] sm:$0xff] }
 0x255   : > { %v3516_v47 = vadd.f32 %v3500_v49, %v3468_v40  ;;  %v3549_v0 = vsel %vm9202_vm4, %v3533_v39, 0.0  ;;  %v3517_v57 = vadd.f32 %v3501_v19, %v3469_v30  ;;  %v3502_v61 = vsel %vm6194_vm9, %v3486_v34, 0.0  ;;  %v3488_v40 = vld [vmem:[#allocation2 + $0x14a] sm:$0xff]  ;;  %v3489_v34 = vld [vmem:[#allocation2 + $0x152] sm:$0xff] }
 0x256   : > { %v3503_v63 = vsel %vm6194_vm9, %v3487_v38, 0.0  ;;  %v3550_v6 = vsel %vm9202_vm4, %v3534_v27, 0.0  ;;  %v3518_v7 = vadd.f32 %v3502_v61, %v3470_v15  ;;  %v3551_v22 = vsel %vm9202_vm4, %v3535_v18, 0.0  ;;  %v7887_v38 = vld [vmem:[#allocation2 + $0x14b] sm:$0xff]  ;;  %v3279_v61 = vld [vmem:[#allocation2 + $0x13e] sm:$0xff] }
 0x257   : > { %v3564_v10 = vadd.f32 %v3548_v60, %v3516_v47  ;;  %v3519_v56 = vadd.f32 %v3503_v63, %v3471_v26  ;;  %v3565_v3 = vadd.f32 %v3549_v0, %v3517_v57  ;;  %v3196_v45 = vsel %vm9240_vm7, %v3180_v9, 0.0  ;;  %v7898_v26 = vld [vmem:[#allocation2 + $0x153] sm:$0xff]  ;;  %vm9248_vm7 = vmmov %vm9241_vm2 }
 0x258   : > { %v3197_v25 = vsel %vm9241_vm2, %v3181_v42, 0.0  ;;  %v3244_v46 = vsel %vm9225_vm14, %v3228_v37, 0.0  ;;  %v3566_v36 = vadd.f32 %v3550_v6, %v3518_v7  ;;  %v3245_v29 = vsel %vm9225_vm14, %v3229_v28, 0.0  ;;  %v3183_v49 = vld [vmem:[#allocation2 + $0x150] sm:$0xff]  ;;  %v7923_v7 = vld [vmem:[#allocation2 + $0x147] sm:$0xff] }
 0x259   : > { %v3567_v16 = vadd.f32 %v3551_v22, %v3519_v56  ;;  %v3260_v14 = vadd.f32 %v3244_v46, %v3196_v45  ;;  %v3580_v24 = vpack.c.bf16 %v3565_v3, %v3564_v10  ;;  %v3261_v51 = vadd.f32 %v3245_v29, %v3197_v25  ;;  %v3230_v0 = vld [vmem:[#allocation2 + $0x135] sm:$0xff] }
 0x25a   : > { %v3292_v8 = vsel %vm9226_vm15, %v3276_v13, 0.0  ;;  %v3293_v20 = vsel %vm9226_vm15, %v3277_v44, 0.0  ;;  %v3340_v12 = vsel %vm9064_vm0, %v7800_v55, 0.0  ;;  %v3341_v43 = vsel %vm9064_vm0, %v7802_v58, 0.0  ;;  %v3182_v58 = vld [vmem:[#allocation2 + $0x148] sm:$0xff]  ;;  %v3278_v9 = vld [vmem:[#allocation2 + $0x136] sm:$0xff] }
 0x25b   : > { %v3581_v39 = vpack.c.bf16 %v3567_v16, %v3566_v36  ;;  %v3308_v2 = vadd.f32 %v3292_v8, %v3260_v14  ;;  %4412 = vmatprep.mubr.bf16.mxu1 %v3580_v24  ;;  %v3309_v27 = vadd.f32 %v3293_v20, %v3261_v51  ;;  %v3374_v30 = vsel %vm9056_vm11, %v7869_v33, 0.0  ;;  %v7931_v3 = vld [vmem:[#allocation2 + $0x14f] sm:$0xff]  ;;  %v7935_v16 = vld [vmem:[#allocation2 + $0x159] sm:$0xff]  ;;  %v7946_v8 = vld [vmem:[#allocation2 + $0x161] sm:$0xff] }
 0x25c   : > { %v3375_v15 = vsel %vm9056_vm11, %v7871_v53, 0.0  ;;  %v3422_v55 = vsel %vm9066_vm10, %v7821_v5, 0.0  ;;  %v3423_v19 = vsel %vm9066_vm10, %v7823_v41, 0.0  ;;  %v3456_v47 = vsel %vm9235_vm1, %v7877_v23, 0.0  ;;  %v3231_v5 = vld [vmem:[#allocation2 + $0x13d] sm:$0xff] }
 0x25d   : > { %4413 = vmatmul.mubr.bf16.vlgmr.msra.gmra.mxu1 %v3581_v39  ;;  %v3356_v18 = vadd.f32 %v3340_v12, %v3308_v2  ;;  %v3457_v60 = vsel %vm9235_vm1, %v7879_v50, 0.0  ;;  %v3357_v42 = vadd.f32 %v3341_v43, %v3309_v27  ;;  %v3504_v37 = vsel %vm6194_vm9, %v3488_v40, 0.0  ;;  %v3490_v43 = vld [vmem:[#allocation2 + $0x15a] sm:$0xff]  ;;  %v3491_v40 = vld [vmem:[#allocation2 + $0x162] sm:$0xff] }
 0x25e   : > { %v3505_v57 = vsel %vm6194_vm9, %v3489_v34, 0.0  ;;  %v3552_v41 = vsel %vm9202_vm4, %v7887_v38, 0.0  ;;  %v3553_v6 = vsel %vm9202_vm4, %v7898_v26, 0.0  ;;  %v3198_v28 = vsel %vm9242_vm13, %v3182_v58, 0.0  ;;  %vm9249_vm13 = vmmov %vm9241_vm2 }
 0x25f   : > { %v3390_v63 = vadd.f32 %v3374_v30, %v3356_v18  ;;  %v3199_v10 = vsel %vm9243_vm3, %v3183_v49, 0.0  ;;  %v3391_v56 = vadd.f32 %v3375_v15, %v3357_v42  ;;  %v3246_v22 = vsel %vm9225_vm14, %v3230_v0, 0.0  ;;  %v3539_v30 = vld [vmem:[#allocation2 + $0x163] sm:$0xff]  ;;  %v3184_v49 = vld [vmem:[#allocation2 + $0x158] sm:$0xff]  ;;  %vm9250_vm3 = vmmov %vm9241_vm2 }
 0x260   : > { %v3247_v13 = vsel %vm9225_vm14, %v3231_v5, 0.0  ;;  %v3294_v44 = vsel %vm9226_vm15, %v3278_v9, 0.0  ;;  %v3262_v25 = vadd.f32 %v3246_v22, %v3198_v28  ;;  %v3295_v36 = vsel %vm9226_vm15, %v3279_v61, 0.0  ;;  %v3232_v18 = vld [vmem:[#allocation2 + $0x145] sm:$0xff]  ;;  %v3281_v61 = vld [vmem:[#allocation2 + $0x14e] sm:$0xff] }
 0x261   : > { %v3438_v45 = vadd.f32 %v3422_v55, %v3390_v63  ;;  %v3263_v46 = vadd.f32 %v3247_v13, %v3199_v10  ;;  %v3439_v29 = vadd.f32 %v3423_v19, %v3391_v56  ;;  %v3342_v14 = vsel %vm9064_vm0, %v7869_v33, 0.0  ;;  %v7951_v33 = vld [vmem:[#allocation2 + $0x15b] sm:$0xff] }
 0x262   : > { %v3343_v24 = vsel %vm9064_vm0, %v7871_v53, 0.0  ;;  %v3376_v51 = vsel %vm9056_vm11, %v7923_v7, 0.0  ;;  %v3310_v39 = vadd.f32 %v3294_v44, %v3262_v25  ;;  %v3377_v12 = vsel %vm9056_vm11, %v7931_v3, 0.0  ;;  %v7983_v44 = vld [vmem:[#allocation2 + $0x157] sm:$0xff] }
 0x263   : > { %v3472_v20 = vadd.f32 %v3456_v47, %v3438_v45  ;;  %v3311_v2 = vadd.f32 %v3295_v36, %v3263_v46  ;;  %v3473_v34 = vadd.f32 %v3457_v60, %v3439_v29  ;;  %v3424_v53 = vsel %vm9066_vm10, %v7877_v23, 0.0  ;;  %v3233_v60 = vld [vmem:[#allocation2 + $0x14d] sm:$0xff]  ;;  %v7985_v45 = vld [vmem:[#allocation2 + $0x15f] sm:$0xff] }
 0x264   : > { %v3425_v38 = vsel %vm9066_vm10, %v7879_v50, 0.0  ;;  %v3458_v27 = vsel %vm9235_vm1, %v7935_v16, 0.0  ;;  %v3358_v55 = vadd.f32 %v3342_v14, %v3310_v39  ;;  %v3459_v58 = vsel %vm9235_vm1, %v7946_v8, 0.0 }
 0x265   : > { %v3520_v15 = vadd.f32 %v3504_v37, %v3472_v20  ;;  %v3359_v26 = vadd.f32 %v3343_v24, %v3311_v2  ;;  %v3521_v19 = vadd.f32 %v3505_v57, %v3473_v34  ;;  %v3506_v23 = vsel %vm6194_vm9, %v3490_v43, 0.0  ;;  %v3280_v37 = vld [vmem:[#allocation2 + $0x146] sm:$0xff]  ;;  %v7996_v20 = vld [vmem:[#allocation2 + $0x171] sm:$0xff] }
 0x266   : > { %v3507_v50 = vsel %vm6194_vm9, %v3491_v40, 0.0  ;;  %v3554_v47 = vsel %vm9202_vm4, %v7951_v33, 0.0  ;;  %v3392_v5 = vadd.f32 %v3376_v51, %v3358_v55  ;;  %v3555_v42 = vsel %vm9202_vm4, %v3539_v30, 0.0  ;;  %v7994_v51 = vld [vmem:[#allocation2 + $0x169] sm:$0xff]  ;;  %v3541_v30 = vld [vmem:[#allocation2 + $0x173] sm:$0xff] }
 0x267   : > { %v3568_v0 = vadd.f32 %v3552_v41, %v3520_v15  ;;  %v3393_v9 = vadd.f32 %v3377_v12, %v3359_v26  ;;  %v3569_v57 = vadd.f32 %v3553_v6, %v3521_v19  ;;  %v3200_v63 = vsel %vm9244_vm6, %v3184_v49, 0.0  ;;  %v3492_v40 = vld [vmem:[#allocation2 + $0x16a] sm:$0xff] }
 0x268   : > { %v3201_v28 = vsel %vm9245_vm8, %v7548_v4, 0.0  ;;  %v3248_v10 = vsel %vm9225_vm14, %v3232_v18, 0.0  ;;  %v3440_v56 = vadd.f32 %v3424_v53, %v3392_v5  ;;  %v3249_v22 = vsel %vm9225_vm14, %v3233_v60, 0.0  ;;  %v3186_v49 = vld [vmem:[#allocation2 + $0x168] sm:$0xff]  ;;  %v3234_v60 = vld [vmem:[#allocation2 + $0x155] sm:$0xff] }
 0x269   : > { %v3441_v41 = vadd.f32 %v3425_v38, %v3393_v9  ;;  %v3264_v13 = vadd.f32 %v3248_v10, %v3200_v63  ;;  %v3582_v6 = vpack.c.bf16 %v3569_v57, %v3568_v0  ;;  %v3265_v25 = vadd.f32 %v3249_v22, %v3201_v28  ;;  %v3493_v38 = vld [vmem:[#allocation2 + $0x172] sm:$0xff]  ;;  %v3235_v0 = vld [vmem:[#allocation2 + $0x15d] sm:$0xff]  ;;  %v8033_v10 = vld [vmem:[#allocation2 + $0x167] sm:$0xff] }
 0x26a   : > { %v3296_v46 = vsel %vm9226_vm15, %v3280_v37, 0.0  ;;  %v3297_v4 = vsel %vm9226_vm15, %v3281_v61, 0.0  ;;  %v3474_v36 = vadd.f32 %v3458_v27, %v3440_v56  ;;  %v3344_v24 = vsel %vm9064_vm0, %v7923_v7, 0.0  ;;  %v3540_v27 = vld [vmem:[#allocation2 + $0x16b] sm:$0xff]  ;;  %v3282_v5 = vld [vmem:[#allocation2 + $0x156] sm:$0xff]  ;;  %v3283_v57 = vld [vmem:[#allocation2 + $0x15e] sm:$0xff] }
 0x26b   : > { %v3475_v29 = vadd.f32 %v3459_v58, %v3441_v41  ;;  %v3312_v14 = vadd.f32 %v3296_v46, %v3264_v13  ;;  %4416 = vmatprep.mubr.bf16.mxu1 %v3582_v6  ;;  %v3313_v39 = vadd.f32 %v3297_v4, %v3265_v25  ;;  %v3345_v2 = vsel %vm9064_vm0, %v7931_v3, 0.0  ;;  %v8010_v3 = vpop.f32.mrf.mxu1  ;;  %v8043_v25 = vld [vmem:[#allocation2 + $0x16f] sm:$0xff] }
 0x26c   : > { %v3378_v12 = vsel %vm9056_vm11, %v7983_v44, 0.0  ;;  %v3379_v43 = vsel %vm9056_vm11, %v7985_v45, 0.0  ;;  %v3522_v7 = vadd.f32 %v3506_v23, %v3474_v36  ;;  %v3426_v53 = vsel %vm9066_vm10, %v7935_v16, 0.0  ;;  %v3187_v16 = vld [vmem:[#allocation2 + $0x170] sm:$0xff] }
 0x26d   : > { %v3523_v33 = vadd.f32 %v3507_v50, %v3475_v29  ;;  %v3360_v34 = vadd.f32 %v3344_v24, %v3312_v14  ;;  %v3361_v15 = vadd.f32 %v3345_v2, %v3313_v39  ;;  %v3427_v55 = vsel %vm9066_vm10, %v7946_v8, 0.0  ;;  %v8035_v56 = vpop.f32.mrf.mxu1  ;;  %v8047_v14 = vld [vmem:[#allocation2 + $0x179] sm:$0xff] }
 0x26e   : > { %v3460_v26 = vsel %vm9235_vm1, %v7994_v51, 0.0  ;;  %v3461_v58 = vsel %vm9235_vm1, %v7996_v20, 0.0  ;;  %v3570_v18 = vadd.f32 %v3554_v47, %v3522_v7  ;;  %v3508_v50 = vsel %vm6194_vm9, %v3492_v40, 0.0 }
 0x26f   : > { %v3571_v19 = vadd.f32 %v3555_v42, %v3523_v33  ;;  %v3394_v23 = vadd.f32 %v3378_v12, %v3360_v34  ;;  %v3395_v8 = vadd.f32 %v3379_v43, %v3361_v15  ;;  %v3509_v9 = vsel %vm6194_vm9, %v3493_v38, 0.0  ;;  %v8058_v43 = vld [vmem:[#allocation2 + $0x181] sm:$0xff] }
 0x270   : > { %v3556_v37 = vsel %vm9202_vm4, %v3540_v27, 0.0  ;;  %v3557_v61 = vsel %vm9202_vm4, %v3541_v30, 0.0  ;;  %v3202_v63 = vsel %vm9246_vm5, %v3186_v49, 0.0  ;;  %v3203_v28 = vsel %vm9247_vm12, %v3187_v16, 0.0  ;;  %v3495_v38 = vld [vmem:[#allocation2 + $0x182] sm:$0xff]  ;;  %v8065_v27 = vpop.f32.mrf.mxu1 }
 0x271   : > { %v3583_v47 = vpack.c.bf16 %v3571_v19, %v3570_v18  ;;  %v3442_v42 = vadd.f32 %v3426_v53, %v3394_v23  ;;  %v3443_v41 = vadd.f32 %v3427_v55, %v3395_v8  ;;  %v3250_v22 = vsel %vm9225_vm14, %v3234_v60, 0.0  ;;  %v3494_v53 = vld [vmem:[#allocation2 + $0x17a] sm:$0xff]  ;;  %v3236_v19 = vld [vmem:[#allocation2 + $0x165] sm:$0xff]  ;;  %v3237_v23 = vld [vmem:[#allocation2 + $0x16d] sm:$0xff] }
 0x272   : > { %v3251_v13 = vsel %vm9225_vm14, %v3235_v0, 0.0  ;;  %v3298_v6 = vsel %vm9226_vm15, %v3282_v5, 0.0  ;;  %v3266_v4 = vadd.f32 %v3250_v22, %v3202_v63  ;;  %v3299_v29 = vsel %vm9226_vm15, %v3283_v57, 0.0  ;;  %v8091_v57 = vpop.f32.mrf.mxu1 }
 0x273   : > { %4417 = vmatmul.mubr.bf16.gmra.mxu1 %v3583_v47  ;;  %v3476_v46 = vadd.f32 %v3460_v26, %v3442_v42  ;;  %v3267_v36 = vadd.f32 %v3251_v13, %v3203_v28  ;;  %v3477_v24 = vadd.f32 %v3461_v58, %v3443_v41  ;;  %v3346_v39 = vsel %vm9064_vm0, %v7983_v44, 0.0  ;;  %v8063_v44 = vld [vmem:[#allocation2 + $0x17b] sm:$0xff]  ;;  %v3543_v26 = vld [vmem:[#allocation2 + $0x183] sm:$0xff] }
 0x274   : > { %v3347_v2 = vsel %vm9064_vm0, %v7985_v45, 0.0  ;;  %v3380_v12 = vsel %vm9056_vm11, %v8033_v10, 0.0  ;;  %v3314_v7 = vadd.f32 %v3298_v6, %v3266_v4  ;;  %v3381_v34 = vsel %vm9056_vm11, %v8043_v25, 0.0 }
 0x275   : > { %v3524_v40 = vadd.f32 %v3508_v50, %v3476_v46  ;;  %v3315_v33 = vadd.f32 %v3299_v29, %v3267_v36  ;;  %v3525_v45 = vadd.f32 %v3509_v9, %v3477_v24  ;;  %v3428_v30 = vsel %vm9066_vm10, %v7994_v51, 0.0  ;;  %v8102_v46 = vld [vmem:[#allocation2 + $0x17f] sm:$0xff]  ;;  %v8114_v24 = vld [vmem:[#allocation2 + $0x189] sm:$0xff] }
 0x276   : > { %v3429_v15 = vsel %vm9066_vm10, %v7996_v20, 0.0  ;;  %v3462_v55 = vsel %vm9235_vm1, %v8047_v14, 0.0  ;;  %v3362_v49 = vadd.f32 %v3346_v39, %v3314_v7  ;;  %v3463_v18 = vsel %vm9235_vm1, %v8058_v43, 0.0  ;;  %v8116_v7 = vld [vmem:[#allocation2 + $0x191] sm:$0xff] }
 0x277   : > { %v3572_v58 = vadd.f32 %v3556_v37, %v3524_v40  ;;  %v3363_v16 = vadd.f32 %v3347_v2, %v3315_v33  ;;  %v3573_v50 = vadd.f32 %v3557_v61, %v3525_v45  ;;  %v3510_v51 = vsel %vm6194_vm9, %v3494_v53, 0.0  ;;  %v3284_v37 = vld [vmem:[#allocation2 + $0x166] sm:$0xff]  ;;  %v3285_v61 = vld [vmem:[#allocation2 + $0x16e] sm:$0xff]  ;;  %v8118_v53 = vpop.f32.mrf.mxu1 }
 0x278   : > { %v3511_v20 = vsel %vm6194_vm9, %v3495_v38, 0.0  ;;  %v3558_v60 = vsel %vm9202_vm4, %v8063_v44, 0.0  ;;  %v3396_v0 = vadd.f32 %v3380_v12, %v3362_v49  ;;  %v3559_v8 = vsel %vm9202_vm4, %v3543_v26, 0.0  ;;  %v3496_v33 = vld [vmem:[#allocation2 + $0x18a] sm:$0xff] }
 0x279   : > { %v3397_v5 = vadd.f32 %v3381_v34, %v3363_v16  ;;  %v3204_v9 = vsel %vm9248_vm7, %v7643_v62, 0.0  ;;  %v3584_v47 = vpack.c.bf16 %v3573_v50, %v3572_v58  ;;  %v3205_v42 = vsel %vm9241_vm2, %v7728_v35, 0.0  ;;  %v8100_v62 = vld [vmem:[#allocation2 + $0x177] sm:$0xff]  ;;  %v3544_v26 = vld [vmem:[#allocation2 + $0x18b] sm:$0xff] }
 0x27a   : > { %v3252_v63 = vsel %vm9225_vm14, %v3236_v19, 0.0  ;;  %v3253_v28 = vsel %vm9225_vm14, %v3237_v23, 0.0  ;;  %v3444_v41 = vadd.f32 %v3428_v30, %v3396_v0  ;;  %v3300_v4 = vsel %vm9226_vm15, %v3284_v37, 0.0  ;;  %v3497_v34 = vld [vmem:[#allocation2 + $0x192] sm:$0xff]  ;;  %v3190_v49 = vld [vmem:[#allocation2 + $0x188] sm:$0xff]  ;;  %v3239_v0 = vld [vmem:[#allocation2 + $0x17d] sm:$0xff]  ;;  %v8142_v37 = vpop.f32.mrf.mxu1 }
 0x27b   : > { %v3445_v22 = vadd.f32 %v3429_v15, %v3397_v5  ;;  %v3268_v13 = vadd.f32 %v3252_v63, %v3204_v9  ;;  %v3269_v6 = vadd.f32 %v3253_v28, %v3205_v42  ;;  %4420 = vmatprep.mubr.bf16.mxu1 %v3584_v47  ;;  %v3301_v35 = vsel %vm9226_vm15, %v3285_v61, 0.0  ;;  %v3545_v58 = vld [vmem:[#allocation2 + $0x193] sm:$0xff]  ;;  %v3287_v9 = vld [vmem:[#allocation2 + $0x17e] sm:$0xff] }
 0x27c   : > { %v3348_v36 = vsel %vm9064_vm0, %v8033_v10, 0.0  ;;  %v3349_v29 = vsel %vm9064_vm0, %v8043_v25, 0.0  ;;  %v3478_v39 = vadd.f32 %v3462_v55, %v3444_v41  ;;  %v3382_v10 = vsel %vm9056_vm11, %v8100_v62, 0.0  ;;  %v3238_v19 = vld [vmem:[#allocation2 + $0x175] sm:$0xff] }
 0x27d   : > { %v3479_v2 = vadd.f32 %v3463_v18, %v3445_v22  ;;  %v3316_v12 = vadd.f32 %v3300_v4, %v3268_v13  ;;  %v3317_v40 = vadd.f32 %v3301_v35, %v3269_v6  ;;  %v3383_v25 = vsel %vm9056_vm11, %v8102_v46, 0.0  ;;  %v3286_v5 = vld [vmem:[#allocation2 + $0x176] sm:$0xff]  ;;  %v3368_v22 = vld [vmem:[#allocation2 + $0x187] sm:$0xff] }
 0x27e   : > { %v3430_v38 = vsel %vm9066_vm10, %v8047_v14, 0.0  ;;  %v3431_v44 = vsel %vm9066_vm10, %v8058_v43, 0.0  ;;  %v3526_v45 = vadd.f32 %v3510_v51, %v3478_v39  ;;  %v3464_v16 = vsel %vm9235_vm1, %v8114_v24, 0.0  ;;  %v3369_v13 = vld [vmem:[#allocation2 + $0x18f] sm:$0xff] }
 0x27f   : > { %v3527_v30 = vadd.f32 %v3511_v20, %v3479_v2  ;;  %v3364_v15 = vadd.f32 %v3348_v36, %v3316_v12  ;;  %v3365_v55 = vadd.f32 %v3349_v29, %v3317_v40  ;;  %v3465_v18 = vsel %vm9235_vm1, %v8116_v7, 0.0  ;;  %v3450_v12 = vld [vmem:[#allocation2 + $0x199] sm:$0xff]  ;;  %v3451_v40 = vld [vmem:[#allocation2 + $0x1a1] sm:$0xff] }
 0x280   : > { %v3512_v14 = vsel %vm6194_vm9, %v3496_v33, 0.0  ;;  %v3513_v43 = vsel %vm6194_vm9, %v3497_v34, 0.0  ;;  %v3574_v23 = vadd.f32 %v3558_v60, %v3526_v45  ;;  %v3560_v61 = vsel %vm9202_vm4, %v3544_v26, 0.0  ;;  %v8164_v33 = vpop.f32.mrf.mxu1 }
 0x281   : > { %v3575_v50 = vadd.f32 %v3559_v8, %v3527_v30  ;;  %v3398_v51 = vadd.f32 %v3382_v10, %v3364_v15  ;;  %v3399_v20 = vadd.f32 %v3383_v25, %v3365_v55  ;;  %v3561_v47 = vsel %vm9202_vm4, %v3545_v58, 0.0  ;;  %v3498_v25 = vld [vmem:[#allocation2 + $0x19a] sm:$0xff]  ;;  %v3499_v30 = vld [vmem:[#allocation2 + $0x1a2] sm:$0xff] }
 0x282   : > { %v3206_v42 = vsel %vm9249_vm13, %v3190_v49, 0.0  ;;  %v3207_v60 = vsel %vm9250_vm3, %v7707_v17, 0.0  ;;  %v3254_v41 = vsel %vm9225_vm14, %v3238_v19, 0.0  ;;  %v3255_v6 = vsel %vm9225_vm14, %v3239_v0, 0.0  ;;  %v3546_v15 = vld [vmem:[#allocation2 + $0x19b] sm:$0xff]  ;;  %v8189_v19 = vpop.f32.mrf.mxu1 }
 0x283   : > { %v3585_v8 = vpack.c.bf16 %v3575_v50, %v3574_v23  ;;  %v3446_v63 = vadd.f32 %v3430_v38, %v3398_v51  ;;  %v3447_v28 = vadd.f32 %v3431_v44, %v3399_v20  ;;  %v3270_v4 = vadd.f32 %v3254_v41, %v3206_v42  ;;  %v4165_v58 = vld [vmem:[%s4882_s9 + $0x8] sm:$0xff]   ;;  %v8184_v49 = vld [vmem:[#allocation8 + $0x2] ss:$0 sm:$0xff]  ;;  %v8197_v50 = vld [vmem:[#allocation8 + $0x3] ss:$0 sm:$0xff] }
 0x284   : > { %v3302_v35 = vsel %vm9226_vm15, %v3286_v5, 0.0  ;;  %v3303_v36 = vsel %vm9226_vm15, %v3287_v9, 0.0  ;;  %v3271_v39 = vadd.f32 %v3255_v6, %v3207_v60  ;;  %v3350_v2 = vsel %vm9064_vm0, %v8100_v62, 0.0 }
 0x285   : > { %4421 = vmatmul.mubr.bf16.gmra.mxu1 %v3585_v8  ;;  %v3480_v17 = vadd.f32 %v3464_v16, %v3446_v63  ;;  %v3481_v29 = vadd.f32 %v3465_v18, %v3447_v28  ;;  %v3318_v52 = vadd.f32 %v3302_v35, %v3270_v4  ;;  %v3351_v34 = vsel %vm9064_vm0, %v8102_v46, 0.0  ;;  %v4167_v63 = vld [vmem:[%s4882_s9 + $0x18] sm:$0xff]   ;;  %vm9252_vm0 = vmmov %vm9241_vm2 }
 0x286   : > { %v3384_v1 = vsel %vm9056_vm11, %v3368_v22, 0.0  ;;  %v3385_v10 = vsel %vm9056_vm11, %v3369_v13, 0.0  ;;  %v3319_v62 = vadd.f32 %v3303_v36, %v3271_v39  ;;  %v3432_v45 = vsel %vm9066_vm10, %v8114_v24, 0.0  ;;  %v4166_v39 = vld [vmem:[%s4882_s9 + $0x10] sm:$0xff]   ;;  %vm9254_vm11 = vmmov %vm9252_vm0 }
 0x287   : > { %v3528_v38 = vadd.f32 %v3512_v14, %v3480_v17  ;;  %v3529_v44 = vadd.f32 %v3513_v43, %v3481_v29  ;;  %v3366_v55 = vadd.f32 %v3350_v2, %v3318_v52  ;;  %v3433_v46 = vsel %vm9066_vm10, %v8116_v7, 0.0  ;;  %v4070_v43 = vld [vmem:[%s4882_s9] sm:$0xff]   ;;  %vm9253_vm10 = vmmov %vm9252_vm0 }
 0x288   : > { %v3466_v11 = vsel %vm9235_vm1, %v3450_v12, 0.0  ;;  %v3467_v26 = vsel %vm9235_vm1, %v3451_v40, 0.0  ;;  %v3367_v18 = vadd.f32 %v3351_v34, %v3319_v62  ;;  %v3514_v14 = vsel %vm6194_vm9, %v3498_v25, 0.0  ;;  %vm9256_vm14 = vmmov %vm9252_vm0 }
 0x289   : > { %v3576_v16 = vadd.f32 %v3560_v61, %v3528_v38  ;;  %v3577_v24 = vadd.f32 %v3561_v47, %v3529_v44  ;;  %v3400_v32 = vadd.f32 %v3384_v1, %v3366_v55  ;;  %v3515_v7 = vsel %vm6194_vm9, %v3499_v30, 0.0  ;;  %vm9251_vm9 = vmmov %vm9241_vm2 }
 0x28a   : > { %v3562_v48 = vsel %vm9202_vm4, %v3546_v15, 0.0  ;;  %v3563_v23 = vsel %vm9202_vm4, %v3547_v31, 0.0  ;;  %v3401_v20 = vadd.f32 %v3385_v10, %v3367_v18  ;;  %v4075_v0 = vunpack.c.l.bf16 %v4165_v58  ;;  %vm9255_vm4 = vmmov %vm9252_vm0 }
 0x28b   : > { %v3586_v51 = vpack.c.bf16 %v3577_v24, %v3576_v16  ;;  %v2382_v5 = vmul.f32 %v8010_v3, %v8184_v49  ;;  %v3448_v9 = vadd.f32 %v3432_v45, %v3400_v32  ;;  %v4071_v61 = vunpack.c.l.bf16 %v4070_v43  ;;  %v4358_v3 = vpop.f32.mrf.mxu1  ;;  %v4168_v16 = vld [vmem:[%s4882_s9 + $0x20] sm:$0xff]   ;;  %vm9257_vm15 = vmmov %vm9252_vm0 }
 0x28c   : > { %v2380_v59 = vmul.f32 %v8184_v49, %v8035_v56  ;;  %v4076_v47 = vunpack.c.h.bf16 %v4165_v58  ;;  %v3449_v42 = vadd.f32 %v3433_v46, %v3401_v20  ;;  %v2361_v21 = vsel %vm9251_vm9, %v4075_v0, 0.0  ;;  %v4169_v46 = vld [vmem:[%s4882_s9 + $0x28] sm:$0xff]   ;;  %vm9258_vm1 = vmmov %vm9252_vm0 }
 0x28d   : > { %4424 = vmatprep.mubr.bf16.mxu1 %v3586_v51  ;;  %v2403_v60 = vadd.f32 %v8197_v50, %v2382_v5  ;;  %v2383_v8 = vmul.f32 %v8065_v27, %v8184_v49  ;;  %v3482_v28 = vadd.f32 %v3466_v11, %v3448_v9  ;;  %v2359_v41 = vsel %vm9252_vm0, %v4071_v61, 0.0  ;;  %v2296_v34 = vpop.f32.mrf.mxu1  ;;  %vm9259_vm6 = vmmov %vm9252_vm0 }
 0x28e   : > { %v2401_v56 = vadd.f32 %v8197_v50, %v2380_v59  ;;  %v2362_v22 = vsel %vm9253_vm10, %v4076_v47, 0.0  ;;  %v3483_v13 = vadd.f32 %v3467_v26, %v3449_v42  ;;  %v4072_v35 = vunpack.c.h.bf16 %v4070_v43  ;;  %vm9260_vm8 = vmmov %vm9252_vm0 }
 0x28f   : > { %v2419_v6 = vadd.f32 %v2403_v60, %v2361_v21  ;;  %v2404_v4 = vadd.f32 %v8197_v50, %v2383_v8  ;;  %v3530_v36 = vadd.f32 %v3514_v14, %v3482_v28  ;;  %v2381_v27 = vmul.f32 %v8184_v49, %v8091_v57  ;;  %v4359_v24 = vpop.f32.mrf.mxu1  ;;  %vm9261_vm5 = vmmov %vm9252_vm0 }
 0x290   : > { %v2417_v17 = vadd.f32 %v2401_v56, %v2359_v41  ;;  %v4083_v29 = vunpack.c.l.bf16 %v4167_v63  ;;  %v3531_v2 = vadd.f32 %v3515_v7, %v3483_v13  ;;  %v2360_v52 = vsel %vm9254_vm11, %v4072_v35, 0.0  ;;  %v4171_v41 = vld [vmem:[%s4882_s9 + $0x38] sm:$0xff]   ;;  %vm9262_vm12 = vmmov %vm9252_vm0 }
 0x291   : > { %v2435_v12 = vmax.f32 %v2419_v6, 0.0  ;;  %v2420_v40 = vadd.f32 %v2404_v4, %v2362_v22  ;;  %v3578_v1 = vadd.f32 %v3562_v48, %v3530_v36  ;;  %v2402_v25 = vadd.f32 %v8197_v50, %v2381_v27  ;;  %vm9263_vm7 = vmmov %vm9252_vm0 }
 0x292   : > { %v2433_v10 = vmax.f32 %v2417_v17, 0.0  ;;  %v2365_v38 = vsel %vm9255_vm4, %v4083_v29, 0.0  ;;  %v3579_v44 = vadd.f32 %v3563_v23, %v3531_v2  ;;  %v2386_v62 = vmul.f32 %v8118_v53, %v8184_v49  ;;  %v4170_v17 = vld [vmem:[%s4882_s9 + $0x30] sm:$0xff]   ;;  %vm9264_vm2 = vmmov %vm9252_vm0 }
 0x293   : > { %2451 = vst [vmem:[%s8226_s20 + $0x10] sm:$0xff] %v2435_v12  ;;  %v2436_v57 = vmax.f32 %v2420_v40, 0.0  ;;  %v4079_v45 = vunpack.c.l.bf16 %v4166_v39  ;;  %v2418_v30 = vadd.f32 %v2402_v25, %v2360_v52  ;;  %v2384_v15 = vmul.f32 %v8184_v49, %v8142_v37  ;;  %vm9265_vm13 = vmmov %vm9252_vm0 }
 0x294   : > { %2449 = vst [vmem:[%s8226_s20] sm:$0xff] %v2433_v10  ;;  %v4084_v31 = vunpack.c.h.bf16 %v4167_v63  ;;  %v2387_v55 = vmul.f32 %v8164_v33, %v8184_v49  ;;  %v3587_v11 = vpack.c.bf16 %v3579_v44, %v3578_v1  ;;  %v2407_v26 = vadd.f32 %v8197_v50, %v2386_v62  ;;  %vm9266_vm3 = vmmov %vm9252_vm0 }
 0x295   : > { %2452 = vst [vmem:[%s8226_s20 + $0x18] sm:$0xff] %v2436_v57  ;;  %v2363_v58 = vsel %vm9256_vm14, %v4079_v45, 0.0  ;;  %v4080_v53 = vunpack.c.h.bf16 %v4166_v39  ;;  %v2434_v18 = vmax.f32 %v2418_v30, 0.0  ;;  %v2405_v14 = vadd.f32 %v8197_v50, %v2384_v15  ;;  %vm9267_vm9 = vmmov %vm9252_vm0 }
 0x296   : > { %v2366_v37 = vsel %vm9257_vm15, %v4084_v31, 0.0  ;;  %v2408_v33 = vadd.f32 %v8197_v50, %v2387_v55  ;;  %4425 = vmatmul.mubr.bf16.gmra.mxu1 %v3587_v11  ;;  %v2423_v43 = vadd.f32 %v2407_v26, %v2365_v38  ;;  %v2385_v7 = vmul.f32 %v8184_v49, %v8189_v19  ;;  %v2299_v19 = vpop.f32.mrf.mxu1  ;;  %vm9268_vm10 = vmmov %vm9252_vm0 }
 0x297   : > { %v2364_v32 = vsel %vm9258_vm1, %v4080_v53, 0.0  ;;  %v4091_v48 = vunpack.c.l.bf16 %v4169_v46  ;;  %2450 = vst [vmem:[%s8226_s20 + $0x8] sm:$0xff] %v2434_v18  ;;  %v2421_v23 = vadd.f32 %v2405_v14, %v2363_v58  ;;  %v2390_v20 = vmul.f32 %v4358_v3, %v8184_v49  ;;  %vm9269_vm11 = vmmov %vm9252_vm0 }
 0x298   : > { %v2424_v51 = vadd.f32 %v2408_v33, %v2366_v37  ;;  %v4087_v0 = vunpack.c.l.bf16 %v4168_v16  ;;  %v2439_v5 = vmax.f32 %v2423_v43, 0.0  ;;  %v2406_v9 = vadd.f32 %v8197_v50, %v2385_v7  ;;  %vm9270_vm4 = vmmov %vm9252_vm0 }
 0x299   : > { %v2369_v61 = vsel %vm9259_vm6, %v4091_v48, 0.0  ;;  %v2388_v59 = vmul.f32 %v8184_v49, %v2296_v34  ;;  %v2437_v47 = vmax.f32 %v2421_v23, 0.0  ;;  %v2411_v21 = vadd.f32 %v8197_v50, %v2390_v20  ;;  %v4172_v20 = vld [vmem:[%s4882_s9 + $0x40] sm:$0xff]   ;;  %vm9271_vm14 = vmmov %vm9252_vm0 }
 0x29a   : > { %v2440_v42 = vmax.f32 %v2424_v51, 0.0  ;;  %v2367_v60 = vsel %vm9260_vm8, %v4087_v0, 0.0  ;;  %2455 = vst [vmem:[%s8226_s20 + $0x30] sm:$0xff] %v2439_v5  ;;  %v2422_v8 = vadd.f32 %v2406_v9, %v2364_v32  ;;  %v4092_v3 = vunpack.c.h.bf16 %v4169_v46  ;;  %v4173_v51 = vld [vmem:[%s4882_s9 + $0x48] sm:$0xff]   ;;  %vm9272_vm15 = vmmov %vm9252_vm0 }
 0x29b   : > { %v2409_v63 = vadd.f32 %v8197_v50, %v2388_v59  ;;  %v2391_v28 = vmul.f32 %v4359_v24, %v8184_v49  ;;  %2453 = vst [vmem:[%s8226_s20 + $0x20] sm:$0xff] %v2437_v47  ;;  %v2427_v56 = vadd.f32 %v2411_v21, %v2369_v61  ;;  %v4088_v22 = vunpack.c.h.bf16 %v4168_v16  ;;  %vm9273_vm1 = vmmov %vm9252_vm0 }
 0x29c   : > { %2456 = vst [vmem:[%s8226_s20 + $0x38] sm:$0xff] %v2440_v42  ;;  %v2389_v13 = vmul.f32 %v8184_v49, %v2299_v19  ;;  %v2438_v6 = vmax.f32 %v2422_v8, 0.0  ;;  %v2370_v35 = vsel %vm9261_vm5, %v4092_v3, 0.0  ;;  %v4099_v2 = vunpack.c.l.bf16 %v4171_v41  ;;  %vm9274_vm6 = vmmov %vm9252_vm0 }
 0x29d   : > { %v2425_v4 = vadd.f32 %v2409_v63, %v2367_v60  ;;  %v2412_v36 = vadd.f32 %v8197_v50, %v2391_v28  ;;  %v2443_v27 = vmax.f32 %v2427_v56, 0.0  ;;  %v2368_v29 = vsel %vm9262_vm12, %v4088_v22, 0.0  ;;  %v4362_v34 = vpop.f32.mrf.mxu1  ;;  %vm9275_vm8 = vmmov %vm9252_vm0 }
 0x29e   : > { %v2410_v39 = vadd.f32 %v8197_v50, %v2389_v13  ;;  %2454 = vst [vmem:[%s8226_s20 + $0x28] sm:$0xff] %v2438_v6  ;;  %v4095_v1 = vunpack.c.l.bf16 %v4170_v17  ;;  %v2394_v25 = vmul.f32 %v4362_v34, %v8184_v49  ;;  %v2373_v44 = vsel %vm9263_vm7, %v4099_v2, 0.0  ;;  %vm9276_vm5 = vmmov %vm9252_vm0 }
 0x29f   : > { %v2441_v12 = vmax.f32 %v2425_v4, 0.0  ;;  %v2428_v40 = vadd.f32 %v2412_v36, %v2370_v35  ;;  %2459 = vst [vmem:[%s8226_s20 + $0x50] sm:$0xff] %v2443_v27  ;;  %v2312_v57 = vpop.f32.mrf.mxu1  ;;  %v4100_v62 = vunpack.c.h.bf16 %v4171_v41  ;;  %v4096_v55 = vunpack.c.h.bf16 %v4170_v17  ;;  %vm9277_vm12 = vmmov %vm9252_vm0 }
 0x2a0   : > { %v2426_v52 = vadd.f32 %v2410_v39, %v2368_v29  ;;  %v2415_v45 = vadd.f32 %v8197_v50, %v2394_v25  ;;  %v2392_v30 = vmul.f32 %v8184_v49, %v2312_v57  ;;  %v2371_v15 = vsel %vm9264_vm2, %v4095_v1, 0.0  ;;  %vm9278_vm7 = vmmov %vm9252_vm0 }
 0x2a1   : > { %2457 = vst [vmem:[%s8226_s20 + $0x40] sm:$0xff] %v2441_v12  ;;  %v2444_v10 = vmax.f32 %v2428_v40, 0.0  ;;  %v4363_v31 = vpop.f32.mrf.mxu1  ;;  %v2374_v58 = vsel %vm9265_vm13, %v4100_v62, 0.0  ;;  %v2372_v37 = vsel %vm9266_vm3, %v4096_v55, 0.0  ;;  %v4107_v0 = vunpack.c.l.bf16 %v4173_v51  ;;  %v4175_v40 = vld [vmem:[%s4882_s9 + $0x58] sm:$0xff]   ;;  %vm9279_vm2 = vmmov %vm9252_vm0 }
 0x2a2   : > { %v2442_v38 = vmax.f32 %v2426_v52, 0.0  ;;  %v2431_v46 = vadd.f32 %v2415_v45, %v2373_v44  ;;  %v2413_v11 = vadd.f32 %v8197_v50, %v2392_v30  ;;  %v2395_v26 = vmul.f32 %v4363_v31, %v8184_v49  ;;  %v4174_v52 = vld [vmem:[%s4882_s9 + $0x50] sm:$0xff]   ;;  %vm9280_vm13 = vmmov %vm9252_vm0 }
 0x2a3   : > { %2460 = vst [vmem:[%s8226_s20 + $0x58] sm:$0xff] %v2444_v10  ;;  %v2315_v53 = vpop.f32.mrf.mxu1  ;;  %v4103_v9 = vunpack.c.l.bf16 %v4172_v20  ;;  %v3072_v59 = vsel %vm9267_vm9, %v4107_v0, 0.0  ;;  %v4108_v47 = vunpack.c.h.bf16 %v4173_v51  ;;  %v4104_v63 = vunpack.c.h.bf16 %v4172_v20  ;;  %v4176_v51 = vld [vmem:[%s4882_s9 + $0x60] sm:$0xff]   ;;  %vm9281_vm3 = vmmov %vm9252_vm0 }
 0x2a4   : > { %2458 = vst [vmem:[%s8226_s20 + $0x48] sm:$0xff] %v2442_v38  ;;  %v2447_v16 = vmax.f32 %v2431_v46, 0.0  ;;  %v2429_v24 = vadd.f32 %v2413_v11, %v2371_v15  ;;  %v2416_v18 = vadd.f32 %v8197_v50, %v2395_v26  ;;  %v2393_v14 = vmul.f32 %v8184_v49, %v2315_v53  ;;  %vm9282_vm9 = vmmov %vm9252_vm0 }
 0x2a5   : > { %v3070_v60 = vsel %vm9252_vm0, %v4103_v9, 0.0  ;;  %v3073_v56 = vsel %vm9268_vm10, %v4108_v47, 0.0  ;;  %v3071_v36 = vsel %vm9269_vm11, %v4104_v63, 0.0  ;;  %v4115_v34 = vunpack.c.l.bf16 %v4175_v40  ;;  %vm9283_vm10 = vmmov %vm9252_vm0 }
 0x2a6   : > { %2463 = vst [vmem:[%s8226_s20 + $0x70] sm:$0xff] %v2447_v16  ;;  %v2445_v33 = vmax.f32 %v2429_v24, 0.0  ;;  %v2432_v43 = vadd.f32 %v2416_v18, %v2374_v58  ;;  %v2414_v32 = vadd.f32 %v8197_v50, %v2393_v14  ;;  %v4111_v10 = vunpack.c.l.bf16 %v4174_v52  ;;  %vm9284_vm11 = vmmov %vm9252_vm0 }
 0x2a7   : > { %v3076_v38 = vsel %vm9270_vm4, %v4115_v34, 0.0  ;;  %v4116_v57 = vunpack.c.h.bf16 %v4175_v40  ;;  %v4112_v31 = vunpack.c.h.bf16 %v4174_v52  ;;  %v4178_v40 = vld [vmem:[%s4882_s9 + $0x70] sm:$0xff]   ;;  %vm9285_vm4 = vmmov %vm9252_vm0 }
 0x2a8   : > { %2461 = vst [vmem:[%s8226_s20 + $0x60] sm:$0xff] %v2445_v33  ;;  %v2448_v7 = vmax.f32 %v2432_v43, 0.0  ;;  %v2430_v48 = vadd.f32 %v2414_v32, %v2372_v37  ;;  %v3074_v30 = vsel %vm9271_vm14, %v4111_v10, 0.0  ;;  %vm9286_vm14 = vmmov %vm9252_vm0 }
 0x2a9   : > { %v3077_v26 = vsel %vm9272_vm15, %v4116_v57, 0.0  ;;  %v3075_v14 = vsel %vm9273_vm1, %v4112_v31, 0.0  ;;  %vm9287_vm15 = vmmov %vm9252_vm0 }
 0x2aa   : > { %2464 = vst [vmem:[%s8226_s20 + $0x78] sm:$0xff] %v2448_v7  ;;  %v2446_v23 = vmax.f32 %v2430_v48, 0.0  ;;  %vm9288_vm1 = vmmov %vm9252_vm0 }
 0x2ac   : > { %2462 = vst [vmem:[%s8226_s20 + $0x68] sm:$0xff] %v2446_v23  ;;  %v4177_v23 = vld [vmem:[%s4882_s9 + $0x68] sm:$0xff]  }
 0x2ad   : > { %v4123_v20 = vunpack.c.l.bf16 %v4177_v23 }
 0x2af   : > { %v4382_v5 = vpop.f32.mrf.mxu1 }
 0x2b0   : > { %v3093_v61 = vmul.f32 %v4382_v5, %v8184_v49  ;;  %v4119_v5 = vunpack.c.l.bf16 %v4176_v51 }
 0x2b1   : > { %v2975_v19 = vpop.f32.mrf.mxu1 }
 0x2b2   : > { %v3114_v42 = vadd.f32 %v8197_v50, %v3093_v61  ;;  %v3091_v21 = vmul.f32 %v8184_v49, %v2975_v19  ;;  %v3080_v61 = vsel %vm9274_vm6, %v4123_v20, 0.0  ;;  %v4124_v19 = vunpack.c.h.bf16 %v4177_v23  ;;  %vm9289_vm6 = vmmov %vm9252_vm0 }
 0x2b3   : > { %v4383_v8 = vpop.f32.mrf.mxu1 }
 0x2b4   : > { %v3130_v3 = vadd.f32 %v3114_v42, %v3072_v59  ;;  %v3112_v28 = vadd.f32 %v8197_v50, %v3091_v21  ;;  %v3094_v41 = vmul.f32 %v4383_v8, %v8184_v49  ;;  %v3078_v21 = vsel %vm9275_vm8, %v4119_v5, 0.0  ;;  %vm9290_vm8 = vmmov %vm9252_vm0 }
 0x2b5   : > { %v2978_v22 = vpop.f32.mrf.mxu1  ;;  %v4120_v8 = vunpack.c.h.bf16 %v4176_v51 }
 0x2b6   : > { %v3146_v13 = vmax.f32 %v3130_v3, 0.0  ;;  %v3128_v6 = vadd.f32 %v3112_v28, %v3070_v60  ;;  %v3115_v4 = vadd.f32 %v8197_v50, %v3094_v41  ;;  %v3092_v35 = vmul.f32 %v8184_v49, %v2978_v22 }
 0x2b7   : > { %v3081_v41 = vsel %vm9276_vm5, %v4124_v19, 0.0  ;;  %vm9291_vm5 = vmmov %vm9252_vm0 }
 0x2b8   : > { %3162 = vst [vmem:[%s8226_s20 + $0x90] sm:$0xff] %v3146_v13  ;;  %v3144_v17 = vmax.f32 %v3128_v6, 0.0  ;;  %v3131_v27 = vadd.f32 %v3115_v4, %v3073_v56  ;;  %v3113_v29 = vadd.f32 %v8197_v50, %v3092_v35  ;;  %v3079_v35 = vsel %vm9277_vm12, %v4120_v8, 0.0  ;;  %vm9292_vm12 = vmmov %vm9252_vm0 }
 0x2ba   : > { %3160 = vst [vmem:[%s8226_s20 + $0x80] sm:$0xff] %v3144_v17  ;;  %v3147_v39 = vmax.f32 %v3131_v27, 0.0  ;;  %v3129_v2 = vadd.f32 %v3113_v29, %v3071_v36 }
 0x2bc   : > { %3163 = vst [vmem:[%s8226_s20 + $0x98] sm:$0xff] %v3147_v39  ;;  %v3145_v12 = vmax.f32 %v3129_v2, 0.0 }
 0x2be   : > { %3161 = vst [vmem:[%s8226_s20 + $0x88] sm:$0xff] %v3145_v12  ;;  %v4179_v12 = vld [vmem:[%s4882_s9 + $0x78] sm:$0xff]  }
 0x2bf   : > { %v4131_v52 = vunpack.c.l.bf16 %v4179_v12 }
 0x2d4   : > { %v4386_v1 = vpop.f32.mrf.mxu1 }
 0x2d5   : > { %v3097_v25 = vmul.f32 %v4386_v1, %v8184_v49  ;;  %v4127_v1 = vunpack.c.l.bf16 %v4178_v40 }
 0x2d6   : > { %v2991_v44 = vpop.f32.mrf.mxu1 }
 0x2d7   : > { %v3118_v62 = vadd.f32 %v8197_v50, %v3097_v25  ;;  %v3095_v45 = vmul.f32 %v8184_v49, %v2991_v44  ;;  %v3084_v25 = vsel %vm9278_vm7, %v4131_v52, 0.0  ;;  %v4132_v44 = vunpack.c.h.bf16 %v4179_v12  ;;  %v4182_v12 = vld [vmem:[%s4882_s9 + $0x90] sm:$0xff]   ;;  %vm9293_vm7 = vmmov %vm9252_vm0 }
 0x2d8   : > { %v4387_v15 = vpop.f32.mrf.mxu1 }
 0x2d9   : > { %v3134_v55 = vadd.f32 %v3118_v62, %v3076_v38  ;;  %v3116_v46 = vadd.f32 %v8197_v50, %v3095_v45  ;;  %v3098_v11 = vmul.f32 %v4387_v15, %v8184_v49  ;;  %v3082_v45 = vsel %vm9279_vm2, %v4127_v1, 0.0  ;;  %vm9294_vm2 = vmmov %vm9252_vm0 }
 0x2da   : > { %v2994_v58 = vpop.f32.mrf.mxu1  ;;  %v4128_v15 = vunpack.c.h.bf16 %v4178_v40 }
 0x2db   : > { %v3150_v53 = vmax.f32 %v3134_v55, 0.0  ;;  %v3132_v16 = vadd.f32 %v3116_v46, %v3074_v30  ;;  %v3119_v24 = vadd.f32 %v8197_v50, %v3098_v11  ;;  %v3096_v18 = vmul.f32 %v8184_v49, %v2994_v58  ;;  %v4181_v58 = vld [vmem:[%s4882_s9 + $0x88] sm:$0xff]  }
 0x2dc   : > { %v3085_v11 = vsel %vm9280_vm13, %v4132_v44, 0.0  ;;  %vm9295_vm13 = vmmov %vm9252_vm0 }
 0x2dd   : > { %3166 = vst [vmem:[%s8226_s20 + $0xb0] sm:$0xff] %v3150_v53  ;;  %v3148_v37 = vmax.f32 %v3132_v16, 0.0  ;;  %v3135_v33 = vadd.f32 %v3119_v24, %v3077_v26  ;;  %v3117_v43 = vadd.f32 %v8197_v50, %v3096_v18 }
 0x2df   : > { %3164 = vst [vmem:[%s8226_s20 + $0xa0] sm:$0xff] %v3148_v37  ;;  %v3151_v32 = vmax.f32 %v3135_v33, 0.0  ;;  %v3133_v7 = vadd.f32 %v3117_v43, %v3075_v14  ;;  %v3083_v14 = vsel %vm9281_vm3, %v4128_v15, 0.0  ;;  %v4180_v37 = vld [vmem:[%s4882_s9 + $0x80] sm:$0xff]   ;;  %vm9296_vm3 = vmmov %vm9252_vm0 }
 0x2e0   : > { %v4135_v20 = vunpack.c.l.bf16 %v4180_v37 }
 0x2e1   : > { %3167 = vst [vmem:[%s8226_s20 + $0xb8] sm:$0xff] %v3151_v32  ;;  %v3149_v48 = vmax.f32 %v3133_v7, 0.0  ;;  %v4139_v7 = vunpack.c.l.bf16 %v4181_v58 }
 0x2e3   : > { %3165 = vst [vmem:[%s8226_s20 + $0xa8] sm:$0xff] %v3149_v48 }
 0x2f5   : > { %v4390_v0 = vpop.f32.mrf.mxu1 }
 0x2f6   : > { %v3101_v9 = vmul.f32 %v4390_v0, %v8184_v49 }
 0x2f7   : > { %v3007_v59 = vpop.f32.mrf.mxu1 }
 0x2f8   : > { %v3122_v47 = vadd.f32 %v8197_v50, %v3101_v9  ;;  %v3099_v42 = vmul.f32 %v8184_v49, %v3007_v59  ;;  %v3783_v9 = vsel %vm9282_vm9, %v4139_v7, 0.0  ;;  %v4140_v59 = vunpack.c.h.bf16 %v4181_v58  ;;  %v4185_v7 = vld [vmem:[%s4882_s9 + $0xa8] sm:$0xff]  }
 0x2f9   : > { %v4391_v60 = vpop.f32.mrf.mxu1 }
 0x2fa   : > { %v3138_v63 = vadd.f32 %v3122_v47, %v3080_v61  ;;  %v3120_v3 = vadd.f32 %v8197_v50, %v3099_v42  ;;  %v3102_v28 = vmul.f32 %v4391_v60, %v8184_v49  ;;  %v3781_v42 = vsel %vm9252_vm0, %v4135_v20, 0.0 }
 0x2fb   : > { %v3010_v56 = vpop.f32.mrf.mxu1  ;;  %v4136_v60 = vunpack.c.h.bf16 %v4180_v37 }
 0x2fc   : > { %v3154_v22 = vmax.f32 %v3138_v63, 0.0  ;;  %v3136_v13 = vadd.f32 %v3120_v3, %v3078_v21  ;;  %v3123_v6 = vadd.f32 %v8197_v50, %v3102_v28  ;;  %v3100_v4 = vmul.f32 %v8184_v49, %v3010_v56 }
 0x2fd   : > { %v3784_v28 = vsel %vm9283_vm10, %v4140_v59, 0.0 }
 0x2fe   : > { %3170 = vst [vmem:[%s8226_s20 + $0xd0] sm:$0xff] %v3154_v22  ;;  %v3152_v36 = vmax.f32 %v3136_v13, 0.0  ;;  %v3139_v17 = vadd.f32 %v3123_v6, %v3081_v41  ;;  %v3121_v27 = vadd.f32 %v8197_v50, %v3100_v4  ;;  %v3782_v4 = vsel %vm9284_vm11, %v4136_v60, 0.0 }
 0x300   : > { %3168 = vst [vmem:[%s8226_s20 + $0xc0] sm:$0xff] %v3152_v36  ;;  %v3155_v29 = vmax.f32 %v3139_v17, 0.0  ;;  %v3137_v39 = vadd.f32 %v3121_v27, %v3079_v35 }
 0x302   : > { %3171 = vst [vmem:[%s8226_s20 + $0xd8] sm:$0xff] %v3155_v29  ;;  %v3153_v2 = vmax.f32 %v3137_v39, 0.0 }
 0x304   : > { %3169 = vst [vmem:[%s8226_s20 + $0xc8] sm:$0xff] %v3153_v2  ;;  %v4183_v2 = vld [vmem:[%s4882_s9 + $0x98] sm:$0xff]  }
 0x305   : > { %v4147_v40 = vunpack.c.l.bf16 %v4183_v2 }
 0x311   : > { %v4394_v34 = vpop.f32.mrf.mxu1 }
 0x312   : > { %v3105_v10 = vmul.f32 %v4394_v34, %v8184_v49  ;;  %v4143_v34 = vunpack.c.l.bf16 %v4182_v12 }
 0x313   : > { %v3023_v38 = vpop.f32.mrf.mxu1 }
 0x314   : > { %v3126_v57 = vadd.f32 %v8197_v50, %v3105_v10  ;;  %v3103_v62 = vmul.f32 %v8184_v49, %v3023_v38  ;;  %v3787_v10 = vsel %vm9285_vm4, %v4147_v40, 0.0  ;;  %v4148_v38 = vunpack.c.h.bf16 %v4183_v2  ;;  %v4186_v2 = vld [vmem:[%s4882_s9 + $0xb0] sm:$0xff]  }
 0x315   : > { %v4395_v30 = vpop.f32.mrf.mxu1 }
 0x316   : > { %v3142_v31 = vadd.f32 %v3126_v57, %v3084_v25  ;;  %v3124_v55 = vadd.f32 %v8197_v50, %v3103_v62  ;;  %v3106_v46 = vmul.f32 %v4395_v30, %v8184_v49  ;;  %v3785_v62 = vsel %vm9286_vm14, %v4143_v34, 0.0 }
 0x317   : > { %v3026_v26 = vpop.f32.mrf.mxu1  ;;  %v4144_v30 = vunpack.c.h.bf16 %v4182_v12 }
 0x318   : > { %v3158_v53 = vmax.f32 %v3142_v31, 0.0  ;;  %v3140_v16 = vadd.f32 %v3124_v55, %v3082_v45  ;;  %v3127_v24 = vadd.f32 %v8197_v50, %v3106_v46  ;;  %v3104_v18 = vmul.f32 %v8184_v49, %v3026_v26 }
 0x319   : > { %v3788_v46 = vsel %vm9287_vm15, %v4148_v38, 0.0 }
 0x31a   : > { %3174 = vst [vmem:[%s8226_s20 + $0xf0] sm:$0xff] %v3158_v53  ;;  %v3156_v33 = vmax.f32 %v3140_v16, 0.0  ;;  %v3143_v43 = vadd.f32 %v3127_v24, %v3085_v11  ;;  %v3125_v32 = vadd.f32 %v8197_v50, %v3104_v18  ;;  %v3786_v24 = vsel %vm9288_vm1, %v4144_v30, 0.0 }
 0x31c   : > { %3172 = vst [vmem:[%s8226_s20 + $0xe0] sm:$0xff] %v3156_v33  ;;  %v3159_v48 = vmax.f32 %v3143_v43, 0.0  ;;  %v3141_v23 = vadd.f32 %v3125_v32, %v3083_v14 }
 0x31d   : > { %v4414_v51 = vpop.f32.mrf.mxu1 }
 0x31e   : > { %v3804_v0 = vmul.f32 %v4414_v51, %v8184_v49  ;;  %3175 = vst [vmem:[%s8226_s20 + $0xf8] sm:$0xff] %v3159_v48  ;;  %v3157_v5 = vmax.f32 %v3141_v23, 0.0  ;;  %v4184_v48 = vld [vmem:[%s4882_s9 + $0xa0] sm:$0xff]   ;;  %v4155_v23 = vunpack.c.l.bf16 %v4185_v7 }
 0x31f   : > { %v3686_v61 = vpop.f32.mrf.mxu1  ;;  %v4151_v20 = vunpack.c.l.bf16 %v4184_v48 }
 0x320   : > { %v3825_v19 = vadd.f32 %v8197_v50, %v3804_v0  ;;  %v3802_v47 = vmul.f32 %v8184_v49, %v3686_v61  ;;  %3173 = vst [vmem:[%s8226_s20 + $0xe8] sm:$0xff] %v3157_v5  ;;  %v3791_v5 = vsel %vm9289_vm6, %v4155_v23, 0.0  ;;  %v4156_v61 = vunpack.c.h.bf16 %v4185_v7 }
 0x321   : > { %v4415_v21 = vpop.f32.mrf.mxu1 }
 0x322   : > { %v3841_v8 = vadd.f32 %v3825_v19, %v3783_v9  ;;  %v3823_v63 = vadd.f32 %v8197_v50, %v3802_v47  ;;  %v3805_v3 = vmul.f32 %v4415_v21, %v8184_v49  ;;  %v3789_v47 = vsel %vm9290_vm8, %v4151_v20, 0.0 }
 0x323   : > { %v3689_v41 = vpop.f32.mrf.mxu1  ;;  %v4152_v21 = vunpack.c.h.bf16 %v4184_v48 }
 0x324   : > { %v3857_v56 = vmax.f32 %v3841_v8, 0.0  ;;  %v3839_v22 = vadd.f32 %v3823_v63, %v3781_v42  ;;  %v3826_v13 = vadd.f32 %v8197_v50, %v3805_v3  ;;  %v3803_v6 = vmul.f32 %v8184_v49, %v3689_v41 }
 0x325   : > { %v3792_v3 = vsel %vm9291_vm5, %v4156_v61, 0.0 }
 0x326   : > { %3873 = vst [vmem:[%s8226_s20 + $0x110] sm:$0xff] %v3857_v56  ;;  %v3855_v35 = vmax.f32 %v3839_v22, 0.0  ;;  %v3842_v36 = vadd.f32 %v3826_v13, %v3784_v28  ;;  %v3824_v17 = vadd.f32 %v8197_v50, %v3803_v6  ;;  %v3790_v6 = vsel %vm9292_vm12, %v4152_v21, 0.0 }
 0x328   : > { %3871 = vst [vmem:[%s8226_s20 + $0x100] sm:$0xff] %v3855_v35  ;;  %v3858_v27 = vmax.f32 %v3842_v36, 0.0  ;;  %v3840_v29 = vadd.f32 %v3824_v17, %v3782_v4 }
 0x32a   : > { %3874 = vst [vmem:[%s8226_s20 + $0x118] sm:$0xff] %v3858_v27  ;;  %v3856_v39 = vmax.f32 %v3840_v29, 0.0 }
 0x32c   : > { %3872 = vst [vmem:[%s8226_s20 + $0x108] sm:$0xff] %v3856_v39  ;;  %v4187_v39 = vld [vmem:[%s4882_s9 + $0xb8] sm:$0xff]  }
 0x32d   : > { %v4163_v12 = vunpack.c.l.bf16 %v4187_v39 }
 0x333   : > { %v4418_v52 = vpop.f32.mrf.mxu1 }
 0x334   : > { %v3808_v1 = vmul.f32 %v4418_v52, %v8184_v49  ;;  %v4159_v52 = vunpack.c.l.bf16 %v4186_v2 }
 0x335   : > { %v3702_v25 = vpop.f32.mrf.mxu1 }
 0x336   : > { %v3829_v44 = vadd.f32 %v8197_v50, %v3808_v1  ;;  %v3806_v57 = vmul.f32 %v8184_v49, %v3702_v25  ;;  %v3795_v1 = vsel %vm9293_vm7, %v4163_v12, 0.0  ;;  %v4164_v25 = vunpack.c.h.bf16 %v4187_v39 }
 0x337   : > { %v4419_v45 = vpop.f32.mrf.mxu1 }
 0x338   : > { %v3845_v15 = vadd.f32 %v3829_v44, %v3787_v10  ;;  %v3827_v31 = vadd.f32 %v8197_v50, %v3806_v57  ;;  %v3809_v55 = vmul.f32 %v4419_v45, %v8184_v49  ;;  %v3793_v57 = vsel %vm9294_vm2, %v4159_v52, 0.0 }
 0x339   : > { %v3705_v11 = vpop.f32.mrf.mxu1  ;;  %v4160_v45 = vunpack.c.h.bf16 %v4186_v2 }
 0x33a   : > { %v3861_v26 = vmax.f32 %v3845_v15, 0.0  ;;  %v3843_v58 = vadd.f32 %v3827_v31, %v3785_v62  ;;  %v3830_v53 = vadd.f32 %v8197_v50, %v3809_v55  ;;  %v3807_v16 = vmul.f32 %v8184_v49, %v3705_v11 }
 0x33b   : > { %v3796_v55 = vsel %vm9295_vm13, %v4164_v25, 0.0 }
 0x33c   : > { %3877 = vst [vmem:[%s8226_s20 + $0x130] sm:$0xff] %v3861_v26  ;;  %v3859_v18 = vmax.f32 %v3843_v58, 0.0  ;;  %v3846_v14 = vadd.f32 %v3830_v53, %v3788_v46  ;;  %v3828_v37 = vadd.f32 %v8197_v50, %v3807_v16  ;;  %v3794_v16 = vsel %vm9296_vm3, %v4160_v45, 0.0 }
 0x33e   : > { %3875 = vst [vmem:[%s8226_s20 + $0x120] sm:$0xff] %v3859_v18  ;;  %v3862_v33 = vmax.f32 %v3846_v14, 0.0  ;;  %v3844_v43 = vadd.f32 %v3828_v37, %v3786_v24 }
 0x340   : > { %3878 = vst [vmem:[%s8226_s20 + $0x138] sm:$0xff] %v3862_v33  ;;  %v3860_v32 = vmax.f32 %v3844_v43, 0.0 }
 0x342   : > { %3876 = vst [vmem:[%s8226_s20 + $0x128] sm:$0xff] %v3860_v32 }
 0x345   : > { %v4422_v51 = vpop.f32.mrf.mxu1 }
 0x346   : > { %v3812_v0 = vmul.f32 %v4422_v51, %v8184_v49 }
 0x347   : > { %v3718_v9 = vpop.f32.mrf.mxu1 }
 0x348   : > { %v3833_v59 = vadd.f32 %v8197_v50, %v3812_v0  ;;  %v3810_v19 = vmul.f32 %v8184_v49, %v3718_v9 }
 0x349   : > { %v4423_v42 = vpop.f32.mrf.mxu1 }
 0x34a   : > { %v3849_v60 = vadd.f32 %v3833_v59, %v3791_v5  ;;  %v3831_v8 = vadd.f32 %v8197_v50, %v3810_v19  ;;  %v3813_v63 = vmul.f32 %v4423_v42, %v8184_v49 }
 0x34b   : > { %v3721_v28 = vpop.f32.mrf.mxu1 }
 0x34c   : > { %v3865_v41 = vmax.f32 %v3849_v60, 0.0  ;;  %v3847_v56 = vadd.f32 %v3831_v8, %v3789_v47  ;;  %v3834_v22 = vadd.f32 %v8197_v50, %v3813_v63  ;;  %v3811_v13 = vmul.f32 %v8184_v49, %v3721_v28 }
 0x34e   : > { %3881 = vst [vmem:[%s8226_s20 + $0x150] sm:$0xff] %v3865_v41  ;;  %v3863_v4 = vmax.f32 %v3847_v56, 0.0  ;;  %v3850_v35 = vadd.f32 %v3834_v22, %v3792_v3  ;;  %v3832_v36 = vadd.f32 %v8197_v50, %v3811_v13 }
 0x350   : > { %3879 = vst [vmem:[%s8226_s20 + $0x140] sm:$0xff] %v3863_v4  ;;  %v3866_v17 = vmax.f32 %v3850_v35, 0.0  ;;  %v3848_v27 = vadd.f32 %v3832_v36, %v3790_v6 }
 0x352   : > { %3882 = vst [vmem:[%s8226_s20 + $0x158] sm:$0xff] %v3866_v17  ;;  %v3864_v29 = vmax.f32 %v3848_v27, 0.0 }
 0x354   : > { %3880 = vst [vmem:[%s8226_s20 + $0x148] sm:$0xff] %v3864_v29 }
 0x356   : > { %v4426_v40 = vpop.f32.mrf.mxu1 }
 0x357   : > { %v3816_v34 = vmul.f32 %v4426_v40, %v8184_v49 }
 0x358   : > { %v3734_v10 = vpop.f32.mrf.mxu1 }
 0x359   : > { %v3837_v38 = vadd.f32 %v8197_v50, %v3816_v34  ;;  %v3814_v44 = vmul.f32 %v8184_v49, %v3734_v10 }
 0x35a   : > { %v4427_v62 = vpop.f32.mrf.mxu1 }
 0x35b   : > { %v3853_v30 = vadd.f32 %v3837_v38, %v3795_v1  ;;  %v3835_v15 = vadd.f32 %v8197_v50, %v3814_v44  ;;  %v3817_v31 = vmul.f32 %v4427_v62, %v8184_v49 }
 0x35c   : > { %v3737_v46 = vpop.f32.mrf.mxu1 }
 0x35d   : > { %v3869_v11 = vmax.f32 %v3853_v30, 0.0  ;;  %v3851_v26 = vadd.f32 %v3835_v15, %v3793_v57  ;;  %v3838_v58 = vadd.f32 %v8197_v50, %v3817_v31  ;;  %v3815_v53 = vmul.f32 %v8184_v49, %v3737_v46 }
 0x35f   : > { %3885 = vst [vmem:[%s8226_s20 + $0x170] sm:$0xff] %v3869_v11  ;;  %v3867_v24 = vmax.f32 %v3851_v26, 0.0  ;;  %v3854_v18 = vadd.f32 %v3838_v58, %v3796_v55  ;;  %v3836_v14 = vadd.f32 %v8197_v50, %v3815_v53 }
 0x361   : > { %3883 = vst [vmem:[%s8226_s20 + $0x160] sm:$0xff] %v3867_v24  ;;  %v3870_v37 = vmax.f32 %v3854_v18, 0.0  ;;  %v3852_v33 = vadd.f32 %v3836_v14, %v3794_v16 }
 0x363   : > { %3886 = vst [vmem:[%s8226_s20 + $0x178] sm:$0xff] %v3870_v37  ;;  %v3868_v54 = vmax.f32 %v3852_v33, 0.0 }
 0x365   : > { %3884 = vst [vmem:[%s8226_s20 + $0x168] sm:$0xff] %v3868_v54 }
 0x366   : > { %4659 = shalt.err (!%p4656_p3)
}
 0x367   : > { %s4660_s21 = scalar_lea.hbm %s8477_s30, 6144  ;;  %s4664_s6 = scalar_lea.hbm %s8527_s3, 12288 }
 0x368   : > { %p4661_p2 = scmp.ne.s32.totalorder %s8477_s30, %s4660_s21  ;;  %p4665_p4 = scmp.lt.s32.totalorder %s8477_s30, %s8527_s3 }
 0x369   : > { %p4666_p6 = scmp.lt.s32.totalorder %s4664_s6, %s4660_s21 }
 0x36a   : > { %p4662_p9 = pnand %p4661_p2, %p9297_p11 }
 0x36b   : > { %p4667_p8 = por %p4666_p6, %p4665_p4 }
 0x36c   : > { %p4663_p1 = pneg %p4662_p9 }
 0x36e   : > { %p4668_p5 = pnand %p4667_p8, %p4663_p1 }
 0x370   : > { %4671 = shalt.err (!%p4668_p5)
}
 0x371   : > { %s4723_s18 = smov 128   ;;  %s4724_s20 = smov 8  }
 0x372   : > { %4443 = dma.vmem_to_hbm [thread:$0]  (%p9297_p11), %s8480_s28, 6144, %s8477_s30, %s3888_s16, %s4723_s18, %s4723_s18, %s4724_s20  }
 0x373 PF: > { %s3916_s27 = sand.u32 1, %s4702_s12   ;;  %p9298_p7 = scmp.ne.s32.totalorder %s8640_s19, 0 }
 0x374   : > { %p9299_p12 = scmp.ge.s32.totalorder %s4714_s15, 2  ;;  %s3917_s23 = scalar_lea.sflag [#allocation5], %s3916_s27 }
 0x376   : > { %p4457_p13 = pnand %p9299_p12, %p9298_p7 }
 0x378   : > { %p4458_p0 = pneg %p4457_p13 }
 0x37a   : > { %4697 = dma.done.wait (%p4458_p0), %s3917_s23, 6144  }
 0x37b   : > { %4699 = vsyncadd (%p4458_p0), %s3917_s23, 4294961152  ;;  %p17_p10 = scmp.ge.s32.totalorder %s4820_s7, 4   ;;  %s9300_s12 = smov %s4706_s13 }
 0x37c   : > { %s9301_s13 = smov %s4710_s14  ;;  %s9302_s14 = smov %s4836_s11 }
 0x37d   : > { %s9303_s15 = smov %s4820_s7  ;;  %19 = sbr.rel (!%p17_p10) target bundleno = 6 (0x6), region = 86 }
 0x382   :  { %3922 = vsyncpa [#allocation4], 1 }
 0x383   :  { %3924 = vsyncpa [#allocation4 + $0x1], 1 }
 0x384   :  { %3925 = vsyncpa [#allocation7], 1 }
 0x385   :  { %3926 = vsyncpa [#allocation5], 1 }
 0x386   :  { %3928 = vsyncpa [#allocation5 + $0x1], 1 }

</bundles_post_ra>
